<compile_context>
chip_gen: v6e
topology: v6e:2x2x1
jax: 0.10.0
libtpu: 0.0.40
codegen_flags: <defaults>
</compile_context>

<pallas_src>
import functools

import jax
import jax.numpy as jnp
from jax.experimental import pallas as pl
from jax.experimental.pallas import tpu as pltpu

WEIGHT_DTYPE = jnp.bfloat16   # MXU operand dtype (accumulation is always f32)
ACT_DTYPE = jnp.bfloat16      # precomputed gates / inter-layer activations


# ----------------------------------------------------------------------------
# Tiled matmul + bias kernel:  (TT*B, K) @ (K, TN) + b   (time- and col-tiled).
# Used for the per-layer gate pre-pass and for the final Linear.
# ----------------------------------------------------------------------------
def _matmul_bias_kernel(x_ref, w_ref, b_ref, o_ref):
    tt, b, k = x_ref.shape
    x = x_ref[...].reshape(tt * b, k).astype(w_ref.dtype)
    y = jnp.dot(x, w_ref[...], preferred_element_type=jnp.float32) + b_ref[...]
    o_ref[...] = y.reshape(tt, b, -1).astype(o_ref.dtype)


def _matmul_bias(x_tm, w, b, tt, tn, out_dtype):
    """x_tm: (T, B, K) time-major.  w: (K, N) bf16.  b: (1, N) f32."""
    T, B, K = x_tm.shape
    N = w.shape[1]
    return pl.pallas_call(
        _matmul_bias_kernel,
        out_shape=jax.ShapeDtypeStruct((T, B, N), out_dtype),
        grid=(T // tt, N // tn),
        in_specs=[
            pl.BlockSpec((tt, B, K), lambda i, j: (i, 0, 0)),
            pl.BlockSpec((K, tn), lambda i, j: (0, j)),
            pl.BlockSpec((1, tn), lambda i, j: (0, j)),
        ],
        out_specs=pl.BlockSpec((tt, B, tn), lambda i, j: (i, 0, j)),
        compiler_params=pltpu.CompilerParams(
            dimension_semantics=("parallel", "parallel")),
    )(x_tm, w, b)


# ----------------------------------------------------------------------------
# Fused bidirectional GRU recurrence.
# grid = (2 directions ["parallel"], time-chunks ["arbitrary"]).
# Per grid step: an unrolled loop over TT timesteps; hidden state lives in a
# (2, B, H) VMEM scratch (one slot per direction).  Only h @ W_hh^T and the
# gate nonlinearities are on the sequential path.
# ----------------------------------------------------------------------------
def _bigru_kernel(gi_ref, whh_ref, bhn_ref, out_ref, h_ref):
    d = pl.program_id(0)          # 0 = forward, 1 = backward
    c = pl.program_id(1)          # chunk counter (backward chunks via index_map)
    tt = gi_ref.shape[0]
    hdim = h_ref.shape[-1]

    @pl.when(c == 0)
    def _():
        h_ref[d] = jnp.zeros((h_ref.shape[1], hdim), h_ref.dtype)

    whh = whh_ref[0]              # (H, 3H)  bf16
    bhn = bhn_ref[0]              # (1, H)   f32
    h = h_ref[d]                  # (B, H)   f32 carried state

    # forward walks local steps 0..tt-1; backward walks tt-1..0
    for i in range(tt):
        t = i + d * (tt - 1 - 2 * i)
        gi = gi_ref[t].astype(jnp.float32)                     # (B, 3H), biases folded
        gh = jnp.dot(h.astype(whh.dtype), whh,
                     preferred_element_type=jnp.float32)       # (B, 3H)
        r = jax.nn.sigmoid(gi[:, 0:hdim] + gh[:, 0:hdim])
        z = jax.nn.sigmoid(gi[:, hdim:2 * hdim] + gh[:, hdim:2 * hdim])
        n = jnp.tanh(gi[:, 2 * hdim:] + r * (gh[:, 2 * hdim:] + bhn))
        h = (1.0 - z) * n + z * h
        out_ref[t] = h.astype(out_ref.dtype)

    h_ref[d] = h


def _bigru(gi, whh, bhn, tt):
    """gi: (T, B, 6H) precomputed gates [fwd|bwd].  Returns (T, B, 2H)."""
    T, B, _ = gi.shape
    H = whh.shape[1]
    nc = T // tt

    def io_map(d, c):
        # forward (d=0) visits chunk c, backward (d=1) visits chunk nc-1-c,
        # and each direction owns its half of the gate / output feature axis.
        return (c + d * (nc - 1 - 2 * c), 0, d)

    return pl.pallas_call(
        _bigru_kernel,
        out_shape=jax.ShapeDtypeStruct((T, B, 2 * H), ACT_DTYPE),
        grid=(2, nc),
        in_specs=[
            pl.BlockSpec((tt, B, 3 * H), io_map),
            pl.BlockSpec((1, H, 3 * H), lambda d, c: (d, 0, 0)),
            pl.BlockSpec((1, 1, H), lambda d, c: (d, 0, 0)),
        ],
        out_specs=pl.BlockSpec((tt, B, H), io_map),
        scratch_shapes=[pltpu.VMEM((2, B, H), jnp.float32)],
        compiler_params=pltpu.CompilerParams(
            dimension_semantics=("parallel", "arbitrary")),
    )(gi, whh, bhn)


# ----------------------------------------------------------------------------
# Chunk-size helpers.
# ----------------------------------------------------------------------------
def _choose_time_chunk(total, target):
    for tt in range(min(total, target), 0, -1):
        if total % tt == 0:
            return tt
    return total


def _choose_col_chunk(n, target=1024):
    # lane-dense column tile: full width if small, else a multiple-of-128 divisor
    if n <= target:
        return n
    for tn in range(target - target % 128, 0, -128):
        if n % tn == 0:
            return tn
    return n


# ----------------------------------------------------------------------------
# Full Encoder forward (eval semantics).
# ----------------------------------------------------------------------------
def encoder_forward(x_btd, params, *, rnn_chunk=8, proj_chunk=16):
    """x_btd: (B, T, num_inputs) batch-first, like the PyTorch module."""
    _, T, _ = x_btd.shape
    H = params["gru_layers"][0]["w_hh"].shape[1]
    if H % 128 != 0:
        raise ValueError("hidden size must be a multiple of 128 (lane aligned)")

    tt_rnn = _choose_time_chunk(T, rnn_chunk)
    tt_prj = _choose_time_chunk(T, proj_chunk)

    # single cheap layout change in/out; all big intermediates stay time-major
    h_tm = jnp.transpose(x_btd, (1, 0, 2))                     # (T, B, D)
    for layer in params["gru_layers"]:
        tn = _choose_col_chunk(layer["w_proj"].shape[1])
        gi = _matmul_bias(h_tm, layer["w_proj"], layer["b_proj"],
                          tt_prj, tn, ACT_DTYPE)               # (T, B, 6H)
        h_tm = _bigru(gi, layer["w_hh"], layer["b_hn"], tt_rnn)  # (T, B, 2H)

    tn = _choose_col_chunk(params["lin_w_t"].shape[1])
    y_tm = _matmul_bias(h_tm, params["lin_w_t"], params["lin_b"],
                        tt_prj, tn, jnp.float32)               # (T, B, J)
    return jnp.transpose(y_tm, (1, 0, 2))                      # (B, T, J)


# ----------------------------------------------------------------------------
# Parameter init (mirrors PyTorch uniform(-1/sqrt(H), 1/sqrt(H))), packed into
# the fused/folded layout used by the kernels.
# ----------------------------------------------------------------------------
def init_params(key, num_inputs, hidden, joiner, num_layers=3):
    H = hidden
    k = 1.0 / (H ** 0.5)
    layers = []
    for layer_idx in range(num_layers):
        d_in = num_inputs if layer_idx == 0 else 2 * H
        w_cols, b_cols, whh_stack, bhn_stack = [], [], [], []
        for _ in range(2):                       # fwd, bwd
            key, k1, k2, k3, k4 = jax.random.split(key, 5)
            w_ih = jax.random.uniform(k1, (3 * H, d_in), jnp.float32, -k, k)
            w_hh = jax.random.uniform(k2, (3 * H, H), jnp.float32, -k, k)
            b_ih = jax.random.uniform(k3, (3 * H,), jnp.float32, -k, k)
            b_hh = jax.random.uniform(k4, (3 * H,), jnp.float32, -k, k)
            w_cols.append(w_ih.T)                                   # (d_in, 3H)
            # fold b_ih + [b_hr, b_hz, 0] into the hoisted projection bias
            b_cols.append(b_ih + jnp.concatenate(
                [b_hh[:2 * H], jnp.zeros((H,), jnp.float32)]))
            whh_stack.append(w_hh.T)                                # (H, 3H)
            bhn_stack.append(b_hh[2 * H:].reshape(1, H))            # (1, H)
        layers.append({
            "w_proj": jnp.concatenate(w_cols, axis=1).astype(WEIGHT_DTYPE),  # (d_in, 6H)
            "b_proj": jnp.concatenate(b_cols).reshape(1, 6 * H),             # f32
            "w_hh": jnp.stack(whh_stack).astype(WEIGHT_DTYPE),               # (2, H, 3H)
            "b_hn": jnp.stack(bhn_stack),                                    # (2, 1, H) f32
        })

    key, k1, k2 = jax.random.split(key, 3)
    kl = 1.0 / ((2 * H) ** 0.5)
    lin_w = jax.random.uniform(k1, (joiner, 2 * H), jnp.float32, -kl, kl)
    lin_b = jax.random.uniform(k2, (joiner,), jnp.float32, -kl, kl)
    return {
        "gru_layers": layers,
        "lin_w_t": lin_w.T.astype(WEIGHT_DTYPE),   # (2H, J)
        "lin_b": lin_b.reshape(1, joiner),         # f32
    }


# ----------------------------------------------------------------------------
# Pure-JAX reference (f32 math, same packed parameters) for a structural check.
# ----------------------------------------------------------------------------
def encoder_reference(x_btd, params):
    x = jnp.transpose(x_btd, (1, 0, 2)).astype(jnp.float32)     # (T, B, D)
    T, B, _ = x.shape
    for layer in params["gru_layers"]:
        w = layer["w_proj"].astype(jnp.float32)
        bias = layer["b_proj"].astype(jnp.float32)[0]
        whh = layer["w_hh"].astype(jnp.float32)
        bhn = layer["b_hn"].astype(jnp.float32)
        H = whh.shape[1]
        gi = jnp.einsum("tbd,dg->tbg", x, w) + bias
        halves = []
        for d in range(2):
            g = gi[..., d * 3 * H:(d + 1) * 3 * H]
            h = jnp.zeros((B, H), jnp.float32)
            hs = [None] * T
            order = range(T) if d == 0 else range(T - 1, -1, -1)
            for t in order:
                gh = h @ whh[d]
                r = jax.nn.sigmoid(g[t, :, :H] + gh[:, :H])
                z = jax.nn.sigmoid(g[t, :, H:2 * H] + gh[:, H:2 * H])
                n = jnp.tanh(g[t, :, 2 * H:] + r * (gh[:, 2 * H:] + bhn[d]))
                h = (1.0 - z) * n + z * h
                hs[t] = h
            halves.append(jnp.stack(hs))
        x = jnp.concatenate(halves, axis=-1)
    y = jnp.einsum("tbf,fj->tbj", x, params["lin_w_t"].astype(jnp.float32))
    y = y + params["lin_b"][0]
    return jnp.transpose(y, (1, 0, 2))


if __name__ == "__main__":
    # Small, (8,128)-aligned shapes consistent with the module
    # (encoder_dim / joiner_dim scaled down from 1024 to 128).
    batch, seq, num_inputs = 8, 32, 128
    encoder_dim, joiner_dim = 128, 128

    key = jax.random.PRNGKey(0)
    key, pkey, xkey = jax.random.split(key, 3)
    params = init_params(pkey, num_inputs, encoder_dim, joiner_dim, num_layers=3)
    x = jax.random.normal(xkey, (batch, seq, num_inputs), jnp.float32)

    fwd = jax.jit(functools.partial(encoder_forward, params=params))
    out = fwd(x)
    jax.block_until_ready(out)

    assert out.shape == (batch, seq, joiner_dim), out.shape
    assert bool(jnp.all(jnp.isfinite(out)))

    # Structural correctness check against a pure-JAX reference built from the
    # same (bf16-stored) parameters; tolerance covers bf16 activation storage.
    ref = jax.jit(functools.partial(encoder_reference, params=params))(x)
    err = float(jnp.max(jnp.abs(out - ref)))
    assert err < 5e-2, f"mismatch vs pure-JAX reference: max abs err = {err}"

    print("KERNEL_OK")
</pallas_src>

<mosaic_0001>
module attributes {stable_mosaic.version = 11 : i64} {
  func.func @_matmul_bias_kernel(%arg0: i32, %arg1: i32, %arg2: memref<16x8x128xf32, #tpu.memory_space<vmem>>, %arg3: memref<128x768xbf16, #tpu.memory_space<vmem>>, %arg4: memref<1x768xf32, #tpu.memory_space<vmem>>, %arg5: memref<16x8x768xbf16, #tpu.memory_space<vmem>>) attributes {dimension_semantics = [#tpu.dimension_semantics<parallel>, #tpu.dimension_semantics<parallel>], iteration_bounds = array<i64: 2, 1>, scalar_prefetch = 0 : i64, scratch_operands = 0 : i64, tpu.core_type = #tpu.core_type<tc>, window_params = [{transform_indices = @transform_0, window_bounds = array<i64: 16, 8, 128>}, {transform_indices = @transform_1, window_bounds = array<i64: 128, 768>}, {transform_indices = @transform_2, window_bounds = array<i64: 1, 768>}, {transform_indices = @transform_3, window_bounds = array<i64: 16, 8, 768>}]} {
    %c0 = arith.constant 0 : index
    %c0_0 = arith.constant 0 : index
    %c0_1 = arith.constant 0 : index
    %0 = vector.load %arg2[%c0, %c0_0, %c0_1] : memref<16x8x128xf32, #tpu.memory_space<vmem>>, vector<16x8x128xf32>
    %1 = vector.shape_cast %0 : vector<16x8x128xf32> to vector<128x128xf32>
    %2 = arith.truncf %1 : vector<128x128xf32> to vector<128x128xbf16>
    %c0_2 = arith.constant 0 : index
    %c0_3 = arith.constant 0 : index
    %3 = vector.load %arg3[%c0_2, %c0_3] : memref<128x768xbf16, #tpu.memory_space<vmem>>, vector<128x768xbf16>
    %cst = arith.constant dense<0.000000e+00> : vector<128x768xf32>
    %4 = tpu.matmul %2, %3, %cst {dimension_numbers = #tpu.dot_dimension_numbers<[1], [0], [0], [1], [0, 0, 1, 1], [], []>} : vector<128x128xbf16>, vector<128x768xbf16>, vector<128x768xf32> -> vector<128x768xf32>
    %c0_4 = arith.constant 0 : index
    %c0_5 = arith.constant 0 : index
    %5 = vector.load %arg4[%c0_4, %c0_5] : memref<1x768xf32, #tpu.memory_space<vmem>>, vector<1x768xf32>
    %6 = vector.broadcast %5 : vector<1x768xf32> to vector<128x768xf32>
    %7 = arith.addf %4, %6 : vector<128x768xf32>
    %8 = vector.shape_cast %7 : vector<128x768xf32> to vector<16x8x768xf32>
    %9 = arith.truncf %8 : vector<16x8x768xf32> to vector<16x8x768xbf16>
    %c0_6 = arith.constant 0 : index
    %c0_7 = arith.constant 0 : index
    %c0_8 = arith.constant 0 : index
    %10 = vector.load %arg5[%c0_6, %c0_7, %c0_8] : memref<16x8x768xbf16, #tpu.memory_space<vmem>>, vector<16x8x768xbf16>
    tpu.vector_store %arg5[%c0_6, %c0_7, %c0_8], %9 {strides = array<i32>} : memref<16x8x768xbf16, #tpu.memory_space<vmem>>, vector<16x8x768xbf16>,
    return
  }
  func.func @transform_0(%arg0: i32, %arg1: i32) -> (i32, i32, i32) {
    %c0_i32 = arith.constant 0 : i32
    %c0_i32_0 = arith.constant 0 : i32
    %c0_i32_1 = arith.constant 0 : i32
    return %arg0, %c0_i32, %c0_i32_0 : i32, i32, i32
  }
  func.func @transform_1(%arg0: i32, %arg1: i32) -> (i32, i32) {
    %c0_i32 = arith.constant 0 : i32
    %c0_i32_0 = arith.constant 0 : i32
    return %c0_i32, %arg1 : i32, i32
  }
  func.func @transform_2(%arg0: i32, %arg1: i32) -> (i32, i32) {
    %c0_i32 = arith.constant 0 : i32
    %c0_i32_0 = arith.constant 0 : i32
    return %c0_i32, %arg1 : i32, i32
  }
  func.func @transform_3(%arg0: i32, %arg1: i32) -> (i32, i32, i32) {
    %c0_i32 = arith.constant 0 : i32
    %c0_i32_0 = arith.constant 0 : i32
    return %arg0, %c0_i32, %arg1 : i32, i32, i32
  }
}

module attributes {stable_mosaic.version = 11 : i64} {
  func.func @_matmul_bias_kernel(%arg0: i32, %arg1: i32, %arg2: memref<16x8x256xbf16, #tpu.memory_space<vmem>>, %arg3: memref<256x768xbf16, #tpu.memory_space<vmem>>, %arg4: memref<1x768xf32, #tpu.memory_space<vmem>>, %arg5: memref<16x8x768xbf16, #tpu.memory_space<vmem>>) attributes {dimension_semantics = [#tpu.dimension_semantics<parallel>, #tpu.dimension_semantics<parallel>], iteration_bounds = array<i64: 2, 1>, scalar_prefetch = 0 : i64, scratch_operands = 0 : i64, tpu.core_type = #tpu.core_type<tc>, window_params = [{transform_indices = @transform_0, window_bounds = array<i64: 16, 8, 256>}, {transform_indices = @transform_1, window_bounds = array<i64: 256, 768>}, {transform_indices = @transform_2, window_bounds = array<i64: 1, 768>}, {transform_indices = @transform_3, window_bounds = array<i64: 16, 8, 768>}]} {
    %c0 = arith.constant 0 : index
    %c0_0 = arith.constant 0 : index
    %c0_1 = arith.constant 0 : index
    %0 = vector.load %arg2[%c0, %c0_0, %c0_1] : memref<16x8x256xbf16, #tpu.memory_space<vmem>>, vector<16x8x256xbf16>
    %1 = vector.shape_cast %0 : vector<16x8x256xbf16> to vector<128x256xbf16>
    %c0_2 = arith.constant 0 : index
    %c0_3 = arith.constant 0 : index
    %2 = vector.load %arg3[%c0_2, %c0_3] : memref<256x768xbf16, #tpu.memory_space<vmem>>, vector<256x768xbf16>
    %cst = arith.constant dense<0.000000e+00> : vector<128x768xf32>
    %3 = tpu.matmul %1, %2, %cst {dimension_numbers = #tpu.dot_dimension_numbers<[1], [0], [0], [1], [0, 0, 1, 1], [], []>} : vector<128x256xbf16>, vector<256x768xbf16>, vector<128x768xf32> -> vector<128x768xf32>
    %c0_4 = arith.constant 0 : index
    %c0_5 = arith.constant 0 : index
    %4 = vector.load %arg4[%c0_4, %c0_5] : memref<1x768xf32, #tpu.memory_space<vmem>>, vector<1x768xf32>
    %5 = vector.broadcast %4 : vector<1x768xf32> to vector<128x768xf32>
    %6 = arith.addf %3, %5 : vector<128x768xf32>
    %7 = vector.shape_cast %6 : vector<128x768xf32> to vector<16x8x768xf32>
    %8 = arith.truncf %7 : vector<16x8x768xf32> to vector<16x8x768xbf16>
    %c0_6 = arith.constant 0 : index
    %c0_7 = arith.constant 0 : index
    %c0_8 = arith.constant 0 : index
    %9 = vector.load %arg5[%c0_6, %c0_7, %c0_8] : memref<16x8x768xbf16, #tpu.memory_space<vmem>>, vector<16x8x768xbf16>
    tpu.vector_store %arg5[%c0_6, %c0_7, %c0_8], %8 {strides = array<i32>} : memref<16x8x768xbf16, #tpu.memory_space<vmem>>, vector<16x8x768xbf16>,
    return
  }
  func.func @transform_0(%arg0: i32, %arg1: i32) -> (i32, i32, i32) {
    %c0_i32 = arith.constant 0 : i32
    %c0_i32_0 = arith.constant 0 : i32
    %c0_i32_1 = arith.constant 0 : i32
    return %arg0, %c0_i32, %c0_i32_0 : i32, i32, i32
  }
  func.func @transform_1(%arg0: i32, %arg1: i32) -> (i32, i32) {
    %c0_i32 = arith.constant 0 : i32
    %c0_i32_0 = arith.constant 0 : i32
    return %c0_i32, %arg1 : i32, i32
  }
  func.func @transform_2(%arg0: i32, %arg1: i32) -> (i32, i32) {
    %c0_i32 = arith.constant 0 : i32
    %c0_i32_0 = arith.constant 0 : i32
    return %c0_i32, %arg1 : i32, i32
  }
  func.func @transform_3(%arg0: i32, %arg1: i32) -> (i32, i32, i32) {
    %c0_i32 = arith.constant 0 : i32
    %c0_i32_0 = arith.constant 0 : i32
    return %arg0, %c0_i32, %arg1 : i32, i32, i32
  }
}

module attributes {stable_mosaic.version = 11 : i64} {
  func.func @_bigru_kernel(%arg0: i32, %arg1: i32, %arg2: memref<8x8x384xbf16, #tpu.memory_space<vmem>>, %arg3: memref<1x128x384xbf16, #tpu.memory_space<vmem>>, %arg4: memref<1x1x128xf32, #tpu.memory_space<vmem>>, %arg5: memref<8x8x128xbf16, #tpu.memory_space<vmem>>, %arg6: memref<2x8x128xf32, #tpu.memory_space<vmem>>) attributes {dimension_semantics = [#tpu.dimension_semantics<parallel>, #tpu.dimension_semantics<arbitrary>], iteration_bounds = array<i64: 2, 4>, scalar_prefetch = 0 : i64, scratch_operands = 1 : i64, tpu.core_type = #tpu.core_type<tc>, window_params = [{transform_indices = @transform_0, window_bounds = array<i64: 8, 8, 384>}, {transform_indices = @transform_1, window_bounds = array<i64: 1, 128, 384>}, {transform_indices = @transform_2, window_bounds = array<i64: 1, 1, 128>}, {transform_indices = @transform_3, window_bounds = array<i64: 8, 8, 128>}]} {
    %c0_i32 = arith.constant 0 : i32
    %0 = arith.cmpi eq, %arg1, %c0_i32 : i32
    %1 = arith.extui %0 : i1 to i32
    %c0_i32_0 = arith.constant 0 : i32
    %2 = arith.cmpi ne, %1, %c0_i32_0 : i32
    scf.if %2 {
      %cst_78 = arith.constant 0.000000e+00 : f32
      %342 = vector.broadcast %cst_78 : f32 to vector<8x128xf32>
      %343 = arith.index_cast %arg0 : i32 to index
      %c0_79 = arith.constant 0 : index
      %c0_80 = arith.constant 0 : index
      %344 = vector.load %arg6[%343, %c0_79, %c0_80] : memref<2x8x128xf32, #tpu.memory_space<vmem>>, vector<1x8x128xf32>
      %345 = vector.shape_cast %344 : vector<1x8x128xf32> to vector<8x128xf32>
      %346 = vector.shape_cast %342 : vector<8x128xf32> to vector<1x8x128xf32>
      tpu.vector_store %arg6[%343, %c0_79, %c0_80], %346 {strides = array<i32>} : memref<2x8x128xf32, #tpu.memory_space<vmem>>, vector<1x8x128xf32>,
    } else {
    }
    %c0 = arith.constant 0 : index
    %c0_1 = arith.constant 0 : index
    %c0_2 = arith.constant 0 : index
    %3 = vector.load %arg3[%c0, %c0_1, %c0_2] : memref<1x128x384xbf16, #tpu.memory_space<vmem>>, vector<1x128x384xbf16>
    %4 = vector.shape_cast %3 : vector<1x128x384xbf16> to vector<128x384xbf16>
    %c0_3 = arith.constant 0 : index
    %c0_4 = arith.constant 0 : index
    %c0_5 = arith.constant 0 : index
    %5 = vector.load %arg4[%c0_3, %c0_4, %c0_5] : memref<1x1x128xf32, #tpu.memory_space<vmem>>, vector<1x1x128xf32>
    %6 = vector.shape_cast %5 : vector<1x1x128xf32> to vector<1x128xf32>
    %7 = arith.index_cast %arg0 : i32 to index
    %c0_6 = arith.constant 0 : index
    %c0_7 = arith.constant 0 : index
    %8 = vector.load %arg6[%7, %c0_6, %c0_7] : memref<2x8x128xf32, #tpu.memory_space<vmem>>, vector<1x8x128xf32>
    %9 = vector.shape_cast %8 : vector<1x8x128xf32> to vector<8x128xf32>
    %c7_i32 = arith.constant 7 : i32
    %10 = arith.muli %arg0, %c7_i32 : i32
    %c0_i32_8 = arith.constant 0 : i32
    %11 = arith.addi %c0_i32_8, %10 : i32
    %12 = arith.index_cast %11 : i32 to index
    %c0_9 = arith.constant 0 : index
    %c0_10 = arith.constant 0 : index
    %13 = vector.load %arg2[%12, %c0_9, %c0_10] : memref<8x8x384xbf16, #tpu.memory_space<vmem>>, vector<1x8x384xbf16>
    %14 = vector.shape_cast %13 : vector<1x8x384xbf16> to vector<8x384xbf16>
    %15 = arith.extf %14 : vector<8x384xbf16> to vector<8x384xf32>
    %16 = arith.truncf %9 : vector<8x128xf32> to vector<8x128xbf16>
    %cst = arith.constant dense<0.000000e+00> : vector<8x384xf32>
    %17 = tpu.matmul %16, %4, %cst {dimension_numbers = #tpu.dot_dimension_numbers<[1], [0], [0], [1], [0, 0, 1, 1], [], []>} : vector<8x128xbf16>, vector<128x384xbf16>, vector<8x384xf32> -> vector<8x384xf32>
    %18 = vector.extract_strided_slice %15 {offsets = [0, 0], sizes = [8, 128], strides = [1, 1]} : vector<8x384xf32> to vector<8x128xf32>
    %19 = vector.extract_strided_slice %17 {offsets = [0, 0], sizes = [8, 128], strides = [1, 1]} : vector<8x384xf32> to vector<8x128xf32>
    %20 = arith.addf %18, %19 : vector<8x128xf32>
    %21 = arith.negf %20 : vector<8x128xf32>
    %22 = math.exp %21 : vector<8x128xf32>
    %cst_11 = arith.constant 1.000000e+00 : f32
    %23 = vector.broadcast %cst_11 : f32 to vector<8x128xf32>
    %24 = arith.addf %23, %22 : vector<8x128xf32>
    %25 = arith.divf %23, %24 : vector<8x128xf32>
    %26 = vector.extract_strided_slice %15 {offsets = [0, 128], sizes = [8, 128], strides = [1, 1]} : vector<8x384xf32> to vector<8x128xf32>
    %27 = vector.extract_strided_slice %17 {offsets = [0, 128], sizes = [8, 128], strides = [1, 1]} : vector<8x384xf32> to vector<8x128xf32>
    %28 = arith.addf %26, %27 : vector<8x128xf32>
    %29 = arith.negf %28 : vector<8x128xf32>
    %30 = math.exp %29 : vector<8x128xf32>
    %cst_12 = arith.constant 1.000000e+00 : f32
    %31 = vector.broadcast %cst_12 : f32 to vector<8x128xf32>
    %32 = arith.addf %31, %30 : vector<8x128xf32>
    %33 = arith.divf %31, %32 : vector<8x128xf32>
    %34 = vector.extract_strided_slice %15 {offsets = [0, 256], sizes = [8, 128], strides = [1, 1]} : vector<8x384xf32> to vector<8x128xf32>
    %35 = vector.extract_strided_slice %17 {offsets = [0, 256], sizes = [8, 128], strides = [1, 1]} : vector<8x384xf32> to vector<8x128xf32>
    %36 = vector.broadcast %6 : vector<1x128xf32> to vector<8x128xf32>
    %37 = arith.addf %35, %36 : vector<8x128xf32>
    %38 = arith.mulf %25, %37 : vector<8x128xf32>
    %39 = arith.addf %34, %38 : vector<8x128xf32>
    %40 = math.tanh %39 : vector<8x128xf32>
    %cst_13 = arith.constant 1.000000e+00 : f32
    %41 = vector.broadcast %cst_13 : f32 to vector<8x128xf32>
    %42 = arith.subf %41, %33 : vector<8x128xf32>
    %43 = arith.mulf %42, %40 : vector<8x128xf32>
    %44 = arith.mulf %33, %9 : vector<8x128xf32>
    %45 = arith.addf %43, %44 : vector<8x128xf32>
    %46 = arith.truncf %45 : vector<8x128xf32> to vector<8x128xbf16>
    %47 = arith.index_cast %11 : i32 to index
    %c0_14 = arith.constant 0 : index
    %c0_15 = arith.constant 0 : index
    %48 = vector.load %arg5[%47, %c0_14, %c0_15] : memref<8x8x128xbf16, #tpu.memory_space<vmem>>, vector<1x8x128xbf16>
    %49 = vector.shape_cast %48 : vector<1x8x128xbf16> to vector<8x128xbf16>
    %50 = vector.shape_cast %46 : vector<8x128xbf16> to vector<1x8x128xbf16>
    tpu.vector_store %arg5[%47, %c0_14, %c0_15], %50 {strides = array<i32>} : memref<8x8x128xbf16, #tpu.memory_space<vmem>>, vector<1x8x128xbf16>,
    %c5_i32 = arith.constant 5 : i32
    %51 = arith.muli %arg0, %c5_i32 : i32
    %c1_i32 = arith.constant 1 : i32
    %52 = arith.addi %c1_i32, %51 : i32
    %53 = arith.index_cast %52 : i32 to index
    %c0_16 = arith.constant 0 : index
    %c0_17 = arith.constant 0 : index
    %54 = vector.load %arg2[%53, %c0_16, %c0_17] : memref<8x8x384xbf16, #tpu.memory_space<vmem>>, vector<1x8x384xbf16>
    %55 = vector.shape_cast %54 : vector<1x8x384xbf16> to vector<8x384xbf16>
    %56 = arith.extf %55 : vector<8x384xbf16> to vector<8x384xf32>
    %57 = arith.truncf %45 : vector<8x128xf32> to vector<8x128xbf16>
    %cst_18 = arith.constant dense<0.000000e+00> : vector<8x384xf32>
    %58 = tpu.matmul %57, %4, %cst_18 {dimension_numbers = #tpu.dot_dimension_numbers<[1], [0], [0], [1], [0, 0, 1, 1], [], []>} : vector<8x128xbf16>, vector<128x384xbf16>, vector<8x384xf32> -> vector<8x384xf32>
    %59 = vector.extract_strided_slice %56 {offsets = [0, 0], sizes = [8, 128], strides = [1, 1]} : vector<8x384xf32> to vector<8x128xf32>
    %60 = vector.extract_strided_slice %58 {offsets = [0, 0], sizes = [8, 128], strides = [1, 1]} : vector<8x384xf32> to vector<8x128xf32>
    %61 = arith.addf %59, %60 : vector<8x128xf32>
    %62 = arith.negf %61 : vector<8x128xf32>
    %63 = math.exp %62 : vector<8x128xf32>
    %cst_19 = arith.constant 1.000000e+00 : f32
    %64 = vector.broadcast %cst_19 : f32 to vector<8x128xf32>
    %65 = arith.addf %64, %63 : vector<8x128xf32>
    %66 = arith.divf %64, %65 : vector<8x128xf32>
    %67 = vector.extract_strided_slice %56 {offsets = [0, 128], sizes = [8, 128], strides = [1, 1]} : vector<8x384xf32> to vector<8x128xf32>
    %68 = vector.extract_strided_slice %58 {offsets = [0, 128], sizes = [8, 128], strides = [1, 1]} : vector<8x384xf32> to vector<8x128xf32>
    %69 = arith.addf %67, %68 : vector<8x128xf32>
    %70 = arith.negf %69 : vector<8x128xf32>
    %71 = math.exp %70 : vector<8x128xf32>
    %cst_20 = arith.constant 1.000000e+00 : f32
    %72 = vector.broadcast %cst_20 : f32 to vector<8x128xf32>
    %73 = arith.addf %72, %71 : vector<8x128xf32>
    %74 = arith.divf %72, %73 : vector<8x128xf32>
    %75 = vector.extract_strided_slice %56 {offsets = [0, 256], sizes = [8, 128], strides = [1, 1]} : vector<8x384xf32> to vector<8x128xf32>
    %76 = vector.extract_strided_slice %58 {offsets = [0, 256], sizes = [8, 128], strides = [1, 1]} : vector<8x384xf32> to vector<8x128xf32>
    %77 = vector.broadcast %6 : vector<1x128xf32> to vector<8x128xf32>
    %78 = arith.addf %76, %77 : vector<8x128xf32>
    %79 = arith.mulf %66, %78 : vector<8x128xf32>
    %80 = arith.addf %75, %79 : vector<8x128xf32>
    %81 = math.tanh %80 : vector<8x128xf32>
    %cst_21 = arith.constant 1.000000e+00 : f32
    %82 = vector.broadcast %cst_21 : f32 to vector<8x128xf32>
    %83 = arith.subf %82, %74 : vector<8x128xf32>
    %84 = arith.mulf %83, %81 : vector<8x128xf32>
    %85 = arith.mulf %74, %45 : vector<8x128xf32>
    %86 = arith.addf %84, %85 : vector<8x128xf32>
    %87 = arith.truncf %86 : vector<8x128xf32> to vector<8x128xbf16>
    %88 = arith.index_cast %52 : i32 to index
    %c0_22 = arith.constant 0 : index
    %c0_23 = arith.constant 0 : index
    %89 = vector.load %arg5[%88, %c0_22, %c0_23] : memref<8x8x128xbf16, #tpu.memory_space<vmem>>, vector<1x8x128xbf16>
    %90 = vector.shape_cast %89 : vector<1x8x128xbf16> to vector<8x128xbf16>
    %91 = vector.shape_cast %87 : vector<8x128xbf16> to vector<1x8x128xbf16>
    tpu.vector_store %arg5[%88, %c0_22, %c0_23], %91 {strides = array<i32>} : memref<8x8x128xbf16, #tpu.memory_space<vmem>>, vector<1x8x128xbf16>,
    %c3_i32 = arith.constant 3 : i32
    %92 = arith.muli %arg0, %c3_i32 : i32
    %c2_i32 = arith.constant 2 : i32
    %93 = arith.addi %c2_i32, %92 : i32
    %94 = arith.index_cast %93 : i32 to index
    %c0_24 = arith.constant 0 : index
    %c0_25 = arith.constant 0 : index
    %95 = vector.load %arg2[%94, %c0_24, %c0_25] : memref<8x8x384xbf16, #tpu.memory_space<vmem>>, vector<1x8x384xbf16>
    %96 = vector.shape_cast %95 : vector<1x8x384xbf16> to vector<8x384xbf16>
    %97 = arith.extf %96 : vector<8x384xbf16> to vector<8x384xf32>
    %98 = arith.truncf %86 : vector<8x128xf32> to vector<8x128xbf16>
    %cst_26 = arith.constant dense<0.000000e+00> : vector<8x384xf32>
    %99 = tpu.matmul %98, %4, %cst_26 {dimension_numbers = #tpu.dot_dimension_numbers<[1], [0], [0], [1], [0, 0, 1, 1], [], []>} : vector<8x128xbf16>, vector<128x384xbf16>, vector<8x384xf32> -> vector<8x384xf32>
    %100 = vector.extract_strided_slice %97 {offsets = [0, 0], sizes = [8, 128], strides = [1, 1]} : vector<8x384xf32> to vector<8x128xf32>
    %101 = vector.extract_strided_slice %99 {offsets = [0, 0], sizes = [8, 128], strides = [1, 1]} : vector<8x384xf32> to vector<8x128xf32>
    %102 = arith.addf %100, %101 : vector<8x128xf32>
    %103 = arith.negf %102 : vector<8x128xf32>
    %104 = math.exp %103 : vector<8x128xf32>
    %cst_27 = arith.constant 1.000000e+00 : f32
    %105 = vector.broadcast %cst_27 : f32 to vector<8x128xf32>
    %106 = arith.addf %105, %104 : vector<8x128xf32>
    %107 = arith.divf %105, %106 : vector<8x128xf32>
    %108 = vector.extract_strided_slice %97 {offsets = [0, 128], sizes = [8, 128], strides = [1, 1]} : vector<8x384xf32> to vector<8x128xf32>
    %109 = vector.extract_strided_slice %99 {offsets = [0, 128], sizes = [8, 128], strides = [1, 1]} : vector<8x384xf32> to vector<8x128xf32>
    %110 = arith.addf %108, %109 : vector<8x128xf32>
    %111 = arith.negf %110 : vector<8x128xf32>
    %112 = math.exp %111 : vector<8x128xf32>
    %cst_28 = arith.constant 1.000000e+00 : f32
    %113 = vector.broadcast %cst_28 : f32 to vector<8x128xf32>
    %114 = arith.addf %113, %112 : vector<8x128xf32>
    %115 = arith.divf %113, %114 : vector<8x128xf32>
    %116 = vector.extract_strided_slice %97 {offsets = [0, 256], sizes = [8, 128], strides = [1, 1]} : vector<8x384xf32> to vector<8x128xf32>
    %117 = vector.extract_strided_slice %99 {offsets = [0, 256], sizes = [8, 128], strides = [1, 1]} : vector<8x384xf32> to vector<8x128xf32>
    %118 = vector.broadcast %6 : vector<1x128xf32> to vector<8x128xf32>
    %119 = arith.addf %117, %118 : vector<8x128xf32>
    %120 = arith.mulf %107, %119 : vector<8x128xf32>
    %121 = arith.addf %116, %120 : vector<8x128xf32>
    %122 = math.tanh %121 : vector<8x128xf32>
    %cst_29 = arith.constant 1.000000e+00 : f32
    %123 = vector.broadcast %cst_29 : f32 to vector<8x128xf32>
    %124 = arith.subf %123, %115 : vector<8x128xf32>
    %125 = arith.mulf %124, %122 : vector<8x128xf32>
    %126 = arith.mulf %115, %86 : vector<8x128xf32>
    %127 = arith.addf %125, %126 : vector<8x128xf32>
    %128 = arith.truncf %127 : vector<8x128xf32> to vector<8x128xbf16>
    %129 = arith.index_cast %93 : i32 to index
    %c0_30 = arith.constant 0 : index
    %c0_31 = arith.constant 0 : index
    %130 = vector.load %arg5[%129, %c0_30, %c0_31] : memref<8x8x128xbf16, #tpu.memory_space<vmem>>, vector<1x8x128xbf16>
    %131 = vector.shape_cast %130 : vector<1x8x128xbf16> to vector<8x128xbf16>
    %132 = vector.shape_cast %128 : vector<8x128xbf16> to vector<1x8x128xbf16>
    tpu.vector_store %arg5[%129, %c0_30, %c0_31], %132 {strides = array<i32>} : memref<8x8x128xbf16, #tpu.memory_space<vmem>>, vector<1x8x128xbf16>,
    %c1_i32_32 = arith.constant 1 : i32
    %133 = arith.muli %arg0, %c1_i32_32 : i32
    %c3_i32_33 = arith.constant 3 : i32
    %134 = arith.addi %c3_i32_33, %133 : i32
    %135 = arith.index_cast %134 : i32 to index
    %c0_34 = arith.constant 0 : index
    %c0_35 = arith.constant 0 : index
    %136 = vector.load %arg2[%135, %c0_34, %c0_35] : memref<8x8x384xbf16, #tpu.memory_space<vmem>>, vector<1x8x384xbf16>
    %137 = vector.shape_cast %136 : vector<1x8x384xbf16> to vector<8x384xbf16>
    %138 = arith.extf %137 : vector<8x384xbf16> to vector<8x384xf32>
    %139 = arith.truncf %127 : vector<8x128xf32> to vector<8x128xbf16>
    %cst_36 = arith.constant dense<0.000000e+00> : vector<8x384xf32>
    %140 = tpu.matmul %139, %4, %cst_36 {dimension_numbers = #tpu.dot_dimension_numbers<[1], [0], [0], [1], [0, 0, 1, 1], [], []>} : vector<8x128xbf16>, vector<128x384xbf16>, vector<8x384xf32> -> vector<8x384xf32>
    %141 = vector.extract_strided_slice %138 {offsets = [0, 0], sizes = [8, 128], strides = [1, 1]} : vector<8x384xf32> to vector<8x128xf32>
    %142 = vector.extract_strided_slice %140 {offsets = [0, 0], sizes = [8, 128], strides = [1, 1]} : vector<8x384xf32> to vector<8x128xf32>
    %143 = arith.addf %141, %142 : vector<8x128xf32>
    %144 = arith.negf %143 : vector<8x128xf32>
    %145 = math.exp %144 : vector<8x128xf32>
    %cst_37 = arith.constant 1.000000e+00 : f32
    %146 = vector.broadcast %cst_37 : f32 to vector<8x128xf32>
    %147 = arith.addf %146, %145 : vector<8x128xf32>
    %148 = arith.divf %146, %147 : vector<8x128xf32>
    %149 = vector.extract_strided_slice %138 {offsets = [0, 128], sizes = [8, 128], strides = [1, 1]} : vector<8x384xf32> to vector<8x128xf32>
    %150 = vector.extract_strided_slice %140 {offsets = [0, 128], sizes = [8, 128], strides = [1, 1]} : vector<8x384xf32> to vector<8x128xf32>
    %151 = arith.addf %149, %150 : vector<8x128xf32>
    %152 = arith.negf %151 : vector<8x128xf32>
    %153 = math.exp %152 : vector<8x128xf32>
    %cst_38 = arith.constant 1.000000e+00 : f32
    %154 = vector.broadcast %cst_38 : f32 to vector<8x128xf32>
    %155 = arith.addf %154, %153 : vector<8x128xf32>
    %156 = arith.divf %154, %155 : vector<8x128xf32>
    %157 = vector.extract_strided_slice %138 {offsets = [0, 256], sizes = [8, 128], strides = [1, 1]} : vector<8x384xf32> to vector<8x128xf32>
    %158 = vector.extract_strided_slice %140 {offsets = [0, 256], sizes = [8, 128], strides = [1, 1]} : vector<8x384xf32> to vector<8x128xf32>
    %159 = vector.broadcast %6 : vector<1x128xf32> to vector<8x128xf32>
    %160 = arith.addf %158, %159 : vector<8x128xf32>
    %161 = arith.mulf %148, %160 : vector<8x128xf32>
    %162 = arith.addf %157, %161 : vector<8x128xf32>
    %163 = math.tanh %162 : vector<8x128xf32>
    %cst_39 = arith.constant 1.000000e+00 : f32
    %164 = vector.broadcast %cst_39 : f32 to vector<8x128xf32>
    %165 = arith.subf %164, %156 : vector<8x128xf32>
    %166 = arith.mulf %165, %163 : vector<8x128xf32>
    %167 = arith.mulf %156, %127 : vector<8x128xf32>
    %168 = arith.addf %166, %167 : vector<8x128xf32>
    %169 = arith.truncf %168 : vector<8x128xf32> to vector<8x128xbf16>
    %170 = arith.index_cast %134 : i32 to index
    %c0_40 = arith.constant 0 : index
    %c0_41 = arith.constant 0 : index
    %171 = vector.load %arg5[%170, %c0_40, %c0_41] : memref<8x8x128xbf16, #tpu.memory_space<vmem>>, vector<1x8x128xbf16>
    %172 = vector.shape_cast %171 : vector<1x8x128xbf16> to vector<8x128xbf16>
    %173 = vector.shape_cast %169 : vector<8x128xbf16> to vector<1x8x128xbf16>
    tpu.vector_store %arg5[%170, %c0_40, %c0_41], %173 {strides = array<i32>} : memref<8x8x128xbf16, #tpu.memory_space<vmem>>, vector<1x8x128xbf16>,
    %c-1_i32 = arith.constant -1 : i32
    %174 = arith.muli %arg0, %c-1_i32 : i32
    %c4_i32 = arith.constant 4 : i32
    %175 = arith.addi %c4_i32, %174 : i32
    %176 = arith.index_cast %175 : i32 to index
    %c0_42 = arith.constant 0 : index
    %c0_43 = arith.constant 0 : index
    %177 = vector.load %arg2[%176, %c0_42, %c0_43] : memref<8x8x384xbf16, #tpu.memory_space<vmem>>, vector<1x8x384xbf16>
    %178 = vector.shape_cast %177 : vector<1x8x384xbf16> to vector<8x384xbf16>
    %179 = arith.extf %178 : vector<8x384xbf16> to vector<8x384xf32>
    %180 = arith.truncf %168 : vector<8x128xf32> to vector<8x128xbf16>
    %cst_44 = arith.constant dense<0.000000e+00> : vector<8x384xf32>
    %181 = tpu.matmul %180, %4, %cst_44 {dimension_numbers = #tpu.dot_dimension_numbers<[1], [0], [0], [1], [0, 0, 1, 1], [], []>} : vector<8x128xbf16>, vector<128x384xbf16>, vector<8x384xf32> -> vector<8x384xf32>
    %182 = vector.extract_strided_slice %179 {offsets = [0, 0], sizes = [8, 128], strides = [1, 1]} : vector<8x384xf32> to vector<8x128xf32>
    %183 = vector.extract_strided_slice %181 {offsets = [0, 0], sizes = [8, 128], strides = [1, 1]} : vector<8x384xf32> to vector<8x128xf32>
    %184 = arith.addf %182, %183 : vector<8x128xf32>
    %185 = arith.negf %184 : vector<8x128xf32>
    %186 = math.exp %185 : vector<8x128xf32>
    %cst_45 = arith.constant 1.000000e+00 : f32
    %187 = vector.broadcast %cst_45 : f32 to vector<8x128xf32>
    %188 = arith.addf %187, %186 : vector<8x128xf32>
    %189 = arith.divf %187, %188 : vector<8x128xf32>
    %190 = vector.extract_strided_slice %179 {offsets = [0, 128], sizes = [8, 128], strides = [1, 1]} : vector<8x384xf32> to vector<8x128xf32>
    %191 = vector.extract_strided_slice %181 {offsets = [0, 128], sizes = [8, 128], strides = [1, 1]} : vector<8x384xf32> to vector<8x128xf32>
    %192 = arith.addf %190, %191 : vector<8x128xf32>
    %193 = arith.negf %192 : vector<8x128xf32>
    %194 = math.exp %193 : vector<8x128xf32>
    %cst_46 = arith.constant 1.000000e+00 : f32
    %195 = vector.broadcast %cst_46 : f32 to vector<8x128xf32>
    %196 = arith.addf %195, %194 : vector<8x128xf32>
    %197 = arith.divf %195, %196 : vector<8x128xf32>
    %198 = vector.extract_strided_slice %179 {offsets = [0, 256], sizes = [8, 128], strides = [1, 1]} : vector<8x384xf32> to vector<8x128xf32>
    %199 = vector.extract_strided_slice %181 {offsets = [0, 256], sizes = [8, 128], strides = [1, 1]} : vector<8x384xf32> to vector<8x128xf32>
    %200 = vector.broadcast %6 : vector<1x128xf32> to vector<8x128xf32>
    %201 = arith.addf %199, %200 : vector<8x128xf32>
    %202 = arith.mulf %189, %201 : vector<8x128xf32>
    %203 = arith.addf %198, %202 : vector<8x128xf32>
    %204 = math.tanh %203 : vector<8x128xf32>
    %cst_47 = arith.constant 1.000000e+00 : f32
    %205 = vector.broadcast %cst_47 : f32 to vector<8x128xf32>
    %206 = arith.subf %205, %197 : vector<8x128xf32>
    %207 = arith.mulf %206, %204 : vector<8x128xf32>
    %208 = arith.mulf %197, %168 : vector<8x128xf32>
    %209 = arith.addf %207, %208 : vector<8x128xf32>
    %210 = arith.truncf %209 : vector<8x128xf32> to vector<8x128xbf16>
    %211 = arith.index_cast %175 : i32 to index
    %c0_48 = arith.constant 0 : index
    %c0_49 = arith.constant 0 : index
    %212 = vector.load %arg5[%211, %c0_48, %c0_49] : memref<8x8x128xbf16, #tpu.memory_space<vmem>>, vector<1x8x128xbf16>
    %213 = vector.shape_cast %212 : vector<1x8x128xbf16> to vector<8x128xbf16>
    %214 = vector.shape_cast %210 : vector<8x128xbf16> to vector<1x8x128xbf16>
    tpu.vector_store %arg5[%211, %c0_48, %c0_49], %214 {strides = array<i32>} : memref<8x8x128xbf16, #tpu.memory_space<vmem>>, vector<1x8x128xbf16>,
    %c-3_i32 = arith.constant -3 : i32
    %215 = arith.muli %arg0, %c-3_i32 : i32
    %c5_i32_50 = arith.constant 5 : i32
    %216 = arith.addi %c5_i32_50, %215 : i32
    %217 = arith.index_cast %216 : i32 to index
    %c0_51 = arith.constant 0 : index
    %c0_52 = arith.constant 0 : index
    %218 = vector.load %arg2[%217, %c0_51, %c0_52] : memref<8x8x384xbf16, #tpu.memory_space<vmem>>, vector<1x8x384xbf16>
    %219 = vector.shape_cast %218 : vector<1x8x384xbf16> to vector<8x384xbf16>
    %220 = arith.extf %219 : vector<8x384xbf16> to vector<8x384xf32>
    %221 = arith.truncf %209 : vector<8x128xf32> to vector<8x128xbf16>
    %cst_53 = arith.constant dense<0.000000e+00> : vector<8x384xf32>
    %222 = tpu.matmul %221, %4, %cst_53 {dimension_numbers = #tpu.dot_dimension_numbers<[1], [0], [0], [1], [0, 0, 1, 1], [], []>} : vector<8x128xbf16>, vector<128x384xbf16>, vector<8x384xf32> -> vector<8x384xf32>
    %223 = vector.extract_strided_slice %220 {offsets = [0, 0], sizes = [8, 128], strides = [1, 1]} : vector<8x384xf32> to vector<8x128xf32>
    %224 = vector.extract_strided_slice %222 {offsets = [0, 0], sizes = [8, 128], strides = [1, 1]} : vector<8x384xf32> to vector<8x128xf32>
    %225 = arith.addf %223, %224 : vector<8x128xf32>
    %226 = arith.negf %225 : vector<8x128xf32>
    %227 = math.exp %226 : vector<8x128xf32>
    %cst_54 = arith.constant 1.000000e+00 : f32
    %228 = vector.broadcast %cst_54 : f32 to vector<8x128xf32>
    %229 = arith.addf %228, %227 : vector<8x128xf32>
    %230 = arith.divf %228, %229 : vector<8x128xf32>
    %231 = vector.extract_strided_slice %220 {offsets = [0, 128], sizes = [8, 128], strides = [1, 1]} : vector<8x384xf32> to vector<8x128xf32>
    %232 = vector.extract_strided_slice %222 {offsets = [0, 128], sizes = [8, 128], strides = [1, 1]} : vector<8x384xf32> to vector<8x128xf32>
    %233 = arith.addf %231, %232 : vector<8x128xf32>
    %234 = arith.negf %233 : vector<8x128xf32>
    %235 = math.exp %234 : vector<8x128xf32>
    %cst_55 = arith.constant 1.000000e+00 : f32
    %236 = vector.broadcast %cst_55 : f32 to vector<8x128xf32>
    %237 = arith.addf %236, %235 : vector<8x128xf32>
    %238 = arith.divf %236, %237 : vector<8x128xf32>
    %239 = vector.extract_strided_slice %220 {offsets = [0, 256], sizes = [8, 128], strides = [1, 1]} : vector<8x384xf32> to vector<8x128xf32>
    %240 = vector.extract_strided_slice %222 {offsets = [0, 256], sizes = [8, 128], strides = [1, 1]} : vector<8x384xf32> to vector<8x128xf32>
    %241 = vector.broadcast %6 : vector<1x128xf32> to vector<8x128xf32>
    %242 = arith.addf %240, %241 : vector<8x128xf32>
    %243 = arith.mulf %230, %242 : vector<8x128xf32>
    %244 = arith.addf %239, %243 : vector<8x128xf32>
    %245 = math.tanh %244 : vector<8x128xf32>
    %cst_56 = arith.constant 1.000000e+00 : f32
    %246 = vector.broadcast %cst_56 : f32 to vector<8x128xf32>
    %247 = arith.subf %246, %238 : vector<8x128xf32>
    %248 = arith.mulf %247, %245 : vector<8x128xf32>
    %249 = arith.mulf %238, %209 : vector<8x128xf32>
    %250 = arith.addf %248, %249 : vector<8x128xf32>
    %251 = arith.truncf %250 : vector<8x128xf32> to vector<8x128xbf16>
    %252 = arith.index_cast %216 : i32 to index
    %c0_57 = arith.constant 0 : index
    %c0_58 = arith.constant 0 : index
    %253 = vector.load %arg5[%252, %c0_57, %c0_58] : memref<8x8x128xbf16, #tpu.memory_space<vmem>>, vector<1x8x128xbf16>
    %254 = vector.shape_cast %253 : vector<1x8x128xbf16> to vector<8x128xbf16>
    %255 = vector.shape_cast %251 : vector<8x128xbf16> to vector<1x8x128xbf16>
    tpu.vector_store %arg5[%252, %c0_57, %c0_58], %255 {strides = array<i32>} : memref<8x8x128xbf16, #tpu.memory_space<vmem>>, vector<1x8x128xbf16>,
    %c-5_i32 = arith.constant -5 : i32
    %256 = arith.muli %arg0, %c-5_i32 : i32
    %c6_i32 = arith.constant 6 : i32
    %257 = arith.addi %c6_i32, %256 : i32
    %258 = arith.index_cast %257 : i32 to index
    %c0_59 = arith.constant 0 : index
    %c0_60 = arith.constant 0 : index
    %259 = vector.load %arg2[%258, %c0_59, %c0_60] : memref<8x8x384xbf16, #tpu.memory_space<vmem>>, vector<1x8x384xbf16>
    %260 = vector.shape_cast %259 : vector<1x8x384xbf16> to vector<8x384xbf16>
    %261 = arith.extf %260 : vector<8x384xbf16> to vector<8x384xf32>
    %262 = arith.truncf %250 : vector<8x128xf32> to vector<8x128xbf16>
    %cst_61 = arith.constant dense<0.000000e+00> : vector<8x384xf32>
    %263 = tpu.matmul %262, %4, %cst_61 {dimension_numbers = #tpu.dot_dimension_numbers<[1], [0], [0], [1], [0, 0, 1, 1], [], []>} : vector<8x128xbf16>, vector<128x384xbf16>, vector<8x384xf32> -> vector<8x384xf32>
    %264 = vector.extract_strided_slice %261 {offsets = [0, 0], sizes = [8, 128], strides = [1, 1]} : vector<8x384xf32> to vector<8x128xf32>
    %265 = vector.extract_strided_slice %263 {offsets = [0, 0], sizes = [8, 128], strides = [1, 1]} : vector<8x384xf32> to vector<8x128xf32>
    %266 = arith.addf %264, %265 : vector<8x128xf32>
    %267 = arith.negf %266 : vector<8x128xf32>
    %268 = math.exp %267 : vector<8x128xf32>
    %cst_62 = arith.constant 1.000000e+00 : f32
    %269 = vector.broadcast %cst_62 : f32 to vector<8x128xf32>
    %270 = arith.addf %269, %268 : vector<8x128xf32>
    %271 = arith.divf %269, %270 : vector<8x128xf32>
    %272 = vector.extract_strided_slice %261 {offsets = [0, 128], sizes = [8, 128], strides = [1, 1]} : vector<8x384xf32> to vector<8x128xf32>
    %273 = vector.extract_strided_slice %263 {offsets = [0, 128], sizes = [8, 128], strides = [1, 1]} : vector<8x384xf32> to vector<8x128xf32>
    %274 = arith.addf %272, %273 : vector<8x128xf32>
    %275 = arith.negf %274 : vector<8x128xf32>
    %276 = math.exp %275 : vector<8x128xf32>
    %cst_63 = arith.constant 1.000000e+00 : f32
    %277 = vector.broadcast %cst_63 : f32 to vector<8x128xf32>
    %278 = arith.addf %277, %276 : vector<8x128xf32>
    %279 = arith.divf %277, %278 : vector<8x128xf32>
    %280 = vector.extract_strided_slice %261 {offsets = [0, 256], sizes = [8, 128], strides = [1, 1]} : vector<8x384xf32> to vector<8x128xf32>
    %281 = vector.extract_strided_slice %263 {offsets = [0, 256], sizes = [8, 128], strides = [1, 1]} : vector<8x384xf32> to vector<8x128xf32>
    %282 = vector.broadcast %6 : vector<1x128xf32> to vector<8x128xf32>
    %283 = arith.addf %281, %282 : vector<8x128xf32>
    %284 = arith.mulf %271, %283 : vector<8x128xf32>
    %285 = arith.addf %280, %284 : vector<8x128xf32>
    %286 = math.tanh %285 : vector<8x128xf32>
    %cst_64 = arith.constant 1.000000e+00 : f32
    %287 = vector.broadcast %cst_64 : f32 to vector<8x128xf32>
    %288 = arith.subf %287, %279 : vector<8x128xf32>
    %289 = arith.mulf %288, %286 : vector<8x128xf32>
    %290 = arith.mulf %279, %250 : vector<8x128xf32>
    %291 = arith.addf %289, %290 : vector<8x128xf32>
    %292 = arith.truncf %291 : vector<8x128xf32> to vector<8x128xbf16>
    %293 = arith.index_cast %257 : i32 to index
    %c0_65 = arith.constant 0 : index
    %c0_66 = arith.constant 0 : index
    %294 = vector.load %arg5[%293, %c0_65, %c0_66] : memref<8x8x128xbf16, #tpu.memory_space<vmem>>, vector<1x8x128xbf16>
    %295 = vector.shape_cast %294 : vector<1x8x128xbf16> to vector<8x128xbf16>
    %296 = vector.shape_cast %292 : vector<8x128xbf16> to vector<1x8x128xbf16>
    tpu.vector_store %arg5[%293, %c0_65, %c0_66], %296 {strides = array<i32>} : memref<8x8x128xbf16, #tpu.memory_space<vmem>>, vector<1x8x128xbf16>,
    %c-7_i32 = arith.constant -7 : i32
    %297 = arith.muli %arg0, %c-7_i32 : i32
    %c7_i32_67 = arith.constant 7 : i32
    %298 = arith.addi %c7_i32_67, %297 : i32
    %299 = arith.index_cast %298 : i32 to index
    %c0_68 = arith.constant 0 : index
    %c0_69 = arith.constant 0 : index
    %300 = vector.load %arg2[%299, %c0_68, %c0_69] : memref<8x8x384xbf16, #tpu.memory_space<vmem>>, vector<1x8x384xbf16>
    %301 = vector.shape_cast %300 : vector<1x8x384xbf16> to vector<8x384xbf16>
    %302 = arith.extf %301 : vector<8x384xbf16> to vector<8x384xf32>
    %303 = arith.truncf %291 : vector<8x128xf32> to vector<8x128xbf16>
    %cst_70 = arith.constant dense<0.000000e+00> : vector<8x384xf32>
    %304 = tpu.matmul %303, %4, %cst_70 {dimension_numbers = #tpu.dot_dimension_numbers<[1], [0], [0], [1], [0, 0, 1, 1], [], []>} : vector<8x128xbf16>, vector<128x384xbf16>, vector<8x384xf32> -> vector<8x384xf32>
    %305 = vector.extract_strided_slice %302 {offsets = [0, 0], sizes = [8, 128], strides = [1, 1]} : vector<8x384xf32> to vector<8x128xf32>
    %306 = vector.extract_strided_slice %304 {offsets = [0, 0], sizes = [8, 128], strides = [1, 1]} : vector<8x384xf32> to vector<8x128xf32>
    %307 = arith.addf %305, %306 : vector<8x128xf32>
    %308 = arith.negf %307 : vector<8x128xf32>
    %309 = math.exp %308 : vector<8x128xf32>
    %cst_71 = arith.constant 1.000000e+00 : f32
    %310 = vector.broadcast %cst_71 : f32 to vector<8x128xf32>
    %311 = arith.addf %310, %309 : vector<8x128xf32>
    %312 = arith.divf %310, %311 : vector<8x128xf32>
    %313 = vector.extract_strided_slice %302 {offsets = [0, 128], sizes = [8, 128], strides = [1, 1]} : vector<8x384xf32> to vector<8x128xf32>
    %314 = vector.extract_strided_slice %304 {offsets = [0, 128], sizes = [8, 128], strides = [1, 1]} : vector<8x384xf32> to vector<8x128xf32>
    %315 = arith.addf %313, %314 : vector<8x128xf32>
    %316 = arith.negf %315 : vector<8x128xf32>
    %317 = math.exp %316 : vector<8x128xf32>
    %cst_72 = arith.constant 1.000000e+00 : f32
    %318 = vector.broadcast %cst_72 : f32 to vector<8x128xf32>
    %319 = arith.addf %318, %317 : vector<8x128xf32>
    %320 = arith.divf %318, %319 : vector<8x128xf32>
    %321 = vector.extract_strided_slice %302 {offsets = [0, 256], sizes = [8, 128], strides = [1, 1]} : vector<8x384xf32> to vector<8x128xf32>
    %322 = vector.extract_strided_slice %304 {offsets = [0, 256], sizes = [8, 128], strides = [1, 1]} : vector<8x384xf32> to vector<8x128xf32>
    %323 = vector.broadcast %6 : vector<1x128xf32> to vector<8x128xf32>
    %324 = arith.addf %322, %323 : vector<8x128xf32>
    %325 = arith.mulf %312, %324 : vector<8x128xf32>
    %326 = arith.addf %321, %325 : vector<8x128xf32>
    %327 = math.tanh %326 : vector<8x128xf32>
    %cst_73 = arith.constant 1.000000e+00 : f32
    %328 = vector.broadcast %cst_73 : f32 to vector<8x128xf32>
    %329 = arith.subf %328, %320 : vector<8x128xf32>
    %330 = arith.mulf %329, %327 : vector<8x128xf32>
    %331 = arith.mulf %320, %291 : vector<8x128xf32>
    %332 = arith.addf %330, %331 : vector<8x128xf32>
    %333 = arith.truncf %332 : vector<8x128xf32> to vector<8x128xbf16>
    %334 = arith.index_cast %298 : i32 to index
    %c0_74 = arith.constant 0 : index
    %c0_75 = arith.constant 0 : index
    %335 = vector.load %arg5[%334, %c0_74, %c0_75] : memref<8x8x128xbf16, #tpu.memory_space<vmem>>, vector<1x8x128xbf16>
    %336 = vector.shape_cast %335 : vector<1x8x128xbf16> to vector<8x128xbf16>
    %337 = vector.shape_cast %333 : vector<8x128xbf16> to vector<1x8x128xbf16>
    tpu.vector_store %arg5[%334, %c0_74, %c0_75], %337 {strides = array<i32>} : memref<8x8x128xbf16, #tpu.memory_space<vmem>>, vector<1x8x128xbf16>,
    %338 = arith.index_cast %arg0 : i32 to index
    %c0_76 = arith.constant 0 : index
    %c0_77 = arith.constant 0 : index
    %339 = vector.load %arg6[%338, %c0_76, %c0_77] : memref<2x8x128xf32, #tpu.memory_space<vmem>>, vector<1x8x128xf32>
    %340 = vector.shape_cast %339 : vector<1x8x128xf32> to vector<8x128xf32>
    %341 = vector.shape_cast %332 : vector<8x128xf32> to vector<1x8x128xf32>
    tpu.vector_store %arg6[%338, %c0_76, %c0_77], %341 {strides = array<i32>} : memref<2x8x128xf32, #tpu.memory_space<vmem>>, vector<1x8x128xf32>,
    return
  }
  func.func @transform_0(%arg0: i32, %arg1: i32) -> (i32, i32, i32) {
    %c2_i32 = arith.constant 2 : i32
    %0 = arith.muli %c2_i32, %arg1 : i32
    %c3_i32 = arith.constant 3 : i32
    %1 = arith.subi %c3_i32, %0 : i32
    %2 = arith.muli %arg0, %1 : i32
    %3 = arith.addi %arg1, %2 : i32
    %c0_i32 = arith.constant 0 : i32
    %c0_i32_0 = arith.constant 0 : i32
    return %3, %c0_i32, %arg0 : i32, i32, i32
  }
  func.func @transform_1(%arg0: i32, %arg1: i32) -> (i32, i32, i32) {
    %c0_i32 = arith.constant 0 : i32
    %c0_i32_0 = arith.constant 0 : i32
    %c0_i32_1 = arith.constant 0 : i32
    return %arg0, %c0_i32, %c0_i32_0 : i32, i32, i32
  }
  func.func @transform_2(%arg0: i32, %arg1: i32) -> (i32, i32, i32) {
    %c0_i32 = arith.constant 0 : i32
    %c0_i32_0 = arith.constant 0 : i32
    %c0_i32_1 = arith.constant 0 : i32
    return %arg0, %c0_i32, %c0_i32_0 : i32, i32, i32
  }
  func.func @transform_3(%arg0: i32, %arg1: i32) -> (i32, i32, i32) {
    %c2_i32 = arith.constant 2 : i32
    %0 = arith.muli %c2_i32, %arg1 : i32
    %c3_i32 = arith.constant 3 : i32
    %1 = arith.subi %c3_i32, %0 : i32
    %2 = arith.muli %arg0, %1 : i32
    %3 = arith.addi %arg1, %2 : i32
    %c0_i32 = arith.constant 0 : i32
    %c0_i32_0 = arith.constant 0 : i32
    return %3, %c0_i32, %arg0 : i32, i32, i32
  }
}

module attributes {stable_mosaic.version = 11 : i64} {
  func.func @_matmul_bias_kernel(%arg0: i32, %arg1: i32, %arg2: memref<16x8x256xbf16, #tpu.memory_space<vmem>>, %arg3: memref<256x128xbf16, #tpu.memory_space<vmem>>, %arg4: memref<1x128xf32, #tpu.memory_space<vmem>>, %arg5: memref<16x8x128xf32, #tpu.memory_space<vmem>>) attributes {dimension_semantics = [#tpu.dimension_semantics<parallel>, #tpu.dimension_semantics<parallel>], iteration_bounds = array<i64: 2, 1>, scalar_prefetch = 0 : i64, scratch_operands = 0 : i64, tpu.core_type = #tpu.core_type<tc>, window_params = [{transform_indices = @transform_0, window_bounds = array<i64: 16, 8, 256>}, {transform_indices = @transform_1, window_bounds = array<i64: 256, 128>}, {transform_indices = @transform_2, window_bounds = array<i64: 1, 128>}, {transform_indices = @transform_3, window_bounds = array<i64: 16, 8, 128>}]} {
    %c0 = arith.constant 0 : index
    %c0_0 = arith.constant 0 : index
    %c0_1 = arith.constant 0 : index
    %0 = vector.load %arg2[%c0, %c0_0, %c0_1] : memref<16x8x256xbf16, #tpu.memory_space<vmem>>, vector<16x8x256xbf16>
    %1 = vector.shape_cast %0 : vector<16x8x256xbf16> to vector<128x256xbf16>
    %c0_2 = arith.constant 0 : index
    %c0_3 = arith.constant 0 : index
    %2 = vector.load %arg3[%c0_2, %c0_3] : memref<256x128xbf16, #tpu.memory_space<vmem>>, vector<256x128xbf16>
    %cst = arith.constant dense<0.000000e+00> : vector<128x128xf32>
    %3 = tpu.matmul %1, %2, %cst {dimension_numbers = #tpu.dot_dimension_numbers<[1], [0], [0], [1], [0, 0, 1, 1], [], []>} : vector<128x256xbf16>, vector<256x128xbf16>, vector<128x128xf32> -> vector<128x128xf32>
    %c0_4 = arith.constant 0 : index
    %c0_5 = arith.constant 0 : index
    %4 = vector.load %arg4[%c0_4, %c0_5] : memref<1x128xf32, #tpu.memory_space<vmem>>, vector<1x128xf32>
    %5 = vector.broadcast %4 : vector<1x128xf32> to vector<128x128xf32>
    %6 = arith.addf %3, %5 : vector<128x128xf32>
    %7 = vector.shape_cast %6 : vector<128x128xf32> to vector<16x8x128xf32>
    %c0_6 = arith.constant 0 : index
    %c0_7 = arith.constant 0 : index
    %c0_8 = arith.constant 0 : index
    %8 = vector.load %arg5[%c0_6, %c0_7, %c0_8] : memref<16x8x128xf32, #tpu.memory_space<vmem>>, vector<16x8x128xf32>
    tpu.vector_store %arg5[%c0_6, %c0_7, %c0_8], %7 {strides = array<i32>} : memref<16x8x128xf32, #tpu.memory_space<vmem>>, vector<16x8x128xf32>,
    return
  }
  func.func @transform_0(%arg0: i32, %arg1: i32) -> (i32, i32, i32) {
    %c0_i32 = arith.constant 0 : i32
    %c0_i32_0 = arith.constant 0 : i32
    %c0_i32_1 = arith.constant 0 : i32
    return %arg0, %c0_i32, %c0_i32_0 : i32, i32, i32
  }
  func.func @transform_1(%arg0: i32, %arg1: i32) -> (i32, i32) {
    %c0_i32 = arith.constant 0 : i32
    %c0_i32_0 = arith.constant 0 : i32
    return %c0_i32, %arg1 : i32, i32
  }
  func.func @transform_2(%arg0: i32, %arg1: i32) -> (i32, i32) {
    %c0_i32 = arith.constant 0 : i32
    %c0_i32_0 = arith.constant 0 : i32
    return %c0_i32, %arg1 : i32, i32
  }
  func.func @transform_3(%arg0: i32, %arg1: i32) -> (i32, i32, i32) {
    %c0_i32 = arith.constant 0 : i32
    %c0_i32_0 = arith.constant 0 : i32
    return %arg0, %c0_i32, %arg1 : i32, i32, i32
  }
}

</mosaic_0001>

<bundles_post_ra>
// kernel: encoder_forward.7
= control target key start
LH: loop header
LB: loop body
LE: loop exit
PB: predicated region body
PF: predicated region fallthrough
CT: control target
= control target key end

     0   :  { %s1783_s12 = smov 0   ;;  %s1785_s13 = smov 0   ;;  %s2211_s0 = inlined_call_operand.vmem [shape: f32[32,8,128], index: 0, kind: input, shape index: {}]   ;;  %s2212_s1 = inlined_call_operand.vmem [shape: bf16[128,768], index: 1, kind: input, shape index: {}]   ;;  %s2213_s2 = inlined_call_operand.vmem [shape: f32[1,768], index: 2, kind: input, shape index: {}]   ;;  %s2214_s3 = inlined_call_operand.vmem [shape: bf16[32,8,768], index: 3, kind: output, shape index: {}]  }
   0x1   :  { %s1787_s14 = smov 0  }
   0x2 LB: > { %s25_s15 = sadd.s32 1, %s1756_s13  ;;  %p1473_p0 = scmp.ge.s32.totalorder %s1760_s14, 1  ;;  %s1760_s14 = sphi %s1787_s14, %s13_s14   ;;  %s1756_s13 = sphi %s1785_s13, %s2216_s13   ;;  %s1752_s12 = sphi %s1783_s12, %s2215_s12  }
   0x3   : > { %p27_p1 = scmp.ge.s32.totalorder %s25_s15, 2  ;;  %p173_p2 = scmp.lt.s32.totalorder %s1760_s14, 3 }
   0x5   : > { %s2218_s15 = smov (%p27_p1, %s25_s15), 0  ;;  %p174_p3 = pnand %p1473_p0, %p173_p2 }
   0x6   : > { %s1474_s30 = sshll.u32 (!%p174_p3), %s1752_s12, 4 }
   0x7   : > { %177 = sbr.rel (%p174_p3) target bundleno = 338 (0x152), region = 32  ;;  %p212_p4 = scmp.lt.s32.totalorder (!%p174_p3), %s1474_s30, 31 }
   0xc   : > { %v1666_v0 = vld [vmem:[%s2212_s1 + $0x154] ss:$24 sps:$4 sm:$0xff]   ;;  %v1668_v1 = vld [vmem:[%s2212_s1 + $0x150] ss:$24 sps:$4 sm:$0xff]   ;;  %v1762_v2 = vmov 0   ;;  %s2220_s30 = smov (!%p212_p4, %s1474_s30), 31 }
   0xd   : > { %617 = vmatprep.mubr.bf16.mxu0 %v1762_v2  ;;  %657 = vmatprep.mubr.bf16.mxu1 %v1762_v2  ;;  %v1669_v3 = vld [vmem:[%s2212_s1 + $0x124] ss:$24 sps:$4 sm:$0xff]   ;;  %v1671_v4 = vld [vmem:[%s2212_s1 + $0x120] ss:$24 sps:$4 sm:$0xff]   ;;  %v1672_v5 = vld [vmem:[%s2212_s1 + $0xf4] ss:$24 sps:$4 sm:$0xff]  }
   0xe   : > { %585 = vmatprep.subr.bf16.mxu0 %v1666_v0  ;;  %1624 = vmatprep.subr.bf16.mxu1 %v1666_v0  ;;  %v1674_v6 = vld [vmem:[%s2212_s1 + $0xf0] ss:$24 sps:$4 sm:$0xff]   ;;  %v1675_v7 = vld [vmem:[%s2212_s1 + $0xc4] ss:$24 sps:$4 sm:$0xff]   ;;  %v1677_v8 = vld [vmem:[%s2212_s1 + $0xc0] ss:$24 sps:$4 sm:$0xff]  }
   0xf   : > { %586 = vmatpush1.bf16.msra.mxu0 %v1668_v1  ;;  %1632 = vmatpush1.bf16.msra.mxu1 %v1668_v1  ;;  %v1678_v9 = vld [vmem:[%s2212_s1 + $0x94] ss:$24 sps:$4 sm:$0xff]   ;;  %v1680_v10 = vld [vmem:[%s2212_s1 + $0x90] ss:$24 sps:$4 sm:$0xff]   ;;  %v1681_v11 = vld [vmem:[%s2212_s1 + $0x64] ss:$24 sps:$4 sm:$0xff]  }
  0x10   : > { %587 = vmatprep.subr.bf16.mxu0 %v1669_v3  ;;  %1625 = vmatprep.subr.bf16.mxu1 %v1669_v3  ;;  %v1683_v12 = vld [vmem:[%s2212_s1 + $0x60] ss:$24 sps:$4 sm:$0xff]   ;;  %s1475_s17 = sshll.u32 %s2220_s30, 3  ;;  %v1684_v13 = vld [vmem:[%s2212_s1 + $0x34] ss:$24 sps:$4 sm:$0xff]   ;;  %s1640_s28 = smul.u32 24, %s2220_s30 }
  0x11   : > { %s1851_s22 = scalar_lea.vmem %s2211_s0, %s1475_s17  ;;  %v1686_v14 = vld [vmem:[%s2212_s1 + $0x30] ss:$24 sps:$4 sm:$0xff]   ;;  %v1687_v15 = vld [vmem:[%s2212_s1 + $0x4] ss:$24 sps:$4 sm:$0xff]   ;;  %v1689_v16 = vld [vmem:[%s2212_s1] ss:$24 sps:$4 sm:$0xff]  }
  0x12   : > { %v241_v17 = vld [vmem:[%s1851_s22] sm:$0xff]  ;;  %v242_v18 = vld [vmem:[%s1851_s22 + $0x8] sm:$0xff]  ;;  %v1692_v21 = vld [vmem:[%s2212_s1 + $0x15c] ss:$24 sps:$4 sm:$0xff]   ;;  %s2044_s5 = scalar_lea.vmem %s2214_s3, %s1640_s28 }
  0x13   : > { %588 = vmatpush1.bf16.msra.mxu0 %v1671_v4  ;;  %1633 = vmatpush1.bf16.msra.mxu1 %v1671_v4  ;;  %v249_v19 = vld [vmem:[%s1851_s22 + $0x40] sm:$0xff]  ;;  %v250_v20 = vld [vmem:[%s1851_s22 + $0x48] sm:$0xff]  ;;  %v1872_v23 = vpack.c.bf16 %v242_v18, %v241_v17  ;;  %v1690_v25 = vld [vmem:[%s2212_s1 + $0x158] ss:$24 sps:$4 sm:$0xff]  }
  0x14   : > { %589 = vmatprep.subr.bf16.mxu0 %v1672_v5  ;;  %1626 = vmatprep.subr.bf16.mxu1 %v1672_v5  ;;  %v1695_v22 = vld [vmem:[%s2212_s1 + $0x164] ss:$24 sps:$4 sm:$0xff]   ;;  %v1874_v24 = vpack.c.bf16 %v250_v20, %v249_v19  ;;  %v1693_v26 = vld [vmem:[%s2212_s1 + $0x160] ss:$24 sps:$4 sm:$0xff]   ;;  %v1701_v28 = vld [vmem:[%s2212_s1 + $0x134] ss:$24 sps:$4 sm:$0xff]  }
  0x15   : > { %v1698_v27 = vld [vmem:[%s2212_s1 + $0x12c] ss:$24 sps:$4 sm:$0xff]   ;;  %v1696_v29 = vld [vmem:[%s2212_s1 + $0x128] ss:$24 sps:$4 sm:$0xff]   ;;  %v243_v31 = vld [vmem:[%s1851_s22 + $0x10] sm:$0xff] }
  0x16   : > { %v1699_v30 = vld [vmem:[%s2212_s1 + $0x130] ss:$24 sps:$4 sm:$0xff]   ;;  %v244_v32 = vld [vmem:[%s1851_s22 + $0x18] sm:$0xff]  ;;  %v1710_v41 = vld [vmem:[%s2212_s1 + $0xcc] ss:$24 sps:$4 sm:$0xff]  }
  0x17   : > { %590 = vmatpush1.bf16.msra.mxu0 %v1674_v6  ;;  %1634 = vmatpush1.bf16.msra.mxu1 %v1674_v6  ;;  %v251_v33 = vld [vmem:[%s1851_s22 + $0x50] sm:$0xff]  ;;  %v252_v34 = vld [vmem:[%s1851_s22 + $0x58] sm:$0xff]  ;;  %v1908_v37 = vpack.c.bf16 %v244_v32, %v243_v31  ;;  %v1708_v43 = vld [vmem:[%s2212_s1 + $0xc8] ss:$24 sps:$4 sm:$0xff]  }
  0x18   : > { %591 = vmatprep.subr.bf16.mxu0 %v1675_v7  ;;  %1627 = vmatprep.subr.bf16.mxu1 %v1675_v7  ;;  %v1704_v35 = vld [vmem:[%s2212_s1 + $0xfc] ss:$24 sps:$4 sm:$0xff]   ;;  %v1910_v38 = vpack.c.bf16 %v252_v34, %v251_v33  ;;  %v1702_v39 = vld [vmem:[%s2212_s1 + $0xf8] ss:$24 sps:$4 sm:$0xff]   ;;  %v245_v45 = vld [vmem:[%s1851_s22 + $0x20] sm:$0xff] }
  0x19   : > { %v1707_v36 = vld [vmem:[%s2212_s1 + $0x104] ss:$24 sps:$4 sm:$0xff]   ;;  %v1705_v40 = vld [vmem:[%s2212_s1 + $0x100] ss:$24 sps:$4 sm:$0xff]   ;;  %v1713_v42 = vld [vmem:[%s2212_s1 + $0xd4] ss:$24 sps:$4 sm:$0xff]  }
  0x1a   : > { %v1711_v44 = vld [vmem:[%s2212_s1 + $0xd0] ss:$24 sps:$4 sm:$0xff]   ;;  %v253_v47 = vld [vmem:[%s1851_s22 + $0x60] sm:$0xff]  ;;  %v1716_v49 = vld [vmem:[%s2212_s1 + $0x9c] ss:$24 sps:$4 sm:$0xff]  }
  0x1b   : > { %592 = vmatpush1.bf16.msra.mxu0 %v1677_v8  ;;  %1635 = vmatpush1.bf16.msra.mxu1 %v1677_v8  ;;  %v246_v46 = vld [vmem:[%s1851_s22 + $0x28] sm:$0xff]  ;;  %v1719_v50 = vld [vmem:[%s2212_s1 + $0xa4] ss:$24 sps:$4 sm:$0xff]   ;;  %v1714_v53 = vld [vmem:[%s2212_s1 + $0x98] ss:$24 sps:$4 sm:$0xff]  }
  0x1c   : > { %593 = vmatprep.subr.bf16.mxu0 %v1678_v9  ;;  %1628 = vmatprep.subr.bf16.mxu1 %v1678_v9  ;;  %v254_v48 = vld [vmem:[%s1851_s22 + $0x68] sm:$0xff]  ;;  %v259_v51 = vpack.c.bf16 %v246_v46, %v245_v45  ;;  %v1717_v54 = vld [vmem:[%s2212_s1 + $0xa0] ss:$24 sps:$4 sm:$0xff]   ;;  %v247_v59 = vld [vmem:[%s1851_s22 + $0x30] sm:$0xff] }
  0x1d   : > { %v1944_v52 = vpack.c.bf16 %v254_v48, %v253_v47  ;;  %v1722_v55 = vld [vmem:[%s2212_s1 + $0x6c] ss:$24 sps:$4 sm:$0xff]   ;;  %v1720_v57 = vld [vmem:[%s2212_s1 + $0x68] ss:$24 sps:$4 sm:$0xff]   ;;  %v248_v60 = vld [vmem:[%s1851_s22 + $0x38] sm:$0xff] }
  0x1e   : > { %v1725_v56 = vld [vmem:[%s2212_s1 + $0x74] ss:$24 sps:$4 sm:$0xff]   ;;  %v1723_v58 = vld [vmem:[%s2212_s1 + $0x70] ss:$24 sps:$4 sm:$0xff]   ;;  %v256_v62 = vld [vmem:[%s1851_s22 + $0x78] sm:$0xff]  ;;  %v260_v1 = vpack.c.bf16 %v248_v60, %v247_v59 }
  0x1f   : > { %594 = vmatpush1.bf16.msra.mxu0 %v1680_v10  ;;  %1636 = vmatpush1.bf16.msra.mxu1 %v1680_v10  ;;  %v255_v61 = vld [vmem:[%s1851_s22 + $0x70] sm:$0xff]  ;;  %v1731_v0 = vld [vmem:[%s2212_s1 + $0x44] ss:$24 sps:$4 sm:$0xff]   ;;  %v1729_v5 = vld [vmem:[%s2212_s1 + $0x40] ss:$24 sps:$4 sm:$0xff]   ;;  %v315_v10 = vlaneseq }
  0x20   : > { %595 = vmatprep.subr.bf16.mxu0 %v1681_v11  ;;  %1629 = vmatprep.subr.bf16.mxu1 %v1681_v11  ;;  %v1728_v63 = vld [vmem:[%s2212_s1 + $0x3c] ss:$24 sps:$4 sm:$0xff]   ;;  %v264_v3 = vpack.c.bf16 %v256_v62, %v255_v61  ;;  %v1726_v4 = vld [vmem:[%s2212_s1 + $0x38] ss:$24 sps:$4 sm:$0xff]   ;;  %v1734_v6 = vld [vmem:[%s2212_s1 + $0xc] ss:$24 sps:$4 sm:$0xff]  }
  0x21   : > { %v1737_v7 = vld [vmem:[%s2212_s1 + $0x14] ss:$24 sps:$4 sm:$0xff]   ;;  %v1732_v8 = vld [vmem:[%s2212_s1 + $0x8] ss:$24 sps:$4 sm:$0xff]   ;;  %v2021_v11 = vshrl.u32 %v315_v10, 7 }
  0x22   : > { %v1735_v9 = vld [vmem:[%s2212_s1 + $0x10] ss:$24 sps:$4 sm:$0xff]  }
  0x23   : > { %596 = vmatpush1.bf16.msra.mxu0 %v1683_v12  ;;  %1637 = vmatpush1.bf16.msra.mxu1 %v1683_v12  ;;  %v317_v12 = vsub.s32 0, %v2021_v11 }
  0x24   : > { %597 = vmatprep.subr.bf16.mxu0 %v1684_v13  ;;  %1630 = vmatprep.subr.bf16.mxu1 %v1684_v13  ;;  %v321_v13 = vsub.s32 1, %v2021_v11 }
  0x27   : > { %598 = vmatpush1.bf16.msra.mxu0 %v1686_v14  ;;  %1638 = vmatpush1.bf16.msra.mxu1 %v1686_v14  ;;  %v2028_v14 = vld [vmem:[%s2213_s2] sm:$0x3f] }
  0x28   : > { %599 = vmatprep.subr.bf16.mxu0 %v1687_v15  ;;  %1631 = vmatprep.subr.bf16.mxu1 %v1687_v15  ;;  %v2031_v15 = vrot.slane %v2028_v14, %v317_v12 }
  0x2b   : > { %600 = vmatpush1.bf16.msra.mxu0 %v1689_v16  ;;  %1639 = vmatpush1.bf16.msra.mxu1 %v1689_v16  ;;  %v2034_v16 = vrot.slane %v2028_v14, %v321_v13 }
  0x2c   : > { %698 = vmatprep.subr.bf16.mxu1 %v1692_v21  ;;  %811 = vmatprep.subr.bf16.mxu0 %v1695_v22 }
  0x2e   : > { %618 = vmatmul.mubr.bf16.vlgmr.msra.gmra.mxu0 %v1872_v23  ;;  %658 = vmatmul.mubr.bf16.vlgmr.msra.gmra.mxu1 %v1874_v24 }
  0x2f   : > { %699 = vmatpush1.bf16.msra.mxu1 %v1690_v25  ;;  %812 = vmatpush1.bf16.msra.mxu0 %v1693_v26 }
  0x30   : > { %700 = vmatprep.subr.bf16.mxu1 %v1698_v27  ;;  %813 = vmatprep.subr.bf16.mxu0 %v1701_v28 }
  0x31   : > { %627 = vmatprep.mubr.bf16.mxu0 %v1762_v2  ;;  %667 = vmatprep.mubr.bf16.mxu1 %v1762_v2 }
  0x33   : > { %701 = vmatpush1.bf16.msra.mxu1 %v1696_v29  ;;  %814 = vmatpush1.bf16.msra.mxu0 %v1699_v30 }
  0x34   : > { %702 = vmatprep.subr.bf16.mxu1 %v1704_v35  ;;  %815 = vmatprep.subr.bf16.mxu0 %v1707_v36 }
  0x36   : > { %628 = vmatmul.mubr.bf16.gmra.mxu0 %v1908_v37  ;;  %668 = vmatmul.mubr.bf16.gmra.mxu1 %v1910_v38 }
  0x37   : > { %703 = vmatpush1.bf16.msra.mxu1 %v1702_v39  ;;  %816 = vmatpush1.bf16.msra.mxu0 %v1705_v40 }
  0x38   : > { %704 = vmatprep.subr.bf16.mxu1 %v1710_v41  ;;  %817 = vmatprep.subr.bf16.mxu0 %v1713_v42 }
  0x39   : > { %637 = vmatprep.mubr.bf16.mxu0 %v1762_v2  ;;  %677 = vmatprep.mubr.bf16.mxu1 %v1762_v2 }
  0x3b   : > { %705 = vmatpush1.bf16.msra.mxu1 %v1708_v43  ;;  %818 = vmatpush1.bf16.msra.mxu0 %v1711_v44 }
  0x3c   : > { %706 = vmatprep.subr.bf16.mxu1 %v1716_v49  ;;  %819 = vmatprep.subr.bf16.mxu0 %v1719_v50 }
  0x3e   : > { %638 = vmatmul.mubr.bf16.gmra.mxu0 %v259_v51  ;;  %678 = vmatmul.mubr.bf16.gmra.mxu1 %v1944_v52 }
  0x3f   : > { %707 = vmatpush1.bf16.msra.mxu1 %v1714_v53  ;;  %820 = vmatpush1.bf16.msra.mxu0 %v1717_v54 }
  0x40   : > { %708 = vmatprep.subr.bf16.mxu1 %v1722_v55  ;;  %821 = vmatprep.subr.bf16.mxu0 %v1725_v56 }
  0x41   : > { %647 = vmatprep.mubr.bf16.mxu0 %v1762_v2  ;;  %687 = vmatprep.mubr.bf16.mxu1 %v1762_v2 }
  0x43   : > { %709 = vmatpush1.bf16.msra.mxu1 %v1720_v57  ;;  %822 = vmatpush1.bf16.msra.mxu0 %v1723_v58 }
  0x44   : > { %710 = vmatprep.subr.bf16.mxu1 %v1728_v63  ;;  %823 = vmatprep.subr.bf16.mxu0 %v1731_v0 }
  0x46   : > { %648 = vmatmul.mubr.bf16.gmra.mxu0 %v260_v1  ;;  %688 = vmatmul.mubr.bf16.gmra.mxu1 %v264_v3 }
  0x47   : > { %711 = vmatpush1.bf16.msra.mxu1 %v1726_v4  ;;  %824 = vmatpush1.bf16.msra.mxu0 %v1729_v5 }
  0x48   : > { %712 = vmatprep.subr.bf16.mxu1 %v1734_v6  ;;  %825 = vmatprep.subr.bf16.mxu0 %v1737_v7 }
  0x49   : > { %730 = vmatprep.mubr.bf16.mxu1 %v1762_v2  ;;  %843 = vmatprep.mubr.bf16.mxu0 %v1762_v2 }
  0x4b   : > { %713 = vmatpush1.bf16.msra.mxu1 %v1732_v8  ;;  %826 = vmatpush1.bf16.msra.mxu0 %v1735_v9 }
  0x4e   : > { %731 = vmatmul.mubr.bf16.vlgmr.msra.gmra.mxu1 %v1872_v23  ;;  %844 = vmatmul.mubr.bf16.vlgmr.msra.gmra.mxu0 %v1872_v23 }
  0x4f   : > { %740 = vmatprep.mubr.bf16.mxu1 %v1762_v2  ;;  %853 = vmatprep.mubr.bf16.mxu0 %v1762_v2 }
  0x56   : > { %741 = vmatmul.mubr.bf16.gmra.mxu1 %v1908_v37  ;;  %854 = vmatmul.mubr.bf16.gmra.mxu0 %v1908_v37 }
  0x57   : > { %750 = vmatprep.mubr.bf16.mxu1 %v1762_v2  ;;  %863 = vmatprep.mubr.bf16.mxu0 %v1762_v2 }
  0x5e   : > { %751 = vmatmul.mubr.bf16.gmra.mxu1 %v259_v51  ;;  %864 = vmatmul.mubr.bf16.gmra.mxu0 %v259_v51 }
  0x5f   : > { %760 = vmatprep.mubr.bf16.mxu1 %v1762_v2  ;;  %873 = vmatprep.mubr.bf16.mxu0 %v1762_v2 }
  0x66   : > { %761 = vmatmul.mubr.bf16.gmra.mxu1 %v260_v1  ;;  %874 = vmatmul.mubr.bf16.gmra.mxu0 %v260_v1 }
  0x67   : > { %770 = vmatprep.mubr.bf16.mxu1 %v1762_v2  ;;  %883 = vmatprep.mubr.bf16.mxu0 %v1762_v2 }
  0x6e   : > { %771 = vmatmul.mubr.bf16.gmra.mxu1 %v1874_v24  ;;  %884 = vmatmul.mubr.bf16.gmra.mxu0 %v1874_v24 }
  0x6f   : > { %780 = vmatprep.mubr.bf16.mxu1 %v1762_v2  ;;  %893 = vmatprep.mubr.bf16.mxu0 %v1762_v2 }
  0x76   : > { %781 = vmatmul.mubr.bf16.gmra.mxu1 %v1910_v38  ;;  %894 = vmatmul.mubr.bf16.gmra.mxu0 %v1910_v38 }
  0x77   : > { %790 = vmatprep.mubr.bf16.mxu1 %v1762_v2  ;;  %903 = vmatprep.mubr.bf16.mxu0 %v1762_v2 }
  0x7e   : > { %791 = vmatmul.mubr.bf16.gmra.mxu1 %v1944_v52  ;;  %904 = vmatmul.mubr.bf16.gmra.mxu0 %v1944_v52 }
  0x7f   : > { %800 = vmatprep.mubr.bf16.mxu1 %v1762_v2  ;;  %913 = vmatprep.mubr.bf16.mxu0 %v1762_v2 }
  0x86   : > { %801 = vmatmul.mubr.bf16.gmra.mxu1 %v264_v3  ;;  %914 = vmatmul.mubr.bf16.gmra.mxu0 %v264_v3 }
  0xee   : > { %v619_v2 = vpop.f32.mrf.mxu0  ;;  %v659_v17 = vpop.f32.mrf.mxu1 }
  0xef   : > { %v620_v20 = vadd.f32 %v619_v2, %v2031_v15  ;;  %v660_v21 = vadd.f32 %v659_v17, %v2031_v15 }
  0xf0   : > { %v621_v18 = vpop.f32.mrf.mxu0  ;;  %v661_v19 = vpop.f32.mrf.mxu1 }
  0xf1   : > { %v622_v22 = vadd.f32 %v621_v18, %v2034_v16  ;;  %v662_v23 = vadd.f32 %v661_v19, %v2034_v16 }
  0xf2   : > { %v623_v24 = vpop.f32.mrf.mxu0  ;;  %v663_v25 = vpop.f32.mrf.mxu1 }
  0xf3   : > { %v1576_v26 = vpack.c.bf16 %v622_v22, %v620_v20  ;;  %v1600_v27 = vpack.c.bf16 %v662_v23, %v660_v21  ;;  %v624_v30 = vadd.f32 %v623_v24, %v2031_v15  ;;  %v664_v31 = vadd.f32 %v663_v25, %v2031_v15 }
  0xf4   : > { %v625_v28 = vpop.f32.mrf.mxu0  ;;  %v665_v29 = vpop.f32.mrf.mxu1  ;;  %v325_v20 = vsub.s32 2, %v2021_v11  ;;  %v333_v21 = vsub.s32 4, %v2021_v11  ;;  %v329_v22 = vsub.s32 3, %v2021_v11  ;;  %v337_v23 = vsub.s32 5, %v2021_v11 }
  0xf5   : > { %1308 = vst [vmem:[%s2044_s5] sm:$0xff] %v1576_v26  ;;  %1332 = vst [vmem:[%s2044_s5 + $0xc0] sm:$0xff] %v1600_v27  ;;  %v626_v32 = vadd.f32 %v625_v28, %v2034_v16  ;;  %v666_v33 = vadd.f32 %v665_v29, %v2034_v16 }
  0xf6   : > { %v629_v34 = vpop.f32.mrf.mxu0  ;;  %v669_v35 = vpop.f32.mrf.mxu1  ;;  %v2087_v11 = vrot.slane %v2028_v14, %v325_v20 }
  0xf7   : > { %v1579_v36 = vpack.c.bf16 %v626_v32, %v624_v30  ;;  %v1603_v37 = vpack.c.bf16 %v666_v33, %v664_v31  ;;  %v630_v40 = vadd.f32 %v629_v34, %v2031_v15  ;;  %v670_v41 = vadd.f32 %v669_v35, %v2031_v15 }
  0xf8   : > { %v631_v38 = vpop.f32.mrf.mxu0  ;;  %v671_v39 = vpop.f32.mrf.mxu1  ;;  %v2090_v34 = vrot.slane %v2028_v14, %v333_v21  ;;  %v2093_v35 = vrot.slane %v2028_v14, %v329_v22 }
  0xf9   : > { %1311 = vst [vmem:[%s2044_s5 + $0x18] sm:$0xff] %v1579_v36  ;;  %1335 = vst [vmem:[%s2044_s5 + $0xd8] sm:$0xff] %v1603_v37  ;;  %v632_v42 = vadd.f32 %v631_v38, %v2034_v16  ;;  %v672_v43 = vadd.f32 %v671_v39, %v2034_v16  ;;  %v2096_v36 = vrot.slane %v2028_v14, %v337_v23 }
  0xfa   : > { %v633_v44 = vpop.f32.mrf.mxu0  ;;  %v673_v45 = vpop.f32.mrf.mxu1 }
  0xfb   : > { %v1582_v46 = vpack.c.bf16 %v632_v42, %v630_v40  ;;  %v1606_v47 = vpack.c.bf16 %v672_v43, %v670_v41  ;;  %v634_v50 = vadd.f32 %v633_v44, %v2031_v15  ;;  %v674_v51 = vadd.f32 %v673_v45, %v2031_v15 }
  0xfc   : > { %v635_v48 = vpop.f32.mrf.mxu0  ;;  %v675_v49 = vpop.f32.mrf.mxu1 }
  0xfd   : > { %1314 = vst [vmem:[%s2044_s5 + $0x30] sm:$0xff] %v1582_v46  ;;  %1338 = vst [vmem:[%s2044_s5 + $0xf0] sm:$0xff] %v1606_v47  ;;  %v636_v52 = vadd.f32 %v635_v48, %v2034_v16  ;;  %v676_v53 = vadd.f32 %v675_v49, %v2034_v16 }
  0xfe   : > { %v639_v54 = vpop.f32.mrf.mxu0  ;;  %v679_v55 = vpop.f32.mrf.mxu1 }
  0xff   : > { %v1585_v56 = vpack.c.bf16 %v636_v52, %v634_v50  ;;  %v1609_v57 = vpack.c.bf16 %v676_v53, %v674_v51  ;;  %v640_v60 = vadd.f32 %v639_v54, %v2031_v15  ;;  %v680_v61 = vadd.f32 %v679_v55, %v2031_v15 }
 0x100   : > { %v641_v58 = vpop.f32.mrf.mxu0  ;;  %v681_v59 = vpop.f32.mrf.mxu1 }
 0x101   : > { %1317 = vst [vmem:[%s2044_s5 + $0x48] sm:$0xff] %v1585_v56  ;;  %1341 = vst [vmem:[%s2044_s5 + $0x108] sm:$0xff] %v1609_v57  ;;  %v642_v62 = vadd.f32 %v641_v58, %v2034_v16  ;;  %v682_v63 = vadd.f32 %v681_v59, %v2034_v16 }
 0x102   : > { %v643_v0 = vpop.f32.mrf.mxu0  ;;  %v683_v1 = vpop.f32.mrf.mxu1 }
 0x103   : > { %v1588_v3 = vpack.c.bf16 %v642_v62, %v640_v60  ;;  %v1612_v4 = vpack.c.bf16 %v682_v63, %v680_v61  ;;  %v644_v7 = vadd.f32 %v643_v0, %v2031_v15  ;;  %v684_v8 = vadd.f32 %v683_v1, %v2031_v15 }
 0x104   : > { %v645_v5 = vpop.f32.mrf.mxu0  ;;  %v685_v6 = vpop.f32.mrf.mxu1 }
 0x105   : > { %1320 = vst [vmem:[%s2044_s5 + $0x60] sm:$0xff] %v1588_v3  ;;  %1344 = vst [vmem:[%s2044_s5 + $0x120] sm:$0xff] %v1612_v4  ;;  %v646_v9 = vadd.f32 %v645_v5, %v2034_v16  ;;  %v686_v10 = vadd.f32 %v685_v6, %v2034_v16 }
 0x106   : > { %v649_v12 = vpop.f32.mrf.mxu0  ;;  %v689_v13 = vpop.f32.mrf.mxu1 }
 0x107   : > { %v1591_v2 = vpack.c.bf16 %v646_v9, %v644_v7  ;;  %v1615_v17 = vpack.c.bf16 %v686_v10, %v684_v8  ;;  %v650_v24 = vadd.f32 %v649_v12, %v2031_v15  ;;  %v690_v25 = vadd.f32 %v689_v13, %v2031_v15 }
 0x108   : > { %v651_v18 = vpop.f32.mrf.mxu0  ;;  %v691_v19 = vpop.f32.mrf.mxu1 }
 0x109   : > { %1323 = vst [vmem:[%s2044_s5 + $0x78] sm:$0xff] %v1591_v2  ;;  %1347 = vst [vmem:[%s2044_s5 + $0x138] sm:$0xff] %v1615_v17  ;;  %v652_v26 = vadd.f32 %v651_v18, %v2034_v16  ;;  %v692_v27 = vadd.f32 %v691_v19, %v2034_v16 }
 0x10a   : > { %v653_v28 = vpop.f32.mrf.mxu0  ;;  %v693_v29 = vpop.f32.mrf.mxu1 }
 0x10b   : > { %v1594_v30 = vpack.c.bf16 %v652_v26, %v650_v24  ;;  %v1618_v31 = vpack.c.bf16 %v692_v27, %v690_v25  ;;  %v654_v37 = vadd.f32 %v653_v28, %v2031_v15  ;;  %v694_v38 = vadd.f32 %v693_v29, %v2031_v15 }
 0x10c   : > { %v655_v32 = vpop.f32.mrf.mxu0  ;;  %v695_v33 = vpop.f32.mrf.mxu1 }
 0x10d   : > { %1326 = vst [vmem:[%s2044_s5 + $0x90] sm:$0xff] %v1594_v30  ;;  %1350 = vst [vmem:[%s2044_s5 + $0x150] sm:$0xff] %v1618_v31  ;;  %v656_v39 = vadd.f32 %v655_v32, %v2034_v16  ;;  %v696_v40 = vadd.f32 %v695_v33, %v2034_v16 }
 0x10e   : > { %v732_v41 = vpop.f32.mrf.mxu1  ;;  %v845_v42 = vpop.f32.mrf.mxu0 }
 0x10f   : > { %v1597_v43 = vpack.c.bf16 %v656_v39, %v654_v37  ;;  %v1621_v44 = vpack.c.bf16 %v696_v40, %v694_v38  ;;  %v733_v14 = vadd.f32 %v732_v41, %v2087_v11  ;;  %v846_v47 = vadd.f32 %v845_v42, %v2090_v34 }
 0x110   : > { %v734_v45 = vpop.f32.mrf.mxu1  ;;  %v847_v46 = vpop.f32.mrf.mxu0 }
 0x111   : > { %1329 = vst [vmem:[%s2044_s5 + $0xa8] sm:$0xff] %v1597_v43  ;;  %1353 = vst [vmem:[%s2044_s5 + $0x168] sm:$0xff] %v1621_v44  ;;  %v735_v15 = vadd.f32 %v734_v45, %v2093_v35  ;;  %v848_v48 = vadd.f32 %v847_v46, %v2096_v36 }
 0x112   : > { %v736_v49 = vpop.f32.mrf.mxu1  ;;  %v849_v16 = vpop.f32.mrf.mxu0 }
 0x113   : > { %v1577_v50 = vpack.c.bf16 %v735_v15, %v733_v14  ;;  %v1578_v51 = vpack.c.bf16 %v848_v48, %v846_v47  ;;  %v737_v54 = vadd.f32 %v736_v49, %v2087_v11  ;;  %v850_v55 = vadd.f32 %v849_v16, %v2090_v34 }
 0x114   : > { %v738_v52 = vpop.f32.mrf.mxu1  ;;  %v851_v53 = vpop.f32.mrf.mxu0 }
 0x115   : > { %1309 = vst [vmem:[%s2044_s5 + $0x8] sm:$0xff] %v1577_v50  ;;  %1310 = vst [vmem:[%s2044_s5 + $0x10] sm:$0xff] %v1578_v51  ;;  %v739_v56 = vadd.f32 %v738_v52, %v2093_v35  ;;  %v852_v57 = vadd.f32 %v851_v53, %v2096_v36 }
 0x116   : > { %v742_v58 = vpop.f32.mrf.mxu1  ;;  %v855_v59 = vpop.f32.mrf.mxu0 }
 0x117   : > { %v1580_v60 = vpack.c.bf16 %v739_v56, %v737_v54  ;;  %v1581_v61 = vpack.c.bf16 %v852_v57, %v850_v55  ;;  %v743_v0 = vadd.f32 %v742_v58, %v2087_v11  ;;  %v856_v1 = vadd.f32 %v855_v59, %v2090_v34 }
 0x118   : > { %v744_v62 = vpop.f32.mrf.mxu1  ;;  %v857_v63 = vpop.f32.mrf.mxu0 }
 0x119   : > { %1312 = vst [vmem:[%s2044_s5 + $0x20] sm:$0xff] %v1580_v60  ;;  %1313 = vst [vmem:[%s2044_s5 + $0x28] sm:$0xff] %v1581_v61  ;;  %v745_v3 = vadd.f32 %v744_v62, %v2093_v35  ;;  %v858_v4 = vadd.f32 %v857_v63, %v2096_v36 }
 0x11a   : > { %v746_v5 = vpop.f32.mrf.mxu1  ;;  %v859_v6 = vpop.f32.mrf.mxu0 }
 0x11b   : > { %v1583_v7 = vpack.c.bf16 %v745_v3, %v743_v0  ;;  %v1584_v8 = vpack.c.bf16 %v858_v4, %v856_v1  ;;  %v747_v12 = vadd.f32 %v746_v5, %v2087_v11  ;;  %v860_v13 = vadd.f32 %v859_v6, %v2090_v34 }
 0x11c   : > { %v748_v9 = vpop.f32.mrf.mxu1  ;;  %v861_v10 = vpop.f32.mrf.mxu0 }
 0x11d   : > { %1315 = vst [vmem:[%s2044_s5 + $0x38] sm:$0xff] %v1583_v7  ;;  %1316 = vst [vmem:[%s2044_s5 + $0x40] sm:$0xff] %v1584_v8  ;;  %v749_v2 = vadd.f32 %v748_v9, %v2093_v35  ;;  %v862_v17 = vadd.f32 %v861_v10, %v2096_v36 }
 0x11e   : > { %v752_v18 = vpop.f32.mrf.mxu1  ;;  %v865_v19 = vpop.f32.mrf.mxu0 }
 0x11f   : > { %v1586_v20 = vpack.c.bf16 %v749_v2, %v747_v12  ;;  %v1587_v21 = vpack.c.bf16 %v862_v17, %v860_v13  ;;  %v753_v24 = vadd.f32 %v752_v18, %v2087_v11  ;;  %v866_v25 = vadd.f32 %v865_v19, %v2090_v34 }
 0x120   : > { %v754_v22 = vpop.f32.mrf.mxu1  ;;  %v867_v23 = vpop.f32.mrf.mxu0 }
 0x121   : > { %1318 = vst [vmem:[%s2044_s5 + $0x50] sm:$0xff] %v1586_v20  ;;  %1319 = vst [vmem:[%s2044_s5 + $0x58] sm:$0xff] %v1587_v21  ;;  %v755_v26 = vadd.f32 %v754_v22, %v2093_v35  ;;  %v868_v27 = vadd.f32 %v867_v23, %v2096_v36 }
 0x122   : > { %v756_v28 = vpop.f32.mrf.mxu1  ;;  %v869_v29 = vpop.f32.mrf.mxu0 }
 0x123   : > { %v1589_v30 = vpack.c.bf16 %v755_v26, %v753_v24  ;;  %v1590_v31 = vpack.c.bf16 %v868_v27, %v866_v25  ;;  %v757_v37 = vadd.f32 %v756_v28, %v2087_v11  ;;  %v870_v38 = vadd.f32 %v869_v29, %v2090_v34 }
 0x124   : > { %v758_v32 = vpop.f32.mrf.mxu1  ;;  %v871_v33 = vpop.f32.mrf.mxu0 }
 0x125   : > { %1321 = vst [vmem:[%s2044_s5 + $0x68] sm:$0xff] %v1589_v30  ;;  %1322 = vst [vmem:[%s2044_s5 + $0x70] sm:$0xff] %v1590_v31  ;;  %v759_v39 = vadd.f32 %v758_v32, %v2093_v35  ;;  %v872_v40 = vadd.f32 %v871_v33, %v2096_v36 }
 0x126   : > { %v762_v41 = vpop.f32.mrf.mxu1  ;;  %v875_v42 = vpop.f32.mrf.mxu0 }
 0x127   : > { %v1592_v43 = vpack.c.bf16 %v759_v39, %v757_v37  ;;  %v1593_v44 = vpack.c.bf16 %v872_v40, %v870_v38  ;;  %v763_v14 = vadd.f32 %v762_v41, %v2087_v11  ;;  %v876_v47 = vadd.f32 %v875_v42, %v2090_v34 }
 0x128   : > { %v764_v45 = vpop.f32.mrf.mxu1  ;;  %v877_v46 = vpop.f32.mrf.mxu0 }
 0x129   : > { %1324 = vst [vmem:[%s2044_s5 + $0x80] sm:$0xff] %v1592_v43  ;;  %1325 = vst [vmem:[%s2044_s5 + $0x88] sm:$0xff] %v1593_v44  ;;  %v765_v15 = vadd.f32 %v764_v45, %v2093_v35  ;;  %v878_v48 = vadd.f32 %v877_v46, %v2096_v36 }
 0x12a   : > { %v766_v49 = vpop.f32.mrf.mxu1  ;;  %v879_v16 = vpop.f32.mrf.mxu0 }
 0x12b   : > { %v1595_v50 = vpack.c.bf16 %v765_v15, %v763_v14  ;;  %v1596_v51 = vpack.c.bf16 %v878_v48, %v876_v47  ;;  %v767_v54 = vadd.f32 %v766_v49, %v2087_v11  ;;  %v880_v55 = vadd.f32 %v879_v16, %v2090_v34 }
 0x12c   : > { %v768_v52 = vpop.f32.mrf.mxu1  ;;  %v881_v53 = vpop.f32.mrf.mxu0 }
 0x12d   : > { %1327 = vst [vmem:[%s2044_s5 + $0x98] sm:$0xff] %v1595_v50  ;;  %1328 = vst [vmem:[%s2044_s5 + $0xa0] sm:$0xff] %v1596_v51  ;;  %v769_v56 = vadd.f32 %v768_v52, %v2093_v35  ;;  %v882_v57 = vadd.f32 %v881_v53, %v2096_v36 }
 0x12e   : > { %v772_v58 = vpop.f32.mrf.mxu1  ;;  %v885_v59 = vpop.f32.mrf.mxu0 }
 0x12f   : > { %v1598_v60 = vpack.c.bf16 %v769_v56, %v767_v54  ;;  %v1599_v61 = vpack.c.bf16 %v882_v57, %v880_v55  ;;  %v773_v0 = vadd.f32 %v772_v58, %v2087_v11  ;;  %v886_v1 = vadd.f32 %v885_v59, %v2090_v34 }
 0x130   : > { %v774_v62 = vpop.f32.mrf.mxu1  ;;  %v887_v63 = vpop.f32.mrf.mxu0 }
 0x131   : > { %1330 = vst [vmem:[%s2044_s5 + $0xb0] sm:$0xff] %v1598_v60  ;;  %1331 = vst [vmem:[%s2044_s5 + $0xb8] sm:$0xff] %v1599_v61  ;;  %v775_v3 = vadd.f32 %v774_v62, %v2093_v35  ;;  %v888_v4 = vadd.f32 %v887_v63, %v2096_v36 }
 0x132   : > { %v776_v5 = vpop.f32.mrf.mxu1  ;;  %v889_v6 = vpop.f32.mrf.mxu0 }
 0x133   : > { %v1601_v7 = vpack.c.bf16 %v775_v3, %v773_v0  ;;  %v1602_v8 = vpack.c.bf16 %v888_v4, %v886_v1  ;;  %v777_v12 = vadd.f32 %v776_v5, %v2087_v11  ;;  %v890_v13 = vadd.f32 %v889_v6, %v2090_v34 }
 0x134   : > { %v778_v9 = vpop.f32.mrf.mxu1  ;;  %v891_v10 = vpop.f32.mrf.mxu0 }
 0x135   : > { %1333 = vst [vmem:[%s2044_s5 + $0xc8] sm:$0xff] %v1601_v7  ;;  %1334 = vst [vmem:[%s2044_s5 + $0xd0] sm:$0xff] %v1602_v8  ;;  %v779_v2 = vadd.f32 %v778_v9, %v2093_v35  ;;  %v892_v17 = vadd.f32 %v891_v10, %v2096_v36 }
 0x136   : > { %v782_v18 = vpop.f32.mrf.mxu1  ;;  %v895_v19 = vpop.f32.mrf.mxu0 }
 0x137   : > { %v1604_v20 = vpack.c.bf16 %v779_v2, %v777_v12  ;;  %v1605_v21 = vpack.c.bf16 %v892_v17, %v890_v13  ;;  %v783_v24 = vadd.f32 %v782_v18, %v2087_v11  ;;  %v896_v25 = vadd.f32 %v895_v19, %v2090_v34 }
 0x138   : > { %v784_v22 = vpop.f32.mrf.mxu1  ;;  %v897_v23 = vpop.f32.mrf.mxu0 }
 0x139   : > { %1336 = vst [vmem:[%s2044_s5 + $0xe0] sm:$0xff] %v1604_v20  ;;  %1337 = vst [vmem:[%s2044_s5 + $0xe8] sm:$0xff] %v1605_v21  ;;  %v785_v26 = vadd.f32 %v784_v22, %v2093_v35  ;;  %v898_v27 = vadd.f32 %v897_v23, %v2096_v36 }
 0x13a   : > { %v786_v28 = vpop.f32.mrf.mxu1  ;;  %v899_v29 = vpop.f32.mrf.mxu0 }
 0x13b   : > { %v1607_v30 = vpack.c.bf16 %v785_v26, %v783_v24  ;;  %v1608_v31 = vpack.c.bf16 %v898_v27, %v896_v25  ;;  %v787_v37 = vadd.f32 %v786_v28, %v2087_v11  ;;  %v900_v38 = vadd.f32 %v899_v29, %v2090_v34 }
 0x13c   : > { %v788_v32 = vpop.f32.mrf.mxu1  ;;  %v901_v33 = vpop.f32.mrf.mxu0 }
 0x13d   : > { %1339 = vst [vmem:[%s2044_s5 + $0xf8] sm:$0xff] %v1607_v30  ;;  %1340 = vst [vmem:[%s2044_s5 + $0x100] sm:$0xff] %v1608_v31  ;;  %v789_v39 = vadd.f32 %v788_v32, %v2093_v35  ;;  %v902_v40 = vadd.f32 %v901_v33, %v2096_v36 }
 0x13e   : > { %v792_v41 = vpop.f32.mrf.mxu1  ;;  %v905_v42 = vpop.f32.mrf.mxu0 }
 0x13f   : > { %v1610_v43 = vpack.c.bf16 %v789_v39, %v787_v37  ;;  %v1611_v44 = vpack.c.bf16 %v902_v40, %v900_v38  ;;  %v793_v14 = vadd.f32 %v792_v41, %v2087_v11  ;;  %v906_v47 = vadd.f32 %v905_v42, %v2090_v34 }
 0x140   : > { %v794_v45 = vpop.f32.mrf.mxu1  ;;  %v907_v46 = vpop.f32.mrf.mxu0 }
 0x141   : > { %1342 = vst [vmem:[%s2044_s5 + $0x110] sm:$0xff] %v1610_v43  ;;  %1343 = vst [vmem:[%s2044_s5 + $0x118] sm:$0xff] %v1611_v44  ;;  %v795_v15 = vadd.f32 %v794_v45, %v2093_v35  ;;  %v908_v48 = vadd.f32 %v907_v46, %v2096_v36 }
 0x142   : > { %v796_v49 = vpop.f32.mrf.mxu1  ;;  %v909_v16 = vpop.f32.mrf.mxu0 }
 0x143   : > { %v1613_v50 = vpack.c.bf16 %v795_v15, %v793_v14  ;;  %v1614_v51 = vpack.c.bf16 %v908_v48, %v906_v47  ;;  %v797_v54 = vadd.f32 %v796_v49, %v2087_v11  ;;  %v910_v55 = vadd.f32 %v909_v16, %v2090_v34 }
 0x144   : > { %v798_v52 = vpop.f32.mrf.mxu1  ;;  %v911_v53 = vpop.f32.mrf.mxu0 }
 0x145   : > { %1345 = vst [vmem:[%s2044_s5 + $0x128] sm:$0xff] %v1613_v50  ;;  %1346 = vst [vmem:[%s2044_s5 + $0x130] sm:$0xff] %v1614_v51  ;;  %v799_v56 = vadd.f32 %v798_v52, %v2093_v35  ;;  %v912_v57 = vadd.f32 %v911_v53, %v2096_v36 }
 0x146   : > { %v802_v58 = vpop.f32.mrf.mxu1  ;;  %v915_v59 = vpop.f32.mrf.mxu0 }
 0x147   : > { %v1616_v60 = vpack.c.bf16 %v799_v56, %v797_v54  ;;  %v1617_v61 = vpack.c.bf16 %v912_v57, %v910_v55  ;;  %v803_v0 = vadd.f32 %v802_v58, %v2087_v11  ;;  %v916_v1 = vadd.f32 %v915_v59, %v2090_v34 }
 0x148   : > { %v804_v62 = vpop.f32.mrf.mxu1  ;;  %v917_v63 = vpop.f32.mrf.mxu0 }
 0x149   : > { %1348 = vst [vmem:[%s2044_s5 + $0x140] sm:$0xff] %v1616_v60  ;;  %1349 = vst [vmem:[%s2044_s5 + $0x148] sm:$0xff] %v1617_v61  ;;  %v805_v3 = vadd.f32 %v804_v62, %v2093_v35  ;;  %v918_v4 = vadd.f32 %v917_v63, %v2096_v36 }
 0x14a   : > { %v806_v5 = vpop.f32.mrf.mxu1  ;;  %v919_v6 = vpop.f32.mrf.mxu0 }
 0x14b   : > { %v1619_v7 = vpack.c.bf16 %v805_v3, %v803_v0  ;;  %v1620_v8 = vpack.c.bf16 %v918_v4, %v916_v1  ;;  %v807_v12 = vadd.f32 %v806_v5, %v2087_v11  ;;  %v920_v13 = vadd.f32 %v919_v6, %v2090_v34 }
 0x14c   : > { %v808_v9 = vpop.f32.mrf.mxu1  ;;  %v921_v10 = vpop.f32.mrf.mxu0 }
 0x14d   : > { %1351 = vst [vmem:[%s2044_s5 + $0x158] sm:$0xff] %v1619_v7  ;;  %1352 = vst [vmem:[%s2044_s5 + $0x160] sm:$0xff] %v1620_v8  ;;  %v809_v2 = vadd.f32 %v808_v9, %v2093_v35  ;;  %v922_v17 = vadd.f32 %v921_v10, %v2096_v36 }
 0x14f   : > { %v1622_v18 = vpack.c.bf16 %v809_v2, %v807_v12  ;;  %v1623_v19 = vpack.c.bf16 %v922_v17, %v920_v13 }
 0x151   : > { %1354 = vst [vmem:[%s2044_s5 + $0x170] sm:$0xff] %v1622_v18  ;;  %1355 = vst [vmem:[%s2044_s5 + $0x178] sm:$0xff] %v1623_v19 }
 0x152 PF: > { %s13_s14 = sadd.s32 1, %s1760_s14   ;;  %s2215_s12 = smov %s1756_s13 }
 0x153   : > { %p10_p5 = scmp.ge.s32.totalorder %s13_s14, 4   ;;  %s2216_s13 = smov %s2218_s15 }
 0x155   :  { %12 = sbr.rel (!%p10_p5) target bundleno = 2 (0x2), region = 68 }

// kernel: encoder_forward.8
= control target key start
LH: loop header
LB: loop body
LE: loop exit
PB: predicated region body
PF: predicated region fallthrough
CT: control target
= control target key end

     0   :  { %s2294_s12 = smov 0   ;;  %s2296_s13 = smov 0   ;;  %s2880_s0 = inlined_call_operand.vmem [shape: bf16[32,8,768], index: 0, kind: input, shape index: {}]   ;;  %s2881_s1 = inlined_call_operand.vmem [shape: bf16[2,128,384], index: 1, kind: input, shape index: {}]   ;;  %s2882_s2 = inlined_call_operand.vmem [shape: f32[2,1,128], index: 2, kind: input, shape index: {}]   ;;  %s2883_s3 = inlined_call_operand.vmem [shape: bf16[32,8,256], index: 3, kind: output, shape index: {}]  }
   0x1   :  { %s2298_s14 = smov 0   ;;  %s2300_s15 = smov 0  }
   0x2   :  { %s2302_s16 = smov 0   ;;  %s2304_s17 = smov 0  }
   0x3   :  { %s2306_s18 = smov 0  }
   0x4 LB: > { %s22_s19 = sadd.s32 1, %s2260_s16  ;;  %s25_s20 = sadd.s32 1, %s2264_s17  ;;  %s2268_s18 = sphi %s2306_s18, %s13_s18   ;;  %s2264_s17 = sphi %s2304_s17, %s2890_s17   ;;  %s2260_s16 = sphi %s2302_s16, %s2889_s16   ;;  %s2256_s15 = sphi %s2300_s15, %s2888_s15   ;;  %s2252_s14 = sphi %s2298_s14, %s2887_s14   ;;  %s2248_s13 = sphi %s2296_s13, %s2886_s13   ;;  %s2244_s12 = sphi %s2294_s12, %s2885_s12  }
   0x5   : > { %p23_p0 = scmp.ge.s32.totalorder %s22_s19, 4  ;;  %s1665_s21 = sadd.s32 4294967295, %s2268_s18  }
   0x6   : > { %s1667_s22 = sshll.u32 %s2260_s16, 1  ;;  %p49_p2 = scmp.ne.s32.totalorder %s2248_s13, %s2244_s12 }
   0x7   : > { %s2892_s19 = smov (%p23_p0, %s22_s19), 0  ;;  %s2894_s20 = smov (!%p23_p0, %s25_s20), %s2264_s17 }
   0x8   : > { %s30_s23 = ssub.s32 3, %s1667_s22  ;;  %s1668_s24 = sshll.u32 %s2892_s19, 1 }
   0x9   : > { %p27_p1 = scmp.ge.s32.totalorder %s2894_s20, 2  ;;  %s31_s25 = smul.u32 %s2264_s17, %s30_s23 }
   0xa   : > { %s34_s26 = ssub.s32 3, %s1668_s24  ;;  %p50_p3 = scmp.eq.s32.totalorder %s2268_s18, 0 }
   0xb   : > { %s2896_s20 = smov (%p27_p1, %s2894_s20), 0  ;;  %s32_s27 = sadd.s32 %s2260_s16, %s31_s25 }
   0xc   : > { %s35_s28 = smul.u32 %s34_s26, %s2896_s20  ;;  %s38_s29 = ssub.s32 %s2264_s17, %s2896_s20 }
   0xd   : > { %p51_p4 = por %p50_p3, %p49_p2  ;;  %p141_p5 = scmp.eq.s32.totalorder %s1665_s21, 7 }
   0xe   : > { %s36_s30 = sadd.s32 %s35_s28, %s2892_s19  ;;  %s42_s7 = sadd.s32 1, %s2248_s13 }
   0xf   : > { %s37_s4 = ssub.s32 %s32_s27, %s36_s30  ;;  %p2348_p6 = por %p141_p5, %p49_p2 }
  0x10   : > { %s39_s6 = sor.u32 %s38_s29, %s37_s4  ;;  %p1672_p8 = scmp.ge.s32.totalorder %s2268_s18, 8 }
  0x11   : > { %p40_p7 = scmp.eq.s32.totalorder %s39_s6, 0 }
  0x12   : > { %163 = sbr.rel (%p1672_p8) target bundleno = 41 (0x29), region = 16 }
  0x13   : > { %s2354_s8 = scalar_select %p40_p7, %s2248_s13, %s42_s7  }
  0x17   : > { %166 = sbr.rel (!%p51_p4) target bundleno = 41 (0x29), region = 20  ;;  %s168_s9 = sand.u32 (%p51_p4), 1, %s2248_s13  }
  0x18   : > { %s176_s10 = smul.u32 (%p51_p4), 3, %s2264_s17 }
  0x19   : > { %s2017_s11 = smul.u32 (%p51_p4), 96, %s168_s9 }
  0x1a   : > { %s2018_s21 = smul.u32 (%p51_p4), 48, %s32_s27 }
  0x1b   : > { %s170_s27 = scalar_lea.vmem (%p51_p4), [#allocation3], %s2017_s11 }
  0x1c   : > { %s178_s22 = sadd.s32 %s2018_s21, %s176_s10 }
  0x1d   : > { %s1676_s23 = sshll.u32 %s178_s22, 2 }
  0x1e   : > { %s2362_s26 = scalar_lea.vmem %s2880_s0, %s1676_s23 }
  0x1f   : > { %v195_v0 = vld [vmem:[%s2362_s26] sm:$0xff]  ;;  %v197_v1 = vld [vmem:[%s2362_s26 + $0x18] sm:$0xff]  ;;  %v199_v2 = vld [vmem:[%s2362_s26 + $0x30] sm:$0xff] }
  0x20   : > { %196 = vst [vmem:[%s170_s27] sm:$0xff] %v195_v0  ;;  %198 = vst [vmem:[%s170_s27 + $0xc] sm:$0xff] %v197_v1  ;;  %v201_v3 = vld [vmem:[%s2362_s26 + $0x48] sm:$0xff]  ;;  %v203_v4 = vld [vmem:[%s2362_s26 + $0x60] sm:$0xff] }
  0x21   : > { %200 = vst [vmem:[%s170_s27 + $0x18] sm:$0xff] %v199_v2  ;;  %v205_v5 = vld [vmem:[%s2362_s26 + $0x78] sm:$0xff]  ;;  %202 = vst [vmem:[%s170_s27 + $0x24] sm:$0xff] %v201_v3  ;;  %v207_v6 = vld [vmem:[%s2362_s26 + $0x90] sm:$0xff] }
  0x22   : > { %204 = vst [vmem:[%s170_s27 + $0x30] sm:$0xff] %v203_v4  ;;  %206 = vst [vmem:[%s170_s27 + $0x3c] sm:$0xff] %v205_v5  ;;  %v209_v7 = vld [vmem:[%s2362_s26 + $0xa8] sm:$0xff]  ;;  %v1679_v9 = vld [vmem:[%s2362_s26 + $0x20] sm:$0xf] }
  0x23   : > { %v1677_v8 = vld [vmem:[%s2362_s26 + $0x8] sm:$0xf]  ;;  %208 = vst [vmem:[%s170_s27 + $0x48] sm:$0xff] %v207_v6  ;;  %210 = vst [vmem:[%s170_s27 + $0x54] sm:$0xff] %v209_v7  ;;  %v1681_v10 = vld [vmem:[%s2362_s26 + $0x38] sm:$0xf] }
  0x24   : > { %1678 = vst [vmem:[%s170_s27 + $0x8] sm:$0xf] %v1677_v8  ;;  %v1683_v11 = vld [vmem:[%s2362_s26 + $0x50] sm:$0xf]  ;;  %1680 = vst [vmem:[%s170_s27 + $0x14] sm:$0xf] %v1679_v9 }
  0x25   : > { %1682 = vst [vmem:[%s170_s27 + $0x20] sm:$0xf] %v1681_v10  ;;  %1684 = vst [vmem:[%s170_s27 + $0x2c] sm:$0xf] %v1683_v11  ;;  %v1685_v12 = vld [vmem:[%s2362_s26 + $0x68] sm:$0xf] }
  0x26   : > { %v1687_v13 = vld [vmem:[%s2362_s26 + $0x80] sm:$0xf]  ;;  %v1689_v14 = vld [vmem:[%s2362_s26 + $0x98] sm:$0xf]  ;;  %1686 = vst [vmem:[%s170_s27 + $0x38] sm:$0xf] %v1685_v12 }
  0x27   : > { %1688 = vst [vmem:[%s170_s27 + $0x44] sm:$0xf] %v1687_v13  ;;  %1690 = vst [vmem:[%s170_s27 + $0x50] sm:$0xf] %v1689_v14  ;;  %v1691_v15 = vld [vmem:[%s2362_s26 + $0xb0] sm:$0xf] }
  0x28   : > { %1692 = vst [vmem:[%s170_s27 + $0x5c] sm:$0xf] %v1691_v15 }
  0x29 PF: > { %p1693_p9 = scmp.ge.s32.totalorder %s2268_s18, 1  ;;  %p253_p10 = scmp.lt.s32.totalorder %s2268_s18, 9 }
  0x2b   : > { %p254_p11 = pnand %p1693_p9, %p253_p10 }
  0x2c   : > { %s260_s28 = sand.u32 (!%p254_p11), 1, %s2244_s12   ;;  %p296_p12 = scmp.lt.s32.totalorder (!%p254_p11), %s2256_s15, 1 }
  0x2d   : > { %257 = sbr.rel (%p254_p11) target bundleno = 2114 (0x842), region = 54  ;;  %s1694_s30 = sshll.u32 (!%p254_p11), %s260_s28, 5 }
  0x2e   : > { %s2019_s29 = smul.u32 (!%p254_p11), 96, %s260_s28  ;;  %s2397_s24 = scalar_lea.vmem (!%p254_p11), [#allocation4], %s1694_s30 }
  0x2f   : > { %p1696_p13 = scmp.ne.s32.totalorder (!%p254_p11), %s2252_s14, 0 }
  0x30   : > { %s2395_s23 = scalar_lea.vmem (!%p254_p11), [#allocation3], %s2019_s29 }
  0x32   : > { %s297_s4 = scalar_select %p296_p12, %s2256_s15, 1 }
  0x33   : > { %313 = sbr.rel (%p1696_p13) target bundleno = 58 (0x3a), region = 62  ;;  %s1697_s12 = sshll.u32 (!%p1696_p13), %s2256_s15, 3 }
  0x34   : > { %s2020_s6 = smul.u32 192, %s297_s4  ;;  %s2388_s10 = scalar_lea.vmem %s2882_s2, %s297_s4 }
  0x35   : > { %s315_s25 = scalar_lea.vmem (!%p1696_p13), [#allocation2], %s1697_s12 }
  0x36   : > { %s2393_s22 = scalar_lea.vmem %s2881_s1, %s2020_s6 }
  0x38   : > { %v2270_v16 = vmov 0.0  }
  0x39   : > { %316 = vst [vmem:[%s315_s25] sm:$0xff] %v2270_v16 }
  0x3a PF: > { %v2402_v17 = vld [vmem:[%s2393_s22 + $0xac] ss:$12 sps:$4 sm:$0xff]   ;;  %v2405_v18 = vld [vmem:[%s2393_s22 + $0xa8] ss:$12 sps:$4 sm:$0xff]   ;;  %v2271_v19 = vmov 0.0   ;;  %v2272_v20 = vmov 0  }
  0x3b   : > { %1857 = vmatprep.subr.bf16.mxu1 %v2271_v19  ;;  %523 = vmatprep.mubr.bf16.mxu0 %v2272_v20  ;;  %v2411_v21 = vld [vmem:[%s2393_s22 + $0x94] ss:$12 sps:$4 sm:$0xff]   ;;  %vm2273_vm0 = vmmov 0   ;;  %v2417_v22 = vld [vmem:[%s2393_s22 + $0x90] ss:$12 sps:$4 sm:$0xff]   ;;  %s1698_s26 = sshll.u32 %s2256_s15, 3 }
  0x3c   : > { %491 = vmatprep.subr.bf16.mxu0 %v2402_v17  ;;  %1873 = vmatprep.mubr.msk.bf16.mxu1 %vm2273_vm0, %v2271_v19  ;;  %v2421_v23 = vld [vmem:[%s2393_s22 + $0x7c] ss:$12 sps:$4 sm:$0xff]   ;;  %v2425_v24 = vld [vmem:[%s2393_s22 + $0x78] ss:$12 sps:$4 sm:$0xff]   ;;  %v2436_v27 = vld [vmem:[%s2393_s22 + $0x60] ss:$12 sps:$4 sm:$0xff]  }
  0x3d   : > { %492 = vmatpush1.bf16.msra.mxu0 %v2405_v18  ;;  %v2429_v25 = vld [vmem:[%s2393_s22 + $0x64] ss:$12 sps:$4 sm:$0xff]   ;;  %v2440_v28 = vld [vmem:[%s2393_s22 + $0x4c] ss:$12 sps:$4 sm:$0xff]   ;;  %v2448_v30 = vld [vmem:[%s2393_s22 + $0x48] ss:$12 sps:$4 sm:$0xff]  }
  0x3e   : > { %493 = vmatprep.subr.bf16.mxu0 %v2411_v21  ;;  %v2432_v26 = vld [vmem:[%s2393_s22 + $0xb0] ss:$12 sps:$4 sm:$0xff]   ;;  %v2444_v29 = vld [vmem:[%s2393_s22 + $0x98] ss:$12 sps:$4 sm:$0xff]   ;;  %v2452_v31 = vld [vmem:[%s2393_s22 + $0x34] ss:$12 sps:$4 sm:$0xff]  }
  0x3f   : > { %1858 = vmatpush3.bf16.msra.mxu1 %v2432_v26  ;;  %v2457_v32 = vld [vmem:[%s2393_s22 + $0x80] ss:$12 sps:$4 sm:$0xff]   ;;  %v2462_v33 = vld [vmem:[%s2393_s22 + $0x30] ss:$12 sps:$4 sm:$0xff]   ;;  %v2470_v35 = vld [vmem:[%s2393_s22 + $0x68] ss:$12 sps:$4 sm:$0xff]  }
  0x40   : > { %1859 = vmatprep.subr.bf16.mxu1 %v2271_v19  ;;  %v2466_v34 = vld [vmem:[%s2393_s22 + $0x1c] ss:$12 sps:$4 sm:$0xff]   ;;  %v2476_v36 = vld [vmem:[%s2393_s22 + $0x18] ss:$12 sps:$4 sm:$0xff]   ;;  %v2489_v39 = vld [vmem:[%s2393_s22] ss:$12 sps:$4 sm:$0xff]  }
  0x41   : > { %494 = vmatpush1.bf16.msra.mxu0 %v2417_v22  ;;  %v2480_v37 = vld [vmem:[%s2393_s22 + $0x4] ss:$12 sps:$4 sm:$0xff]   ;;  %s2491_s27 = scalar_lea.vmem [#allocation2], %s1698_s26  ;;  %v2507_v43 = vld [vmem:[%s2393_s22 + $0x20] ss:$12 sps:$4 sm:$0xff]   ;;  %s1781_s28 = smul.u32 84, %s2256_s15 }
  0x42   : > { %495 = vmatprep.subr.bf16.mxu0 %v2421_v23  ;;  %v2484_v38 = vld [vmem:[%s2393_s22 + $0x50] ss:$12 sps:$4 sm:$0xff]   ;;  %v2494_v40 = vld [vmem:[%s2491_s27] sm:$0xff]  ;;  %v2515_v44 = vld [vmem:[%s2393_s22 + $0x8] ss:$12 sps:$4 sm:$0xff]   ;;  %s1782_s30 = smul.u32 28, %s2256_s15 }
  0x43   : > { %1860 = vmatpush3.bf16.msra.mxu1 %v2444_v29  ;;  %v2499_v41 = vld [vmem:[%s2393_s22 + $0x38] ss:$12 sps:$4 sm:$0xff]   ;;  %v362_v42 = vpack.c.bf16 %v2494_v40, %v2494_v40  ;;  %s356_s29 = scalar_lea.vmem %s2395_s23, %s1781_s28 [#allocation3]  ;;  %v2556_v63 = vld [vmem:[%s2388_s10] ss:$0 sm:$0xff]  ;;  %s1729_s6 = smul.u32 60, %s2256_s15 }
  0x44   : > { %1861 = vmatprep.subr.bf16.mxu1 %v2271_v19  ;;  %v357_v45 = vld [vmem:[%s356_s29] sm:$0xff]  ;;  %v358_v0 = vld [vmem:[%s356_s29 + $0x8] sm:$0xf]  ;;  %s602_s4 = scalar_lea.vmem %s2397_s24, %s1782_s30 [#allocation4]  ;;  %s1734_s9 = smul.u32 20, %s2256_s15 }
  0x45   : > { %496 = vmatpush1.bf16.msra.mxu0 %v2425_v24  ;;  %v359_v46 = vunpack.c.l.bf16 %v357_v45  ;;  %v360_v51 = vunpack.c.h.bf16 %v357_v45  ;;  %v361_v3 = vunpack.c.l.bf16 %v358_v0  ;;  %s1552_s7 = scalar_lea.vmem %s2395_s23, %s1729_s6 [#allocation3]  ;;  %s1736_s21 = smul.u32 36, %s2256_s15 }
  0x46   : > { %497 = vmatprep.subr.bf16.mxu0 %v2429_v25  ;;  %v1730_v14 = vld [vmem:[%s1552_s7 + $0xc] sm:$0xff]  ;;  %s1556_s11 = scalar_lea.vmem %s2397_s24, %s1734_s9 [#allocation4]  ;;  %s1741_s25 = smul.u32 12, %s2256_s15 }
  0x47   : > { %1862 = vmatpush3.bf16.msra.mxu1 %v2457_v32  ;;  %v611_v15 = vunpack.c.l.bf16 %v1730_v14  ;;  %s1560_s12 = scalar_lea.vmem %s2395_s23, %s1736_s21 [#allocation3]  ;;  %s1747_s29 = sshll.u32 %s2256_s15, 2 }
  0x48   : > { %1863 = vmatprep.subr.bf16.mxu1 %v2271_v19  ;;  %s1564_s26 = scalar_lea.vmem %s2397_s24, %s1741_s25 [#allocation4]  ;;  %s1567_s28 = scalar_lea.vmem %s2395_s23, %s1741_s25 [#allocation3] }
  0x49   : > { %498 = vmatpush1.bf16.msra.mxu0 %v2436_v27  ;;  %s1570_s30 = scalar_lea.vmem %s2397_s24, %s1747_s29 [#allocation4]  ;;  %s1753_s21 = smul.u32 4294967260, %s2256_s15 }
  0x4a   : > { %499 = vmatprep.subr.bf16.mxu0 %v2440_v28  ;;  %s1758_s25 = smul.u32 4294967284, %s2256_s15 }
  0x4b   : > { %1864 = vmatpush3.bf16.msra.mxu1 %v2470_v35 }
  0x4c   : > { %1865 = vmatprep.subr.bf16.mxu1 %v2271_v19 }
  0x4d   : > { %500 = vmatpush1.bf16.msra.mxu0 %v2448_v30 }
  0x4e   : > { %501 = vmatprep.subr.bf16.mxu0 %v2452_v31 }
  0x4f   : > { %1866 = vmatpush3.bf16.msra.mxu1 %v2484_v38 }
  0x50   : > { %1867 = vmatprep.subr.bf16.mxu1 %v2271_v19 }
  0x51   : > { %502 = vmatpush1.bf16.msra.mxu0 %v2462_v33 }
  0x52   : > { %503 = vmatprep.subr.bf16.mxu0 %v2466_v34 }
  0x53   : > { %1868 = vmatpush3.bf16.msra.mxu1 %v2499_v41 }
  0x54   : > { %1869 = vmatprep.subr.bf16.mxu1 %v2271_v19 }
  0x55   : > { %504 = vmatpush1.bf16.msra.mxu0 %v2476_v36 }
  0x56   : > { %505 = vmatprep.subr.bf16.mxu0 %v2480_v37 }
  0x57   : > { %1870 = vmatpush3.bf16.msra.mxu1 %v2507_v43 }
  0x58   : > { %1871 = vmatprep.subr.bf16.mxu1 %v2271_v19 }
  0x59   : > { %506 = vmatpush1.bf16.msra.mxu0 %v2489_v39 }
  0x5a   : > { %614 = vmatprep.subr.bf16.mxu0 %v2402_v17 }
  0x5b   : > { %1872 = vmatpush3.bf16.msra.mxu1 %v2515_v44 }
  0x5c   : > { %524 = vmatmul.mubr.bf16.vlgmr.msra.gmra.mxu0 %v362_v42  ;;  %1877 = vmatprep.subr.bf16.mxu1 %v2271_v19 }
  0x5d   : > { %615 = vmatpush1.bf16.msra.mxu0 %v2405_v18  ;;  %646 = vmatprep.mubr.bf16.mxu0 %v2272_v20 }
  0x5e   : > { %616 = vmatprep.subr.bf16.mxu0 %v2411_v21  ;;  %1874 = vmatmul.mubr.bf16.vlgmr.msra.gmra.mxu1 %v362_v42 }
  0x5f   : > { %1878 = vmatpush3.bf16.msra.mxu1 %v2432_v26  ;;  %1893 = vmatprep.mubr.msk.bf16.mxu1 %vm2273_vm0, %v2271_v19 }
  0x60   : > { %1879 = vmatprep.subr.bf16.mxu1 %v2271_v19 }
  0x61   : > { %617 = vmatpush1.bf16.msra.mxu0 %v2417_v22 }
  0x62   : > { %618 = vmatprep.subr.bf16.mxu0 %v2421_v23 }
  0x63   : > { %1880 = vmatpush3.bf16.msra.mxu1 %v2444_v29 }
  0x64   : > { %1881 = vmatprep.subr.bf16.mxu1 %v2271_v19 }
  0x65   : > { %619 = vmatpush1.bf16.msra.mxu0 %v2425_v24 }
  0x66   : > { %620 = vmatprep.subr.bf16.mxu0 %v2429_v25 }
  0x67   : > { %1882 = vmatpush3.bf16.msra.mxu1 %v2457_v32 }
  0x68   : > { %1883 = vmatprep.subr.bf16.mxu1 %v2271_v19 }
  0x69   : > { %621 = vmatpush1.bf16.msra.mxu0 %v2436_v27 }
  0x6a   : > { %622 = vmatprep.subr.bf16.mxu0 %v2440_v28 }
  0x6b   : > { %1884 = vmatpush3.bf16.msra.mxu1 %v2470_v35 }
  0x6c   : > { %1885 = vmatprep.subr.bf16.mxu1 %v2271_v19 }
  0x6d   : > { %623 = vmatpush1.bf16.msra.mxu0 %v2448_v30 }
  0x6e   : > { %624 = vmatprep.subr.bf16.mxu0 %v2452_v31 }
  0x6f   : > { %1886 = vmatpush3.bf16.msra.mxu1 %v2484_v38 }
  0x70   : > { %1887 = vmatprep.subr.bf16.mxu1 %v2271_v19 }
  0x71   : > { %625 = vmatpush1.bf16.msra.mxu0 %v2462_v33 }
  0x72   : > { %626 = vmatprep.subr.bf16.mxu0 %v2466_v34 }
  0x73   : > { %1888 = vmatpush3.bf16.msra.mxu1 %v2499_v41 }
  0x74   : > { %1889 = vmatprep.subr.bf16.mxu1 %v2271_v19 }
  0x75   : > { %627 = vmatpush1.bf16.msra.mxu0 %v2476_v36 }
  0x76   : > { %628 = vmatprep.subr.bf16.mxu0 %v2480_v37 }
  0x77   : > { %1890 = vmatpush3.bf16.msra.mxu1 %v2507_v43 }
  0x78   : > { %1891 = vmatprep.subr.bf16.mxu1 %v2271_v19 }
  0x79   : > { %629 = vmatpush1.bf16.msra.mxu0 %v2489_v39 }
  0x7a   : > { %731 = vmatprep.subr.bf16.mxu0 %v2402_v17 }
  0x7b   : > { %1892 = vmatpush3.bf16.msra.mxu1 %v2515_v44 }
  0x7c   : > { %1897 = vmatprep.subr.bf16.mxu1 %v2271_v19 }
 0x11c   : > { %v525_v47 = vpop.f32.mrf.mxu0 }
 0x11d   : > { %v572_v48 = vadd.f32 %v525_v47, %v359_v46 }
 0x11e   : > { %v527_v49 = vpop.f32.mrf.mxu0  ;;  %v566_v55 = vpop.f32.mrf.mxu1 }
 0x11f   : > { %v1725_v50 = vmul.f32 -1.442695, %v572_v48  ;;  %v579_v54 = vadd.f32 %v527_v49, %v360_v51  ;;  %v592_v2 = vadd.f32 %v2556_v63, %v566_v55  ;;  %v612_v48 = vunpack.c.h.bf16 %v1730_v14 }
 0x120   : > { %v529_v52 = vpop.f32.mrf.mxu0  ;;  %v1875_v57 = vpop.f32.mrf.mxu1 }
 0x121   : > { %2113 = vpow2.f32 %v1725_v50  ;;  %v1726_v56 = vmul.f32 -1.442695, %v579_v54 }
 0x122   : > { %v530_v53 = vpop.f32.mrf.mxu0  ;;  %v569_v58 = vpop.f32.mrf.mxu1 }
 0x123   : > { %2115 = vpow2.f32 %v1726_v56  ;;  %v1731_v58 = vld [vmem:[%s1552_s7 + $0x14] sm:$0xf] }
 0x124   : > { %v1876_v59 = vpop.f32.mrf.mxu1 }
 0x12e   : > { %v2114_v60 = vpop.eup %2113 }
 0x12f   : > { %v576_v61 = vadd.f32 1.0, %v2114_v60  ;;  %v613_v60 = vunpack.c.l.bf16 %v1731_v58 }
 0x130   : > { %v2116_v62 = vpop.eup %2115 }
 0x131   : > { %2117 = vrcp.f32 %v576_v61  ;;  %v583_v1 = vadd.f32 1.0, %v2116_v62 }
 0x133   : > { %2119 = vrcp.f32 %v583_v1 }
 0x13e   : > { %v2118_v4 = vpop.eup %2117 }
 0x13f   : > { %v593_v5 = vmul.f32 %v2118_v4, %v592_v2 }
 0x140   : > { %v2120_v7 = vpop.eup %2119 }
 0x141   : > { %v594_v6 = vadd.f32 %v593_v5, %v361_v3  ;;  %v596_v8 = vsub.f32 1.0, %v2120_v7  ;;  %v598_v11 = vmul.f32 %v2120_v7, %v2494_v40 }
 0x143   : > { %2121 = vtanh.f32 %v594_v6 }
 0x150   : > { %v2122_v9 = vpop.eup %2121 }
 0x151   : > { %v597_v10 = vmul.f32 %v2122_v9, %v596_v8  ;;  %v1737_v9 = vld [vmem:[%s1560_s12 + $0x18] sm:$0xff] }
 0x153   : > { %v2561_v12 = vadd.f32 %v598_v11, %v597_v10  ;;  %v728_v10 = vunpack.c.l.bf16 %v1737_v9 }
 0x155   : > { %v600_v13 = vpack.c.bf16 %v2561_v12, %v2561_v12 }
 0x157   : > { %603 = vst [vmem:[%s602_s4] sm:$0xf] %v600_v13  ;;  %647 = vmatmul.mubr.bf16.vlgmr.msra.gmra.mxu0 %v600_v13  ;;  %1894 = vmatmul.mubr.bf16.vlgmr.msra.gmra.mxu1 %v600_v13  ;;  %s954_s4 = ssub.s32 4, %s2256_s15 }
 0x158   : > { %732 = vmatpush1.bf16.msra.mxu0 %v2405_v18  ;;  %1898 = vmatpush3.bf16.msra.mxu1 %v2432_v26  ;;  %s1783_s6 = smul.u32 12, %s954_s4  ;;  %s1752_s9 = sshll.u32 %s954_s4, 2 }
 0x159   : > { %733 = vmatprep.subr.bf16.mxu0 %v2411_v21  ;;  %1899 = vmatprep.subr.bf16.mxu1 %v2271_v19  ;;  %s1767_s4 = smul.u32 4294967212, %s2256_s15 }
 0x15a   : > { %763 = vmatprep.mubr.bf16.mxu0 %v2272_v20  ;;  %1913 = vmatprep.mubr.msk.bf16.mxu1 %vm2273_vm0, %v2271_v19  ;;  %s957_s7 = scalar_lea.vmem %s2395_s23, %s1783_s6 [#allocation3] }
 0x15b   : > { %s1594_s6 = scalar_lea.vmem %s2395_s23, %s1767_s4 [#allocation3] }
 0x15c   : > { %734 = vmatpush1.bf16.msra.mxu0 %v2417_v22  ;;  %1900 = vmatpush3.bf16.msra.mxu1 %v2444_v29 }
 0x15d   : > { %735 = vmatprep.subr.bf16.mxu0 %v2421_v23  ;;  %1901 = vmatprep.subr.bf16.mxu1 %v2271_v19 }
 0x160   : > { %736 = vmatpush1.bf16.msra.mxu0 %v2425_v24  ;;  %1902 = vmatpush3.bf16.msra.mxu1 %v2457_v32 }
 0x161   : > { %737 = vmatprep.subr.bf16.mxu0 %v2429_v25  ;;  %1903 = vmatprep.subr.bf16.mxu1 %v2271_v19 }
 0x164   : > { %738 = vmatpush1.bf16.msra.mxu0 %v2436_v27  ;;  %1904 = vmatpush3.bf16.msra.mxu1 %v2470_v35 }
 0x165   : > { %739 = vmatprep.subr.bf16.mxu0 %v2440_v28  ;;  %1905 = vmatprep.subr.bf16.mxu1 %v2271_v19 }
 0x168   : > { %740 = vmatpush1.bf16.msra.mxu0 %v2448_v30  ;;  %1906 = vmatpush3.bf16.msra.mxu1 %v2484_v38 }
 0x169   : > { %741 = vmatprep.subr.bf16.mxu0 %v2452_v31  ;;  %1907 = vmatprep.subr.bf16.mxu1 %v2271_v19 }
 0x16c   : > { %742 = vmatpush1.bf16.msra.mxu0 %v2462_v33  ;;  %1908 = vmatpush3.bf16.msra.mxu1 %v2499_v41 }
 0x16d   : > { %743 = vmatprep.subr.bf16.mxu0 %v2466_v34  ;;  %1909 = vmatprep.subr.bf16.mxu1 %v2271_v19 }
 0x170   : > { %744 = vmatpush1.bf16.msra.mxu0 %v2476_v36  ;;  %1910 = vmatpush3.bf16.msra.mxu1 %v2507_v43 }
 0x171   : > { %745 = vmatprep.subr.bf16.mxu0 %v2480_v37  ;;  %1911 = vmatprep.subr.bf16.mxu1 %v2271_v19 }
 0x174   : > { %746 = vmatpush1.bf16.msra.mxu0 %v2489_v39  ;;  %1912 = vmatpush3.bf16.msra.mxu1 %v2515_v44 }
 0x175   : > { %847 = vmatprep.subr.bf16.mxu0 %v2402_v17  ;;  %1917 = vmatprep.subr.bf16.mxu1 %v2271_v19 }
 0x217   : > { %v648_v16 = vpop.f32.mrf.mxu0  ;;  %v689_v40 = vpop.f32.mrf.mxu1 }
 0x218   : > { %v695_v42 = vadd.f32 %v648_v16, %v611_v15  ;;  %v709_v61 = vadd.f32 %v2556_v63, %v689_v40  ;;  %v729_v40 = vunpack.c.h.bf16 %v1737_v9 }
 0x219   : > { %v650_v45 = vpop.f32.mrf.mxu0  ;;  %v1895_v46 = vpop.f32.mrf.mxu1 }
 0x21a   : > { %v1732_v47 = vmul.f32 -1.442695, %v695_v42  ;;  %v702_v53 = vadd.f32 %v650_v45, %v612_v48 }
 0x21b   : > { %v652_v49 = vpop.f32.mrf.mxu0  ;;  %v692_v50 = vpop.f32.mrf.mxu1 }
 0x21c   : > { %2123 = vpow2.f32 %v1732_v47  ;;  %v1733_v54 = vmul.f32 -1.442695, %v702_v53  ;;  %v1738_v53 = vld [vmem:[%s1560_s12 + $0x20] sm:$0xf]  ;;  %s1578_s12 = scalar_lea.vmem %s2395_s23, %s1753_s21 [#allocation3] }
 0x21d   : > { %v653_v51 = vpop.f32.mrf.mxu0  ;;  %v1896_v52 = vpop.f32.mrf.mxu1 }
 0x21e   : > { %2125 = vpow2.f32 %v1733_v54 }
 0x229   : > { %v2124_v55 = vpop.eup %2123 }
 0x22a   : > { %v699_v56 = vadd.f32 1.0, %v2124_v55  ;;  %v730_v55 = vunpack.c.l.bf16 %v1738_v53 }
 0x22b   : > { %v2126_v57 = vpop.eup %2125 }
 0x22c   : > { %2127 = vrcp.f32 %v699_v56  ;;  %v706_v59 = vadd.f32 1.0, %v2126_v57 }
 0x22e   : > { %2129 = vrcp.f32 %v706_v59 }
 0x239   : > { %v2128_v62 = vpop.eup %2127 }
 0x23a   : > { %v710_v0 = vmul.f32 %v2128_v62, %v709_v61 }
 0x23b   : > { %v2130_v2 = vpop.eup %2129 }
 0x23c   : > { %v711_v1 = vadd.f32 %v710_v0, %v613_v60  ;;  %v713_v3 = vsub.f32 1.0, %v2130_v2  ;;  %v715_v6 = vmul.f32 %v2130_v2, %v2561_v12 }
 0x23e   : > { %2131 = vtanh.f32 %v711_v1 }
 0x24b   : > { %v2132_v4 = vpop.eup %2131 }
 0x24c   : > { %v714_v5 = vmul.f32 %v2132_v4, %v713_v3  ;;  %v1743_v4 = vld [vmem:[%s1567_s28 + $0x24] sm:$0xff] }
 0x24e   : > { %v2606_v7 = vadd.f32 %v715_v6, %v714_v5  ;;  %v844_v5 = vunpack.c.l.bf16 %v1743_v4 }
 0x250   : > { %v717_v8 = vpack.c.bf16 %v2606_v7, %v2606_v7 }
 0x252   : > { %1735 = vst [vmem:[%s1556_s11 + $0x4] sm:$0xf] %v717_v8  ;;  %764 = vmatmul.mubr.bf16.vlgmr.msra.gmra.mxu0 %v717_v8  ;;  %1914 = vmatmul.mubr.bf16.vlgmr.msra.gmra.mxu1 %v717_v8  ;;  %s1068_s11 = scalar_lea.vmem %s2397_s24, %s1752_s9 [#allocation4] }
 0x253   : > { %848 = vmatpush1.bf16.msra.mxu0 %v2405_v18  ;;  %1918 = vmatpush3.bf16.msra.mxu1 %v2432_v26 }
 0x254   : > { %849 = vmatprep.subr.bf16.mxu0 %v2411_v21  ;;  %1919 = vmatprep.subr.bf16.mxu1 %v2271_v19 }
 0x255   : > { %879 = vmatprep.mubr.bf16.mxu0 %v2272_v20  ;;  %1933 = vmatprep.mubr.msk.bf16.mxu1 %vm2273_vm0, %v2271_v19 }
 0x257   : > { %850 = vmatpush1.bf16.msra.mxu0 %v2417_v22  ;;  %1920 = vmatpush3.bf16.msra.mxu1 %v2444_v29 }
 0x258   : > { %851 = vmatprep.subr.bf16.mxu0 %v2421_v23  ;;  %1921 = vmatprep.subr.bf16.mxu1 %v2271_v19 }
 0x25b   : > { %852 = vmatpush1.bf16.msra.mxu0 %v2425_v24  ;;  %1922 = vmatpush3.bf16.msra.mxu1 %v2457_v32 }
 0x25c   : > { %853 = vmatprep.subr.bf16.mxu0 %v2429_v25  ;;  %1923 = vmatprep.subr.bf16.mxu1 %v2271_v19 }
 0x25f   : > { %854 = vmatpush1.bf16.msra.mxu0 %v2436_v27  ;;  %1924 = vmatpush3.bf16.msra.mxu1 %v2470_v35 }
 0x260   : > { %855 = vmatprep.subr.bf16.mxu0 %v2440_v28  ;;  %1925 = vmatprep.subr.bf16.mxu1 %v2271_v19 }
 0x263   : > { %856 = vmatpush1.bf16.msra.mxu0 %v2448_v30  ;;  %1926 = vmatpush3.bf16.msra.mxu1 %v2484_v38 }
 0x264   : > { %857 = vmatprep.subr.bf16.mxu0 %v2452_v31  ;;  %1927 = vmatprep.subr.bf16.mxu1 %v2271_v19 }
 0x267   : > { %858 = vmatpush1.bf16.msra.mxu0 %v2462_v33  ;;  %1928 = vmatpush3.bf16.msra.mxu1 %v2499_v41 }
 0x268   : > { %859 = vmatprep.subr.bf16.mxu0 %v2466_v34  ;;  %1929 = vmatprep.subr.bf16.mxu1 %v2271_v19 }
 0x26b   : > { %860 = vmatpush1.bf16.msra.mxu0 %v2476_v36  ;;  %1930 = vmatpush3.bf16.msra.mxu1 %v2507_v43 }
 0x26c   : > { %861 = vmatprep.subr.bf16.mxu0 %v2480_v37  ;;  %1931 = vmatprep.subr.bf16.mxu1 %v2271_v19 }
 0x26f   : > { %862 = vmatpush1.bf16.msra.mxu0 %v2489_v39  ;;  %1932 = vmatpush3.bf16.msra.mxu1 %v2515_v44 }
 0x270   : > { %963 = vmatprep.subr.bf16.mxu0 %v2402_v17  ;;  %1937 = vmatprep.subr.bf16.mxu1 %v2271_v19 }
 0x312   : > { %v765_v11 = vpop.f32.mrf.mxu0  ;;  %v806_v12 = vpop.f32.mrf.mxu1 }
 0x313   : > { %v812_v13 = vadd.f32 %v765_v11, %v728_v10  ;;  %v826_v56 = vadd.f32 %v2556_v63, %v806_v12  ;;  %v845_v12 = vunpack.c.h.bf16 %v1743_v4 }
 0x314   : > { %v767_v14 = vpop.f32.mrf.mxu0  ;;  %v1915_v15 = vpop.f32.mrf.mxu1 }
 0x315   : > { %v1739_v16 = vmul.f32 -1.442695, %v812_v13  ;;  %v819_v48 = vadd.f32 %v767_v14, %v729_v40 }
 0x316   : > { %v769_v42 = vpop.f32.mrf.mxu0  ;;  %v809_v45 = vpop.f32.mrf.mxu1 }
 0x317   : > { %2133 = vpow2.f32 %v1739_v16  ;;  %v1740_v49 = vmul.f32 -1.442695, %v819_v48  ;;  %v1744_v48 = vld [vmem:[%s1567_s28 + $0x2c] sm:$0xf]  ;;  %s1760_s28 = smul.u32 4294967236, %s2256_s15 }
 0x318   : > { %v770_v46 = vpop.f32.mrf.mxu0  ;;  %v1916_v47 = vpop.f32.mrf.mxu1 }
 0x319   : > { %2135 = vpow2.f32 %v1740_v49  ;;  %s1586_s29 = scalar_lea.vmem %s2395_s23, %s1760_s28 [#allocation3]  ;;  %s1772_s23 = smul.u32 4294967268, %s2256_s15 }
 0x324   : > { %v2134_v50 = vpop.eup %2133 }
 0x325   : > { %v816_v51 = vadd.f32 1.0, %v2134_v50  ;;  %v846_v50 = vunpack.c.l.bf16 %v1744_v48 }
 0x326   : > { %v2136_v52 = vpop.eup %2135 }
 0x327   : > { %2137 = vrcp.f32 %v816_v51  ;;  %v823_v54 = vadd.f32 1.0, %v2136_v52 }
 0x329   : > { %2139 = vrcp.f32 %v823_v54 }
 0x334   : > { %v2138_v57 = vpop.eup %2137 }
 0x335   : > { %v827_v58 = vmul.f32 %v2138_v57, %v826_v56 }
 0x336   : > { %v2140_v60 = vpop.eup %2139 }
 0x337   : > { %v828_v59 = vadd.f32 %v827_v58, %v730_v55  ;;  %v830_v61 = vsub.f32 1.0, %v2140_v60  ;;  %v832_v1 = vmul.f32 %v2140_v60, %v2606_v7 }
 0x339   : > { %2141 = vtanh.f32 %v828_v59 }
 0x346   : > { %v2142_v62 = vpop.eup %2141 }
 0x347   : > { %v831_v0 = vmul.f32 %v2142_v62, %v830_v61  ;;  %v958_v62 = vld [vmem:[%s957_s7] sm:$0xff] }
 0x349   : > { %v2651_v2 = vadd.f32 %v832_v1, %v831_v0  ;;  %v960_v0 = vunpack.c.l.bf16 %v958_v62 }
 0x34b   : > { %v834_v3 = vpack.c.bf16 %v2651_v2, %v2651_v2 }
 0x34d   : > { %880 = vmatmul.mubr.bf16.vlgmr.msra.gmra.mxu0 %v834_v3  ;;  %1934 = vmatmul.mubr.bf16.vlgmr.msra.gmra.mxu1 %v834_v3  ;;  %1742 = vst [vmem:[%s1564_s26 + $0x8] sm:$0xf] %v834_v3  ;;  %s1582_s26 = scalar_lea.vmem %s2397_s24, %s1758_s25 [#allocation4] }
 0x34e   : > { %964 = vmatpush1.bf16.msra.mxu0 %v2405_v18  ;;  %1938 = vmatpush3.bf16.msra.mxu1 %v2432_v26 }
 0x34f   : > { %965 = vmatprep.subr.bf16.mxu0 %v2411_v21  ;;  %1939 = vmatprep.subr.bf16.mxu1 %v2271_v19 }
 0x350   : > { %995 = vmatprep.mubr.bf16.mxu0 %v2272_v20  ;;  %1953 = vmatprep.mubr.msk.bf16.mxu1 %vm2273_vm0, %v2271_v19 }
 0x352   : > { %966 = vmatpush1.bf16.msra.mxu0 %v2417_v22  ;;  %1940 = vmatpush3.bf16.msra.mxu1 %v2444_v29 }
 0x353   : > { %967 = vmatprep.subr.bf16.mxu0 %v2421_v23  ;;  %1941 = vmatprep.subr.bf16.mxu1 %v2271_v19 }
 0x356   : > { %968 = vmatpush1.bf16.msra.mxu0 %v2425_v24  ;;  %1942 = vmatpush3.bf16.msra.mxu1 %v2457_v32 }
 0x357   : > { %969 = vmatprep.subr.bf16.mxu0 %v2429_v25  ;;  %1943 = vmatprep.subr.bf16.mxu1 %v2271_v19 }
 0x35a   : > { %970 = vmatpush1.bf16.msra.mxu0 %v2436_v27  ;;  %1944 = vmatpush3.bf16.msra.mxu1 %v2470_v35 }
 0x35b   : > { %971 = vmatprep.subr.bf16.mxu0 %v2440_v28  ;;  %1945 = vmatprep.subr.bf16.mxu1 %v2271_v19 }
 0x35e   : > { %972 = vmatpush1.bf16.msra.mxu0 %v2448_v30  ;;  %1946 = vmatpush3.bf16.msra.mxu1 %v2484_v38 }
 0x35f   : > { %973 = vmatprep.subr.bf16.mxu0 %v2452_v31  ;;  %1947 = vmatprep.subr.bf16.mxu1 %v2271_v19 }
 0x362   : > { %974 = vmatpush1.bf16.msra.mxu0 %v2462_v33  ;;  %1948 = vmatpush3.bf16.msra.mxu1 %v2499_v41 }
 0x363   : > { %975 = vmatprep.subr.bf16.mxu0 %v2466_v34  ;;  %1949 = vmatprep.subr.bf16.mxu1 %v2271_v19 }
 0x366   : > { %976 = vmatpush1.bf16.msra.mxu0 %v2476_v36  ;;  %1950 = vmatpush3.bf16.msra.mxu1 %v2507_v43 }
 0x367   : > { %977 = vmatprep.subr.bf16.mxu0 %v2480_v37  ;;  %1951 = vmatprep.subr.bf16.mxu1 %v2271_v19 }
 0x36a   : > { %978 = vmatpush1.bf16.msra.mxu0 %v2489_v39  ;;  %1952 = vmatpush3.bf16.msra.mxu1 %v2515_v44 }
 0x36b   : > { %1080 = vmatprep.subr.bf16.mxu0 %v2402_v17  ;;  %1957 = vmatprep.subr.bf16.mxu1 %v2271_v19 }
 0x40d   : > { %v881_v6 = vpop.f32.mrf.mxu0  ;;  %v922_v7 = vpop.f32.mrf.mxu1 }
 0x40e   : > { %v928_v8 = vadd.f32 %v881_v6, %v844_v5  ;;  %v942_v51 = vadd.f32 %v2556_v63, %v922_v7  ;;  %v961_v7 = vunpack.c.h.bf16 %v958_v62 }
 0x40f   : > { %v883_v9 = vpop.f32.mrf.mxu0  ;;  %v1935_v10 = vpop.f32.mrf.mxu1 }
 0x410   : > { %v1745_v11 = vmul.f32 -1.442695, %v928_v8  ;;  %v935_v40 = vadd.f32 %v883_v9, %v845_v12 }
 0x411   : > { %v885_v13 = vpop.f32.mrf.mxu0  ;;  %v925_v14 = vpop.f32.mrf.mxu1 }
 0x412   : > { %2143 = vpow2.f32 %v1745_v11  ;;  %v1746_v42 = vmul.f32 -1.442695, %v935_v40 }
 0x413   : > { %v886_v15 = vpop.f32.mrf.mxu0  ;;  %v1936_v16 = vpop.f32.mrf.mxu1 }
 0x414   : > { %2145 = vpow2.f32 %v1746_v42  ;;  %v959_v16 = vld [vmem:[%s957_s7 + $0x8] sm:$0xf]  ;;  %s1598_s7 = scalar_lea.vmem %s2397_s24, %s1772_s23 [#allocation4] }
 0x415   : > { %v962_v42 = vunpack.c.l.bf16 %v959_v16  ;;  %v2205_v16 = vld [vmem:[%s2393_s22 + $0x4c] ss:$12 sps:$4 sm:$0xff]  }
 0x41f   : > { %v2144_v45 = vpop.eup %2143 }
 0x420   : > { %v932_v46 = vadd.f32 1.0, %v2144_v45 }
 0x421   : > { %v2146_v47 = vpop.eup %2145 }
 0x422   : > { %2147 = vrcp.f32 %v932_v46  ;;  %v939_v49 = vadd.f32 1.0, %v2146_v47 }
 0x424   : > { %2149 = vrcp.f32 %v939_v49 }
 0x42f   : > { %v2148_v52 = vpop.eup %2147 }
 0x430   : > { %v943_v53 = vmul.f32 %v2148_v52, %v942_v51 }
 0x431   : > { %v2150_v55 = vpop.eup %2149 }
 0x432   : > { %v944_v54 = vadd.f32 %v943_v53, %v846_v50  ;;  %v946_v56 = vsub.f32 1.0, %v2150_v55  ;;  %v948_v59 = vmul.f32 %v2150_v55, %v2651_v2 }
 0x434   : > { %2151 = vtanh.f32 %v944_v54 }
 0x441   : > { %v2152_v57 = vpop.eup %2151 }
 0x442   : > { %v947_v58 = vmul.f32 %v2152_v57, %v946_v56  ;;  %v1755_v56 = vld [vmem:[%s1578_s12 + $0x44] sm:$0xf] }
 0x444   : > { %v2699_v60 = vadd.f32 %v948_v59, %v947_v58  ;;  %v1079_v58 = vunpack.c.l.bf16 %v1755_v56 }
 0x446   : > { %v950_v61 = vpack.c.bf16 %v2699_v60, %v2699_v60 }
 0x448   : > { %1748 = vst [vmem:[%s1570_s30 + $0xc] sm:$0xf] %v950_v61  ;;  %996 = vmatmul.mubr.bf16.vlgmr.msra.gmra.mxu0 %v950_v61  ;;  %1954 = vmatmul.mubr.bf16.vlgmr.msra.gmra.mxu1 %v950_v61 }
 0x449   : > { %1081 = vmatpush1.bf16.msra.mxu0 %v2405_v18  ;;  %1958 = vmatpush3.bf16.msra.mxu1 %v2432_v26 }
 0x44a   : > { %1082 = vmatprep.subr.bf16.mxu0 %v2411_v21  ;;  %1959 = vmatprep.subr.bf16.mxu1 %v2271_v19 }
 0x44b   : > { %1112 = vmatprep.mubr.bf16.mxu0 %v2272_v20  ;;  %1973 = vmatprep.mubr.msk.bf16.mxu1 %vm2273_vm0, %v2271_v19 }
 0x44d   : > { %1083 = vmatpush1.bf16.msra.mxu0 %v2417_v22  ;;  %1960 = vmatpush3.bf16.msra.mxu1 %v2444_v29 }
 0x44e   : > { %1084 = vmatprep.subr.bf16.mxu0 %v2421_v23  ;;  %1961 = vmatprep.subr.bf16.mxu1 %v2271_v19 }
 0x451   : > { %1085 = vmatpush1.bf16.msra.mxu0 %v2425_v24  ;;  %1962 = vmatpush3.bf16.msra.mxu1 %v2457_v32 }
 0x452   : > { %1086 = vmatprep.subr.bf16.mxu0 %v2429_v25  ;;  %1963 = vmatprep.subr.bf16.mxu1 %v2271_v19 }
 0x455   : > { %1087 = vmatpush1.bf16.msra.mxu0 %v2436_v27  ;;  %1964 = vmatpush3.bf16.msra.mxu1 %v2470_v35 }
 0x456   : > { %1088 = vmatprep.subr.bf16.mxu0 %v2440_v28  ;;  %1965 = vmatprep.subr.bf16.mxu1 %v2271_v19 }
 0x459   : > { %1089 = vmatpush1.bf16.msra.mxu0 %v2448_v30  ;;  %1966 = vmatpush3.bf16.msra.mxu1 %v2484_v38 }
 0x45a   : > { %1090 = vmatprep.subr.bf16.mxu0 %v2452_v31  ;;  %1967 = vmatprep.subr.bf16.mxu1 %v2271_v19 }
 0x45d   : > { %1091 = vmatpush1.bf16.msra.mxu0 %v2462_v33  ;;  %1968 = vmatpush3.bf16.msra.mxu1 %v2499_v41 }
 0x45e   : > { %1092 = vmatprep.subr.bf16.mxu0 %v2466_v34  ;;  %1969 = vmatprep.subr.bf16.mxu1 %v2271_v19 }
 0x461   : > { %1093 = vmatpush1.bf16.msra.mxu0 %v2476_v36  ;;  %1970 = vmatpush3.bf16.msra.mxu1 %v2507_v43 }
 0x462   : > { %1094 = vmatprep.subr.bf16.mxu0 %v2480_v37  ;;  %1971 = vmatprep.subr.bf16.mxu1 %v2271_v19 }
 0x465   : > { %1095 = vmatpush1.bf16.msra.mxu0 %v2489_v39  ;;  %1972 = vmatpush3.bf16.msra.mxu1 %v2515_v44 }
 0x466   : > { %1197 = vmatprep.subr.bf16.mxu0 %v2402_v17  ;;  %1977 = vmatprep.subr.bf16.mxu1 %v2271_v19 }
 0x508   : > { %v997_v1 = vpop.f32.mrf.mxu0  ;;  %v1038_v2 = vpop.f32.mrf.mxu1 }
 0x509   : > { %v1044_v3 = vadd.f32 %v997_v1, %v960_v0  ;;  %v1058_v45 = vadd.f32 %v2556_v63, %v1038_v2 }
 0x50a   : > { %v999_v4 = vpop.f32.mrf.mxu0  ;;  %v1955_v5 = vpop.f32.mrf.mxu1 }
 0x50b   : > { %v1750_v6 = vmul.f32 -1.442695, %v1044_v3  ;;  %v1051_v11 = vadd.f32 %v999_v4, %v961_v7  ;;  %v2194_v7 = vld [vmem:[%s2393_s22 + $0xa8] ss:$12 sps:$4 sm:$0xff]  }
 0x50c   : > { %v1001_v8 = vpop.f32.mrf.mxu0  ;;  %v1041_v9 = vpop.f32.mrf.mxu1 }
 0x50d   : > { %2153 = vpow2.f32 %v1750_v6  ;;  %v1751_v12 = vmul.f32 -1.442695, %v1051_v11  ;;  %v2195_v8 = vld [vmem:[%s2393_s22 + $0xb0] ss:$12 sps:$4 sm:$0xff]   ;;  %v2196_v9 = vld [vmem:[%s2393_s22 + $0x94] ss:$12 sps:$4 sm:$0xff]  }
 0x50e   : > { %v1002_v10 = vpop.f32.mrf.mxu0  ;;  %v1956_v17 = vpop.f32.mrf.mxu1  ;;  %v2199_v11 = vld [vmem:[%s2393_s22 + $0x7c] ss:$12 sps:$4 sm:$0xff]  }
 0x50f   : > { %2155 = vpow2.f32 %v1751_v12  ;;  %v2197_v10 = vld [vmem:[%s2393_s22 + $0x90] ss:$12 sps:$4 sm:$0xff]   ;;  %v2198_v17 = vld [vmem:[%s2393_s22 + $0x98] ss:$12 sps:$4 sm:$0xff]  }
 0x510   : > { %v2200_v12 = vld [vmem:[%s2393_s22 + $0x78] ss:$12 sps:$4 sm:$0xff]  }
 0x51a   : > { %v2154_v13 = vpop.eup %2153 }
 0x51b   : > { %v1048_v14 = vadd.f32 1.0, %v2154_v13  ;;  %v2201_v13 = vld [vmem:[%s2393_s22 + $0x80] ss:$12 sps:$4 sm:$0xff]  }
 0x51c   : > { %v2156_v15 = vpop.eup %2155 }
 0x51d   : > { %2157 = vrcp.f32 %v1048_v14  ;;  %v1055_v40 = vadd.f32 1.0, %v2156_v15  ;;  %v2203_v14 = vld [vmem:[%s2393_s22 + $0x60] ss:$12 sps:$4 sm:$0xff]   ;;  %v2204_v15 = vld [vmem:[%s2393_s22 + $0x68] ss:$12 sps:$4 sm:$0xff]  }
 0x51f   : > { %2159 = vrcp.f32 %v1055_v40  ;;  %v2206_v40 = vld [vmem:[%s2393_s22 + $0x48] ss:$12 sps:$4 sm:$0xff]  }
 0x52a   : > { %v2158_v46 = vpop.eup %2157 }
 0x52b   : > { %v1059_v47 = vmul.f32 %v2158_v46, %v1058_v45  ;;  %v2208_v45 = vld [vmem:[%s2393_s22 + $0x30] ss:$12 sps:$4 sm:$0xff]  }
 0x52c   : > { %v2160_v49 = vpop.eup %2159  ;;  %v2209_v46 = vld [vmem:[%s2393_s22 + $0x1c] ss:$12 sps:$4 sm:$0xff]  }
 0x52d   : > { %v1060_v48 = vadd.f32 %v1059_v47, %v962_v42  ;;  %v1062_v50 = vsub.f32 1.0, %v2160_v49  ;;  %v1064_v53 = vmul.f32 %v2160_v49, %v2699_v60  ;;  %v2207_v42 = vld [vmem:[%s2393_s22 + $0x34] ss:$12 sps:$4 sm:$0xff]   ;;  %v2210_v47 = vld [vmem:[%s2393_s22 + $0x18] ss:$12 sps:$4 sm:$0xff]   ;;  %v1761_v49 = vld [vmem:[%s1586_s29 + $0x48] sm:$0xff] }
 0x52f   : > { %2161 = vtanh.f32 %v1060_v48  ;;  %v2212_v48 = vld [vmem:[%s2393_s22] ss:$12 sps:$4 sm:$0xff]  }
 0x53c   : > { %v2162_v51 = vpop.eup %2161 }
 0x53d   : > { %v1063_v52 = vmul.f32 %v2162_v51, %v1062_v50 }
 0x53f   : > { %v2747_v54 = vadd.f32 %v1064_v53, %v1063_v52 }
 0x541   : > { %v1066_v55 = vpack.c.bf16 %v2747_v54, %v2747_v54 }
 0x543   : > { %1069 = vst [vmem:[%s1068_s11] sm:$0xf] %v1066_v55  ;;  %1113 = vmatmul.mubr.bf16.vlgmr.msra.gmra.mxu0 %v1066_v55  ;;  %1974 = vmatmul.mubr.bf16.vlgmr.msra.gmra.mxu1 %v1066_v55 }
 0x544   : > { %1198 = vmatpush1.bf16.msra.mxu0 %v2405_v18  ;;  %1978 = vmatpush3.bf16.msra.mxu1 %v2432_v26  ;;  %v2193_v18 = vld [vmem:[%s2393_s22 + $0xac] ss:$12 sps:$4 sm:$0xff]  }
 0x545   : > { %1199 = vmatprep.subr.bf16.mxu0 %v2411_v21  ;;  %1979 = vmatprep.subr.bf16.mxu1 %v2271_v19  ;;  %v1754_v21 = vld [vmem:[%s1578_s12 + $0x3c] sm:$0xff] }
 0x546   : > { %1229 = vmatprep.mubr.bf16.mxu0 %v2272_v20  ;;  %1993 = vmatprep.mubr.msk.bf16.mxu1 %vm2273_vm0, %v2271_v19 }
 0x548   : > { %1200 = vmatpush1.bf16.msra.mxu0 %v2417_v22  ;;  %1980 = vmatpush3.bf16.msra.mxu1 %v2444_v29  ;;  %v1077_v22 = vunpack.c.l.bf16 %v1754_v21  ;;  %v1078_v29 = vunpack.c.h.bf16 %v1754_v21 }
 0x549   : > { %1201 = vmatprep.subr.bf16.mxu0 %v2421_v23  ;;  %1981 = vmatprep.subr.bf16.mxu1 %v2271_v19 }
 0x54c   : > { %1202 = vmatpush1.bf16.msra.mxu0 %v2425_v24  ;;  %1982 = vmatpush3.bf16.msra.mxu1 %v2457_v32 }
 0x54d   : > { %1203 = vmatprep.subr.bf16.mxu0 %v2429_v25  ;;  %1983 = vmatprep.subr.bf16.mxu1 %v2271_v19 }
 0x550   : > { %1204 = vmatpush1.bf16.msra.mxu0 %v2436_v27  ;;  %1984 = vmatpush3.bf16.msra.mxu1 %v2470_v35 }
 0x551   : > { %1205 = vmatprep.subr.bf16.mxu0 %v2440_v28  ;;  %1985 = vmatprep.subr.bf16.mxu1 %v2271_v19 }
 0x554   : > { %1206 = vmatpush1.bf16.msra.mxu0 %v2448_v30  ;;  %1986 = vmatpush3.bf16.msra.mxu1 %v2484_v38 }
 0x555   : > { %1207 = vmatprep.subr.bf16.mxu0 %v2452_v31  ;;  %1987 = vmatprep.subr.bf16.mxu1 %v2271_v19 }
 0x558   : > { %1208 = vmatpush1.bf16.msra.mxu0 %v2462_v33  ;;  %1988 = vmatpush3.bf16.msra.mxu1 %v2499_v41 }
 0x559   : > { %1209 = vmatprep.subr.bf16.mxu0 %v2466_v34  ;;  %1989 = vmatprep.subr.bf16.mxu1 %v2271_v19 }
 0x55c   : > { %1210 = vmatpush1.bf16.msra.mxu0 %v2476_v36  ;;  %1990 = vmatpush3.bf16.msra.mxu1 %v2507_v43 }
 0x55d   : > { %1211 = vmatprep.subr.bf16.mxu0 %v2480_v37  ;;  %1991 = vmatprep.subr.bf16.mxu1 %v2271_v19 }
 0x560   : > { %1212 = vmatpush1.bf16.msra.mxu0 %v2489_v39  ;;  %1992 = vmatpush3.bf16.msra.mxu1 %v2515_v44 }
 0x561   : > { %1314 = vmatprep.subr.bf16.mxu0 %v2193_v18  ;;  %1997 = vmatprep.subr.bf16.mxu1 %v2271_v19  ;;  %v1195_v18 = vunpack.c.h.bf16 %v1761_v49 }
 0x603   : > { %v1114_v23 = vpop.f32.mrf.mxu0  ;;  %v1155_v24 = vpop.f32.mrf.mxu1 }
 0x604   : > { %v1161_v25 = vadd.f32 %v1114_v23, %v1077_v22  ;;  %v1175_v59 = vadd.f32 %v2556_v63, %v1155_v24 }
 0x605   : > { %v1116_v26 = vpop.f32.mrf.mxu0  ;;  %v1975_v27 = vpop.f32.mrf.mxu1 }
 0x606   : > { %v1756_v28 = vmul.f32 -1.442695, %v1161_v25  ;;  %v1168_v34 = vadd.f32 %v1116_v26, %v1078_v29  ;;  %v1762_v27 = vld [vmem:[%s1586_s29 + $0x50] sm:$0xf] }
 0x607   : > { %v1118_v30 = vpop.f32.mrf.mxu0  ;;  %v1158_v31 = vpop.f32.mrf.mxu1  ;;  %v1196_v29 = vunpack.c.l.bf16 %v1762_v27 }
 0x608   : > { %2163 = vpow2.f32 %v1756_v28  ;;  %v1757_v35 = vmul.f32 -1.442695, %v1168_v34 }
 0x609   : > { %v1119_v32 = vpop.f32.mrf.mxu0  ;;  %v1976_v33 = vpop.f32.mrf.mxu1 }
 0x60a   : > { %2165 = vpow2.f32 %v1757_v35 }
 0x615   : > { %v2164_v36 = vpop.eup %2163 }
 0x616   : > { %v1165_v37 = vadd.f32 1.0, %v2164_v36 }
 0x617   : > { %v2166_v39 = vpop.eup %2165 }
 0x618   : > { %2167 = vrcp.f32 %v1165_v37  ;;  %v1172_v57 = vadd.f32 1.0, %v2166_v39 }
 0x61a   : > { %2169 = vrcp.f32 %v1172_v57 }
 0x625   : > { %v2168_v60 = vpop.eup %2167 }
 0x626   : > { %v1176_v61 = vmul.f32 %v2168_v60, %v1175_v59 }
 0x627   : > { %v2170_v0 = vpop.eup %2169 }
 0x628   : > { %v1177_v62 = vadd.f32 %v1176_v61, %v1079_v58  ;;  %v1179_v1 = vsub.f32 1.0, %v2170_v0  ;;  %v1181_v4 = vmul.f32 %v2170_v0, %v2747_v54 }
 0x62a   : > { %2171 = vtanh.f32 %v1177_v62 }
 0x637   : > { %v2172_v2 = vpop.eup %2171 }
 0x638   : > { %v1180_v3 = vmul.f32 %v2172_v2, %v1179_v1 }
 0x63a   : > { %v2792_v5 = vadd.f32 %v1181_v4, %v1180_v3 }
 0x63c   : > { %v1183_v6 = vpack.c.bf16 %v2792_v5, %v2792_v5 }
 0x63e   : > { %1759 = vst [vmem:[%s1582_s26 + $0x14] sm:$0xf] %v1183_v6  ;;  %1230 = vmatmul.mubr.bf16.vlgmr.msra.gmra.mxu0 %v1183_v6  ;;  %1994 = vmatmul.mubr.bf16.vlgmr.msra.gmra.mxu1 %v1183_v6 }
 0x63f   : > { %1315 = vmatpush1.bf16.msra.mxu0 %v2194_v7  ;;  %1998 = vmatpush3.bf16.msra.mxu1 %v2195_v8 }
 0x640   : > { %1316 = vmatprep.subr.bf16.mxu0 %v2196_v9  ;;  %1999 = vmatprep.subr.bf16.mxu1 %v2271_v19 }
 0x641   : > { %1346 = vmatprep.mubr.bf16.mxu0 %v2272_v20  ;;  %2013 = vmatprep.mubr.msk.bf16.mxu1 %vm2273_vm0, %v2271_v19  ;;  %v2202_v20 = vld [vmem:[%s2393_s22 + $0x64] ss:$12 sps:$4 sm:$0xff]  }
 0x643   : > { %1317 = vmatpush1.bf16.msra.mxu0 %v2197_v10  ;;  %2000 = vmatpush3.bf16.msra.mxu1 %v2198_v17 }
 0x644   : > { %1318 = vmatprep.subr.bf16.mxu0 %v2199_v11  ;;  %2001 = vmatprep.subr.bf16.mxu1 %v2271_v19  ;;  %v1769_v11 = vld [vmem:[%s1594_s6 + $0x5c] sm:$0xf] }
 0x647   : > { %1319 = vmatpush1.bf16.msra.mxu0 %v2200_v12  ;;  %2002 = vmatpush3.bf16.msra.mxu1 %v2201_v13  ;;  %v1313_v13 = vunpack.c.l.bf16 %v1769_v11 }
 0x648   : > { %1320 = vmatprep.subr.bf16.mxu0 %v2202_v20  ;;  %2003 = vmatprep.subr.bf16.mxu1 %v2271_v19  ;;  %v2213_v20 = vld [vmem:[%s2388_s10] ss:$0 sm:$0xff]  ;;  %s1775_s10 = sshll.u32 (%p2348_p6), %s2252_s14, 1 }
 0x649   : > { %s1430_s9 = ssub.s32 (%p2348_p6), 3, %s1775_s10 }
 0x64a   : > { %s1431_s11 = smul.u32 (%p2348_p6), %s2256_s15, %s1430_s9 }
 0x64b   : > { %1321 = vmatpush1.bf16.msra.mxu0 %v2203_v14  ;;  %2004 = vmatpush3.bf16.msra.mxu1 %v2204_v15 }
 0x64c   : > { %1322 = vmatprep.subr.bf16.mxu0 %v2205_v16  ;;  %2005 = vmatprep.subr.bf16.mxu1 %v2271_v19 }
 0x64f   : > { %1323 = vmatpush1.bf16.msra.mxu0 %v2206_v40  ;;  %2006 = vmatpush3.bf16.msra.mxu1 %v2484_v38  ;;  %v2211_v38 = vld [vmem:[%s2393_s22 + $0x4] ss:$12 sps:$4 sm:$0xff]   ;;  %s1765_s22 = smul.u32 4294967276, %s2256_s15 }
 0x650   : > { %1324 = vmatprep.subr.bf16.mxu0 %v2207_v42  ;;  %2007 = vmatprep.subr.bf16.mxu1 %v2271_v19 }
 0x651   : > { %s1590_s30 = scalar_lea.vmem %s2397_s24, %s1765_s22 [#allocation4] }
 0x653   : > { %1325 = vmatpush1.bf16.msra.mxu0 %v2208_v45  ;;  %2008 = vmatpush3.bf16.msra.mxu1 %v2499_v41  ;;  %v1194_v41 = vunpack.c.l.bf16 %v1761_v49 }
 0x654   : > { %1326 = vmatprep.subr.bf16.mxu0 %v2209_v46  ;;  %2009 = vmatprep.subr.bf16.mxu1 %v2271_v19 }
 0x657   : > { %1327 = vmatpush1.bf16.msra.mxu0 %v2210_v47  ;;  %2010 = vmatpush3.bf16.msra.mxu1 %v2507_v43 }
 0x658   : > { %1328 = vmatprep.subr.bf16.mxu0 %v2211_v38  ;;  %2011 = vmatprep.subr.bf16.mxu1 %v2271_v19 }
 0x65b   : > { %1329 = vmatpush1.bf16.msra.mxu0 %v2212_v48  ;;  %2012 = vmatpush3.bf16.msra.mxu1 %v2515_v44 }
 0x6fe   : > { %v1231_v50 = vpop.f32.mrf.mxu0  ;;  %v1272_v51 = vpop.f32.mrf.mxu1 }
 0x6ff   : > { %v1278_v52 = vadd.f32 %v1231_v50, %v1194_v41  ;;  %v1292_v30 = vadd.f32 %v2556_v63, %v1272_v51  ;;  %v1768_v63 = vld [vmem:[%s1594_s6 + $0x54] sm:$0xff] }
 0x700   : > { %v1233_v53 = vpop.f32.mrf.mxu0  ;;  %v1995_v54 = vpop.f32.mrf.mxu1  ;;  %v1311_v58 = vunpack.c.l.bf16 %v1768_v63  ;;  %v1312_v2 = vunpack.c.h.bf16 %v1768_v63 }
 0x701   : > { %v1763_v55 = vmul.f32 -1.442695, %v1278_v52  ;;  %v1285_v23 = vadd.f32 %v1233_v53, %v1195_v18 }
 0x702   : > { %v1235_v43 = vpop.f32.mrf.mxu0  ;;  %v1275_v21 = vpop.f32.mrf.mxu1 }
 0x703   : > { %2173 = vpow2.f32 %v1763_v55  ;;  %v1764_v24 = vmul.f32 -1.442695, %v1285_v23 }
 0x704   : > { %v1236_v22 = vpop.f32.mrf.mxu0  ;;  %v1996_v19 = vpop.f32.mrf.mxu1 }
 0x705   : > { %2175 = vpow2.f32 %v1764_v24 }
 0x710   : > { %v2174_v44 = vpop.eup %2173 }
 0x711   : > { %v1282_v25 = vadd.f32 1.0, %v2174_v44 }
 0x712   : > { %v2176_v26 = vpop.eup %2175 }
 0x713   : > { %2177 = vrcp.f32 %v1282_v25  ;;  %v1289_v28 = vadd.f32 1.0, %v2176_v26 }
 0x715   : > { %2179 = vrcp.f32 %v1289_v28 }
 0x720   : > { %v2178_v31 = vpop.eup %2177 }
 0x721   : > { %v1293_v32 = vmul.f32 %v2178_v31, %v1292_v30 }
 0x722   : > { %v2180_v34 = vpop.eup %2179 }
 0x723   : > { %v1294_v33 = vadd.f32 %v1293_v32, %v1196_v29  ;;  %v1296_v35 = vsub.f32 1.0, %v2180_v34  ;;  %v1298_v39 = vmul.f32 %v2180_v34, %v2792_v5 }
 0x725   : > { %2181 = vtanh.f32 %v1294_v33 }
 0x732   : > { %v2182_v36 = vpop.eup %2181 }
 0x733   : > { %v1297_v37 = vmul.f32 %v2182_v36, %v1296_v35 }
 0x735   : > { %v1299_v56 = vadd.f32 %v1298_v39, %v1297_v37 }
 0x737   : > { %v1300_v57 = vpack.c.bf16 %v1299_v56, %v1299_v56 }
 0x739   : > { %1766 = vst [vmem:[%s1590_s30 + $0x18] sm:$0xf] %v1300_v57  ;;  %1347 = vmatmul.mubr.bf16.vlgmr.msra.gmra.mxu0 %v1300_v57  ;;  %2014 = vmatmul.mubr.bf16.vlgmr.msra.gmra.mxu1 %v1300_v57 }
 0x7f9   : > { %v1348_v59 = vpop.f32.mrf.mxu0  ;;  %v1389_v60 = vpop.f32.mrf.mxu1 }
 0x7fa   : > { %v1395_v61 = vadd.f32 %v1348_v59, %v1311_v58  ;;  %v1409_v14 = vadd.f32 %v2213_v20, %v1389_v60 }
 0x7fb   : > { %v1350_v62 = vpop.f32.mrf.mxu0  ;;  %v2015_v0 = vpop.f32.mrf.mxu1 }
 0x7fc   : > { %v1770_v1 = vmul.f32 -1.442695, %v1395_v61  ;;  %v1402_v7 = vadd.f32 %v1350_v62, %v1312_v2 }
 0x7fd   : > { %v1352_v3 = vpop.f32.mrf.mxu0  ;;  %v1392_v4 = vpop.f32.mrf.mxu1 }
 0x7fe   : > { %2183 = vpow2.f32 %v1770_v1  ;;  %v1771_v8 = vmul.f32 -1.442695, %v1402_v7 }
 0x7ff   : > { %v1353_v5 = vpop.f32.mrf.mxu0  ;;  %v2016_v6 = vpop.f32.mrf.mxu1 }
 0x800   : > { %2185 = vpow2.f32 %v1771_v8 }
 0x80b   : > { %v2184_v9 = vpop.eup %2183 }
 0x80c   : > { %v1399_v10 = vadd.f32 1.0, %v2184_v9 }
 0x80d   : > { %v2186_v17 = vpop.eup %2185 }
 0x80e   : > { %2187 = vrcp.f32 %v1399_v10  ;;  %v1406_v12 = vadd.f32 1.0, %v2186_v17 }
 0x810   : > { %2189 = vrcp.f32 %v1406_v12 }
 0x81b   : > { %v2188_v15 = vpop.eup %2187 }
 0x81c   : > { %v1410_v16 = vmul.f32 %v2188_v15, %v1409_v14 }
 0x81d   : > { %v2190_v42 = vpop.eup %2189 }
 0x81e   : > { %v1411_v40 = vadd.f32 %v1410_v16, %v1313_v13  ;;  %v1413_v45 = vsub.f32 1.0, %v2190_v42  ;;  %v1415_v38 = vmul.f32 %v2190_v42, %v1299_v56 }
 0x820   : > { %2191 = vtanh.f32 %v1411_v40 }
 0x82d   : > { %v2192_v46 = vpop.eup %2191 }
 0x82e   : > { %v1414_v47 = vmul.f32 %v2192_v46, %v1413_v45 }
 0x830   : > { %v1416_v48 = vadd.f32 %v1415_v38, %v1414_v47  ;;  %1428 = sbr.rel (!%p2348_p6) target bundleno = 2114 (0x842), region = 66 }
 0x832   : > { %v1417_v49 = vpack.c.bf16 %v1416_v48, %v1416_v48  ;;  %1421 = vst [vmem:[%s2491_s27] sm:$0xff] %v1416_v48  ;;  %s1432_s27 = sadd.s32 (%p2348_p6), %s2252_s14, %s1431_s11 }
 0x833   : > { %s1784_s5 = sshll.u32 (%p2348_p6), %s1432_s27, 4 }
 0x834   : > { %1773 = vst [vmem:[%s1598_s7 + $0x1c] sm:$0xf] %v1417_v49  ;;  %s1435_s21 = sadd.s32 (%p2348_p6), %s2256_s15, %s1784_s5 }
 0x835   : > { %s1778_s12 = sshll.u32 %s1435_s21, 2 }
 0x836   : > { %s1437_s28 = scalar_lea.vmem %s2883_s3, %s1778_s12 }
 0x83b   : > { %v1454_v41 = vld [vmem:[%s2397_s24] sm:$0xf]  ;;  %v1456_v50 = vld [vmem:[%s2397_s24 + $0x4] sm:$0xf]  ;;  %v1458_v51 = vld [vmem:[%s2397_s24 + $0x8] sm:$0xf] }
 0x83c   : > { %v1460_v52 = vld [vmem:[%s2397_s24 + $0xc] sm:$0xf]  ;;  %v1462_v53 = vld [vmem:[%s2397_s24 + $0x10] sm:$0xf]  ;;  %v1464_v54 = vld [vmem:[%s2397_s24 + $0x14] sm:$0xf] }
 0x83d   : > { %v1466_v55 = vld [vmem:[%s2397_s24 + $0x18] sm:$0xf]  ;;  %v1468_v18 = vld [vmem:[%s2397_s24 + $0x1c] sm:$0xf]  ;;  %1455 = vst [vmem:[%s1437_s28] sm:$0xf] %v1454_v41 }
 0x83e   : > { %1457 = vst [vmem:[%s1437_s28 + $0x8] sm:$0xf] %v1456_v50  ;;  %1459 = vst [vmem:[%s1437_s28 + $0x10] sm:$0xf] %v1458_v51 }
 0x83f   : > { %1461 = vst [vmem:[%s1437_s28 + $0x18] sm:$0xf] %v1460_v52  ;;  %1463 = vst [vmem:[%s1437_s28 + $0x20] sm:$0xf] %v1462_v53 }
 0x840   : > { %1465 = vst [vmem:[%s1437_s28 + $0x28] sm:$0xf] %v1464_v54  ;;  %1467 = vst [vmem:[%s1437_s28 + $0x30] sm:$0xf] %v1466_v55 }
 0x841   : > { %1469 = vst [vmem:[%s1437_s28 + $0x38] sm:$0xf] %v1468_v18 }
 0x842 PF: > { %s13_s18 = sadd.s32 1, %s2268_s18   ;;  %s2885_s12 = smov %s2248_s13 }
 0x843   : > { %p10_p0 = scmp.ge.s32.totalorder %s13_s18, 10   ;;  %s2886_s13 = smov %s2354_s8 }
 0x844   : > { %s2887_s14 = smov %s2260_s16  ;;  %s2888_s15 = smov %s2264_s17 }
 0x845   : > { %s2889_s16 = smov %s2892_s19  ;;  %s2890_s17 = smov %s2896_s20 }
 0x846   :  { %12 = sbr.rel (!%p10_p0) target bundleno = 4 (0x4), region = 168 }

// kernel: encoder_forward.13
= control target key start
LH: loop header
LB: loop body
LE: loop exit
PB: predicated region body
PF: predicated region fallthrough
CT: control target
= control target key end

     0   :  { %s911_s12 = smov 0   ;;  %s913_s13 = smov 0   ;;  %s1056_s0 = inlined_call_operand.vmem [shape: bf16[32,8,256], index: 0, kind: input, shape index: {}]   ;;  %s1057_s1 = inlined_call_operand.vmem [shape: bf16[256,128], index: 1, kind: input, shape index: {}]   ;;  %s1058_s2 = inlined_call_operand.vmem [shape: f32[1,128], index: 2, kind: input, shape index: {}]   ;;  %s1059_s3 = inlined_call_operand.vmem [shape: f32[32,8,128], index: 3, kind: output, shape index: {}]  }
   0x1   :  { %s915_s14 = smov 0  }
   0x2 LB: > { %s25_s15 = sadd.s32 1, %s885_s13  ;;  %p681_p0 = scmp.ge.s32.totalorder %s889_s14, 1  ;;  %s889_s14 = sphi %s915_s14, %s13_s14   ;;  %s885_s13 = sphi %s913_s13, %s1061_s13   ;;  %s881_s12 = sphi %s911_s12, %s1060_s12  }
   0x3   : > { %p27_p1 = scmp.ge.s32.totalorder %s25_s15, 2  ;;  %p170_p2 = scmp.lt.s32.totalorder %s889_s14, 3 }
   0x5   : > { %s1063_s15 = smov (%p27_p1, %s25_s15), 0  ;;  %p171_p3 = pnand %p681_p0, %p170_p2 }
   0x6   : > { %s682_s18 = sshll.u32 (!%p171_p3), %s881_s12, 4 }
   0x7   : > { %174 = sbr.rel (%p171_p3) target bundleno = 273 (0x111), region = 32  ;;  %p206_p4 = scmp.lt.s32.totalorder (!%p171_p3), %s682_s18, 31 }
   0xc   : > { %v827_v0 = vld [vmem:[%s1057_s1 + $0x78] sm:$0xff]   ;;  %v829_v2 = vld [vmem:[%s1057_s1 + $0x70] sm:$0xff]   ;;  %v831_v4 = vld [vmem:[%s1057_s1 + $0x68] sm:$0xff]   ;;  %s1065_s18 = smov (!%p206_p4, %s682_s18), 31 }
   0xd   : > { %v828_v1 = vld [vmem:[%s1057_s1 + $0x38] sm:$0xff]   ;;  %723 = vmatprep.subr.bf16.mxu0 %v827_v0  ;;  %787 = vmatprep.subr.bf16.mxu1 %v827_v0  ;;  %v830_v3 = vld [vmem:[%s1057_s1 + $0x30] sm:$0xff]   ;;  %v832_v5 = vld [vmem:[%s1057_s1 + $0x28] sm:$0xff]   ;;  %s722_s6 = sshll.u32 %s1065_s18, 3 }
   0xe   : > { %724 = vmatpush3.bf16.msra.mxu0 %v828_v1  ;;  %795 = vmatpush3.bf16.msra.mxu1 %v828_v1  ;;  %v833_v6 = vld [vmem:[%s1057_s1 + $0x60] sm:$0xff]   ;;  %v835_v8 = vld [vmem:[%s1057_s1 + $0x58] sm:$0xff]   ;;  %s964_s11 = scalar_lea.vmem %s1056_s0, %s722_s6  ;;  %v837_v10 = vld [vmem:[%s1057_s1 + $0x50] sm:$0xff]   ;;  %s1013_s8 = scalar_lea.vmem %s1059_s3, %s722_s6 }
   0xf   : > { %725 = vmatprep.subr.bf16.mxu0 %v829_v2  ;;  %788 = vmatprep.subr.bf16.mxu1 %v829_v2  ;;  %v834_v7 = vld [vmem:[%s1057_s1 + $0x20] sm:$0xff]   ;;  %v836_v9 = vld [vmem:[%s1057_s1 + $0x18] sm:$0xff]   ;;  %v838_v13 = vld [vmem:[%s1057_s1 + $0x10] sm:$0xff]  }
  0x10   : > { %v845_v11 = vld [vmem:[%s964_s11 + $0x4] ss:$8 sps:$4 sm:$0xff]   ;;  %v843_v18 = vld [vmem:[%s964_s11] ss:$8 sps:$4 sm:$0xff]   ;;  %v849_v20 = vld [vmem:[%s964_s11 + $0x14] ss:$8 sps:$4 sm:$0xff]  }
  0x11   : > { %v848_v12 = vld [vmem:[%s964_s11 + $0x44] ss:$8 sps:$4 sm:$0xff]   ;;  %492 = vmatprep.mubr.bf16.mxu0 %v845_v11  ;;  %v846_v19 = vld [vmem:[%s964_s11 + $0x40] ss:$8 sps:$4 sm:$0xff]   ;;  %v851_v21 = vld [vmem:[%s964_s11 + $0x54] ss:$8 sps:$4 sm:$0xff]  }
  0x12   : > { %726 = vmatpush3.bf16.msra.mxu0 %v830_v3  ;;  %796 = vmatpush3.bf16.msra.mxu1 %v830_v3  ;;  %v839_v14 = vld [vmem:[%s1057_s1 + $0x48] sm:$0xff]   ;;  %v841_v16 = vld [vmem:[%s1057_s1 + $0x40] sm:$0xff]   ;;  %v853_v22 = vld [vmem:[%s964_s11 + $0x10] ss:$8 sps:$4 sm:$0xff]  }
  0x13   : > { %727 = vmatprep.subr.bf16.mxu0 %v831_v4  ;;  %789 = vmatprep.subr.bf16.mxu1 %v831_v4  ;;  %v840_v15 = vld [vmem:[%s1057_s1 + $0x8] sm:$0xff]   ;;  %v842_v17 = vld [vmem:[%s1057_s1] sm:$0xff]   ;;  %v854_v23 = vld [vmem:[%s964_s11 + $0x50] ss:$8 sps:$4 sm:$0xff]  }
  0x14   : > { %524 = vmatprep.mubr.bf16.mxu1 %v848_v12  ;;  %v855_v24 = vld [vmem:[%s964_s11 + $0x24] ss:$8 sps:$4 sm:$0xff]   ;;  %v859_v26 = vld [vmem:[%s964_s11 + $0x20] ss:$8 sps:$4 sm:$0xff]   ;;  %v861_v28 = vld [vmem:[%s964_s11 + $0x34] ss:$8 sps:$4 sm:$0xff]  }
  0x15   : > { %v857_v25 = vld [vmem:[%s964_s11 + $0x64] ss:$8 sps:$4 sm:$0xff]   ;;  %v860_v27 = vld [vmem:[%s964_s11 + $0x60] ss:$8 sps:$4 sm:$0xff]   ;;  %v863_v29 = vld [vmem:[%s964_s11 + $0x74] ss:$8 sps:$4 sm:$0xff]  }
  0x16   : > { %728 = vmatpush3.bf16.msra.mxu0 %v832_v5  ;;  %797 = vmatpush3.bf16.msra.mxu1 %v832_v5  ;;  %v865_v30 = vld [vmem:[%s964_s11 + $0x30] ss:$8 sps:$4 sm:$0xff]   ;;  %v1006_v34 = vld [vmem:[%s1058_s2] ss:$0 sm:$0xff] }
  0x17   : > { %729 = vmatprep.subr.bf16.mxu0 %v833_v6  ;;  %790 = vmatprep.subr.bf16.mxu1 %v833_v6  ;;  %v866_v31 = vld [vmem:[%s964_s11 + $0x70] ss:$8 sps:$4 sm:$0xff]  }
  0x1a   : > { %730 = vmatpush3.bf16.msra.mxu0 %v834_v7  ;;  %798 = vmatpush3.bf16.msra.mxu1 %v834_v7 }
  0x1b   : > { %731 = vmatprep.subr.bf16.mxu0 %v835_v8  ;;  %791 = vmatprep.subr.bf16.mxu1 %v835_v8 }
  0x1e   : > { %732 = vmatpush3.bf16.msra.mxu0 %v836_v9  ;;  %799 = vmatpush3.bf16.msra.mxu1 %v836_v9 }
  0x1f   : > { %733 = vmatprep.subr.bf16.mxu0 %v837_v10  ;;  %792 = vmatprep.subr.bf16.mxu1 %v837_v10 }
  0x22   : > { %734 = vmatpush3.bf16.msra.mxu0 %v838_v13  ;;  %800 = vmatpush3.bf16.msra.mxu1 %v838_v13 }
  0x23   : > { %735 = vmatprep.subr.bf16.mxu0 %v839_v14  ;;  %793 = vmatprep.subr.bf16.mxu1 %v839_v14 }
  0x26   : > { %736 = vmatpush3.bf16.msra.mxu0 %v840_v15  ;;  %801 = vmatpush3.bf16.msra.mxu1 %v840_v15 }
  0x27   : > { %737 = vmatprep.subr.bf16.mxu0 %v841_v16  ;;  %794 = vmatprep.subr.bf16.mxu1 %v841_v16 }
  0x2a   : > { %738 = vmatpush3.bf16.msra.mxu0 %v842_v17  ;;  %802 = vmatpush3.bf16.msra.mxu1 %v842_v17 }
  0x2d   : > { %493 = vmatmul.mubr.bf16.vlgmr.msra.gmra.mxu0 %v843_v18  ;;  %525 = vmatmul.mubr.bf16.vlgmr.msra.gmra.mxu1 %v846_v19 }
  0x2e   : > { %500 = vmatprep.mubr.bf16.mxu0 %v849_v20  ;;  %532 = vmatprep.mubr.bf16.mxu1 %v851_v21 }
  0x35   : > { %501 = vmatmul.mubr.bf16.gmra.mxu0 %v853_v22  ;;  %533 = vmatmul.mubr.bf16.gmra.mxu1 %v854_v23 }
  0x36   : > { %508 = vmatprep.mubr.bf16.mxu0 %v855_v24  ;;  %540 = vmatprep.mubr.bf16.mxu1 %v857_v25 }
  0x3d   : > { %509 = vmatmul.mubr.bf16.gmra.mxu0 %v859_v26  ;;  %541 = vmatmul.mubr.bf16.gmra.mxu1 %v860_v27 }
  0x3e   : > { %516 = vmatprep.mubr.bf16.mxu0 %v861_v28  ;;  %548 = vmatprep.mubr.bf16.mxu1 %v863_v29 }
  0x45   : > { %517 = vmatmul.mubr.bf16.gmra.mxu0 %v865_v30  ;;  %549 = vmatmul.mubr.bf16.gmra.mxu1 %v866_v31 }
  0xed   : > { %v739_v32 = vpop.f32.mrf.mxu0  ;;  %v763_v33 = vpop.f32.mrf.mxu1 }
  0xef   : > { %v740_v35 = vpop.f32.mrf.mxu0  ;;  %v764_v36 = vpop.f32.mrf.mxu1 }
  0xf0   : > { %v741_v37 = vadd.f32 %v740_v35, %v739_v32  ;;  %v765_v38 = vadd.f32 %v764_v36, %v763_v33 }
  0xf1   : > { %v742_v39 = vpop.f32.mrf.mxu0  ;;  %v766_v40 = vpop.f32.mrf.mxu1 }
  0xf2   : > { %v495_v41 = vadd.f32 %v741_v37, %v1006_v34  ;;  %v527_v42 = vadd.f32 %v765_v38, %v1006_v34 }
  0xf3   : > { %v743_v43 = vpop.f32.mrf.mxu0  ;;  %v767_v44 = vpop.f32.mrf.mxu1 }
  0xf4   : > { %557 = vst [vmem:[%s1013_s8] sm:$0xff] %v495_v41  ;;  %565 = vst [vmem:[%s1013_s8 + $0x40] sm:$0xff] %v527_v42  ;;  %v744_v45 = vadd.f32 %v743_v43, %v742_v39  ;;  %v768_v46 = vadd.f32 %v767_v44, %v766_v40 }
  0xf5   : > { %v745_v47 = vpop.f32.mrf.mxu0  ;;  %v769_v48 = vpop.f32.mrf.mxu1 }
  0xf6   : > { %v498_v49 = vadd.f32 %v744_v45, %v1006_v34  ;;  %v530_v50 = vadd.f32 %v768_v46, %v1006_v34 }
  0xf7   : > { %v746_v51 = vpop.f32.mrf.mxu0  ;;  %v770_v52 = vpop.f32.mrf.mxu1 }
  0xf8   : > { %558 = vst [vmem:[%s1013_s8 + $0x8] sm:$0xff] %v498_v49  ;;  %566 = vst [vmem:[%s1013_s8 + $0x48] sm:$0xff] %v530_v50  ;;  %v747_v53 = vadd.f32 %v746_v51, %v745_v47  ;;  %v771_v54 = vadd.f32 %v770_v52, %v769_v48 }
  0xf9   : > { %v748_v55 = vpop.f32.mrf.mxu0  ;;  %v772_v56 = vpop.f32.mrf.mxu1 }
  0xfa   : > { %v503_v57 = vadd.f32 %v747_v53, %v1006_v34  ;;  %v535_v58 = vadd.f32 %v771_v54, %v1006_v34 }
  0xfb   : > { %v749_v59 = vpop.f32.mrf.mxu0  ;;  %v773_v60 = vpop.f32.mrf.mxu1 }
  0xfc   : > { %559 = vst [vmem:[%s1013_s8 + $0x10] sm:$0xff] %v503_v57  ;;  %567 = vst [vmem:[%s1013_s8 + $0x50] sm:$0xff] %v535_v58  ;;  %v750_v61 = vadd.f32 %v749_v59, %v748_v55  ;;  %v774_v62 = vadd.f32 %v773_v60, %v772_v56 }
  0xfd   : > { %v751_v63 = vpop.f32.mrf.mxu0  ;;  %v775_v0 = vpop.f32.mrf.mxu1 }
  0xfe   : > { %v506_v1 = vadd.f32 %v750_v61, %v1006_v34  ;;  %v538_v2 = vadd.f32 %v774_v62, %v1006_v34 }
  0xff   : > { %v752_v3 = vpop.f32.mrf.mxu0  ;;  %v776_v4 = vpop.f32.mrf.mxu1 }
 0x100   : > { %560 = vst [vmem:[%s1013_s8 + $0x18] sm:$0xff] %v506_v1  ;;  %568 = vst [vmem:[%s1013_s8 + $0x58] sm:$0xff] %v538_v2  ;;  %v753_v5 = vadd.f32 %v752_v3, %v751_v63  ;;  %v777_v6 = vadd.f32 %v776_v4, %v775_v0 }
 0x101   : > { %v754_v7 = vpop.f32.mrf.mxu0  ;;  %v778_v8 = vpop.f32.mrf.mxu1 }
 0x102   : > { %v511_v9 = vadd.f32 %v753_v5, %v1006_v34  ;;  %v543_v10 = vadd.f32 %v777_v6, %v1006_v34 }
 0x103   : > { %v755_v11 = vpop.f32.mrf.mxu0  ;;  %v779_v12 = vpop.f32.mrf.mxu1 }
 0x104   : > { %561 = vst [vmem:[%s1013_s8 + $0x20] sm:$0xff] %v511_v9  ;;  %569 = vst [vmem:[%s1013_s8 + $0x60] sm:$0xff] %v543_v10  ;;  %v756_v13 = vadd.f32 %v755_v11, %v754_v7  ;;  %v780_v14 = vadd.f32 %v779_v12, %v778_v8 }
 0x105   : > { %v757_v15 = vpop.f32.mrf.mxu0  ;;  %v781_v16 = vpop.f32.mrf.mxu1 }
 0x106   : > { %v514_v17 = vadd.f32 %v756_v13, %v1006_v34  ;;  %v546_v18 = vadd.f32 %v780_v14, %v1006_v34 }
 0x107   : > { %v758_v19 = vpop.f32.mrf.mxu0  ;;  %v782_v20 = vpop.f32.mrf.mxu1 }
 0x108   : > { %562 = vst [vmem:[%s1013_s8 + $0x28] sm:$0xff] %v514_v17  ;;  %570 = vst [vmem:[%s1013_s8 + $0x68] sm:$0xff] %v546_v18  ;;  %v759_v21 = vadd.f32 %v758_v19, %v757_v15  ;;  %v783_v22 = vadd.f32 %v782_v20, %v781_v16 }
 0x109   : > { %v760_v23 = vpop.f32.mrf.mxu0  ;;  %v784_v24 = vpop.f32.mrf.mxu1 }
 0x10a   : > { %v519_v25 = vadd.f32 %v759_v21, %v1006_v34  ;;  %v551_v26 = vadd.f32 %v783_v22, %v1006_v34 }
 0x10b   : > { %v761_v27 = vpop.f32.mrf.mxu0  ;;  %v785_v28 = vpop.f32.mrf.mxu1 }
 0x10c   : > { %563 = vst [vmem:[%s1013_s8 + $0x30] sm:$0xff] %v519_v25  ;;  %571 = vst [vmem:[%s1013_s8 + $0x70] sm:$0xff] %v551_v26  ;;  %v762_v29 = vadd.f32 %v761_v27, %v760_v23  ;;  %v786_v30 = vadd.f32 %v785_v28, %v784_v24 }
 0x10e   : > { %v522_v31 = vadd.f32 %v762_v29, %v1006_v34  ;;  %v554_v32 = vadd.f32 %v786_v30, %v1006_v34 }
 0x110   : > { %564 = vst [vmem:[%s1013_s8 + $0x38] sm:$0xff] %v522_v31  ;;  %572 = vst [vmem:[%s1013_s8 + $0x78] sm:$0xff] %v554_v32 }
 0x111 PF: > { %s13_s14 = sadd.s32 1, %s889_s14   ;;  %s1060_s12 = smov %s885_s13 }
 0x112   : > { %p10_p5 = scmp.ge.s32.totalorder %s13_s14, 4   ;;  %s1061_s13 = smov %s1063_s15 }
 0x114   :  { %12 = sbr.rel (!%p10_p5) target bundleno = 2 (0x2), region = 68 }

// kernel: encoder_forward.9
= control target key start
LH: loop header
LB: loop body
LE: loop exit
PB: predicated region body
PF: predicated region fallthrough
CT: control target
= control target key end

     0   :  { %s2321_s12 = smov 0   ;;  %s2323_s13 = smov 0   ;;  %s2883_s0 = inlined_call_operand.vmem [shape: bf16[32,8,256], index: 0, kind: input, shape index: {}]   ;;  %s2884_s1 = inlined_call_operand.vmem [shape: bf16[256,768], index: 1, kind: input, shape index: {}]   ;;  %s2885_s2 = inlined_call_operand.vmem [shape: f32[1,768], index: 2, kind: input, shape index: {}]   ;;  %s2886_s3 = inlined_call_operand.vmem [shape: bf16[32,8,768], index: 3, kind: output, shape index: {}]  }
   0x1   :  { %s2325_s14 = smov 0  }
   0x2 LB: > { %s25_s15 = sadd.s32 1, %s2295_s13  ;;  %p1835_p0 = scmp.ge.s32.totalorder %s2299_s14, 1  ;;  %s2299_s14 = sphi %s2325_s14, %s13_s14   ;;  %s2295_s13 = sphi %s2323_s13, %s2888_s13   ;;  %s2291_s12 = sphi %s2321_s12, %s2887_s12  }
   0x3   : > { %p27_p1 = scmp.ge.s32.totalorder %s25_s15, 2  ;;  %p174_p2 = scmp.lt.s32.totalorder %s2299_s14, 3 }
   0x5   : > { %s2890_s15 = smov (%p27_p1, %s25_s15), 0  ;;  %p175_p3 = pnand %p1835_p0, %p174_p2 }
   0x6   : > { %s1836_s30 = sshll.u32 (!%p175_p3), %s2291_s12, 4 }
   0x7   : > { %178 = sbr.rel (%p175_p3) target bundleno = 370 (0x172), region = 32  ;;  %p214_p4 = scmp.lt.s32.totalorder (!%p175_p3), %s1836_s30, 31 }
   0xc   : > { %v2109_v0 = vld [vmem:[%s2884_s1 + $0x154] ss:$24 sps:$4 sm:$0xff]   ;;  %v2113_v2 = vld [vmem:[%s2884_s1 + $0x150] ss:$24 sps:$4 sm:$0xff]   ;;  %v2115_v4 = vld [vmem:[%s2884_s1 + $0x124] ss:$24 sps:$4 sm:$0xff]  }
   0xd   : > { %v2111_v1 = vld [vmem:[%s2884_s1 + $0x15c] ss:$24 sps:$4 sm:$0xff]   ;;  %947 = vmatprep.subr.bf16.mxu0 %v2109_v0  ;;  %v2114_v3 = vld [vmem:[%s2884_s1 + $0x158] ss:$24 sps:$4 sm:$0xff]   ;;  %v2117_v5 = vld [vmem:[%s2884_s1 + $0x12c] ss:$24 sps:$4 sm:$0xff]  }
   0xe   : > { %1060 = vmatprep.subr.bf16.mxu1 %v2111_v1  ;;  %948 = vmatpush1.bf16.msra.mxu0 %v2113_v2  ;;  %v2119_v6 = vld [vmem:[%s2884_s1 + $0x120] ss:$24 sps:$4 sm:$0xff]   ;;  %v2121_v8 = vld [vmem:[%s2884_s1 + $0xf4] ss:$24 sps:$4 sm:$0xff]   ;;  %v2125_v10 = vld [vmem:[%s2884_s1 + $0xf0] ss:$24 sps:$4 sm:$0xff]  }
   0xf   : > { %1061 = vmatpush1.bf16.msra.mxu1 %v2114_v3  ;;  %949 = vmatprep.subr.bf16.mxu0 %v2115_v4  ;;  %v2120_v7 = vld [vmem:[%s2884_s1 + $0x128] ss:$24 sps:$4 sm:$0xff]   ;;  %v2123_v9 = vld [vmem:[%s2884_s1 + $0xfc] ss:$24 sps:$4 sm:$0xff]   ;;  %v2126_v11 = vld [vmem:[%s2884_s1 + $0xf8] ss:$24 sps:$4 sm:$0xff]  }
  0x10   : > { %1062 = vmatprep.subr.bf16.mxu1 %v2117_v5  ;;  %v2127_v12 = vld [vmem:[%s2884_s1 + $0xc4] ss:$24 sps:$4 sm:$0xff]   ;;  %v2131_v14 = vld [vmem:[%s2884_s1 + $0xc0] ss:$24 sps:$4 sm:$0xff]   ;;  %v2133_v16 = vld [vmem:[%s2884_s1 + $0x94] ss:$24 sps:$4 sm:$0xff]  }
  0x11   : > { %v2129_v13 = vld [vmem:[%s2884_s1 + $0xcc] ss:$24 sps:$4 sm:$0xff]   ;;  %v2132_v15 = vld [vmem:[%s2884_s1 + $0xc8] ss:$24 sps:$4 sm:$0xff]   ;;  %v2135_v17 = vld [vmem:[%s2884_s1 + $0x9c] ss:$24 sps:$4 sm:$0xff]  }
  0x12   : > { %950 = vmatpush1.bf16.msra.mxu0 %v2119_v6  ;;  %v2137_v18 = vld [vmem:[%s2884_s1 + $0x90] ss:$24 sps:$4 sm:$0xff]   ;;  %v2139_v20 = vld [vmem:[%s2884_s1 + $0x64] ss:$24 sps:$4 sm:$0xff]   ;;  %v2143_v22 = vld [vmem:[%s2884_s1 + $0x60] ss:$24 sps:$4 sm:$0xff]  }
  0x13   : > { %1063 = vmatpush1.bf16.msra.mxu1 %v2120_v7  ;;  %951 = vmatprep.subr.bf16.mxu0 %v2121_v8  ;;  %v2138_v19 = vld [vmem:[%s2884_s1 + $0x98] ss:$24 sps:$4 sm:$0xff]   ;;  %v2141_v21 = vld [vmem:[%s2884_s1 + $0x6c] ss:$24 sps:$4 sm:$0xff]   ;;  %v2144_v23 = vld [vmem:[%s2884_s1 + $0x68] ss:$24 sps:$4 sm:$0xff]  }
  0x14   : > { %1064 = vmatprep.subr.bf16.mxu1 %v2123_v9  ;;  %v2145_v24 = vld [vmem:[%s2884_s1 + $0x34] ss:$24 sps:$4 sm:$0xff]   ;;  %v2149_v26 = vld [vmem:[%s2884_s1 + $0x30] ss:$24 sps:$4 sm:$0xff]   ;;  %v2151_v28 = vld [vmem:[%s2884_s1 + $0x4] ss:$24 sps:$4 sm:$0xff]  }
  0x15   : > { %v2147_v25 = vld [vmem:[%s2884_s1 + $0x3c] ss:$24 sps:$4 sm:$0xff]   ;;  %v2150_v27 = vld [vmem:[%s2884_s1 + $0x38] ss:$24 sps:$4 sm:$0xff]   ;;  %v2153_v29 = vld [vmem:[%s2884_s1 + $0xc] ss:$24 sps:$4 sm:$0xff]  }
  0x16   : > { %952 = vmatpush1.bf16.msra.mxu0 %v2125_v10  ;;  %v2155_v30 = vld [vmem:[%s2884_s1] ss:$24 sps:$4 sm:$0xff]   ;;  %v2157_v32 = vld [vmem:[%s2884_s1 + $0x2d4] ss:$24 sps:$4 sm:$0xff]   ;;  %v2161_v34 = vld [vmem:[%s2884_s1 + $0x2d0] ss:$24 sps:$4 sm:$0xff]  }
  0x17   : > { %1065 = vmatpush1.bf16.msra.mxu1 %v2126_v11  ;;  %953 = vmatprep.subr.bf16.mxu0 %v2127_v12  ;;  %v2156_v31 = vld [vmem:[%s2884_s1 + $0x8] ss:$24 sps:$4 sm:$0xff]   ;;  %v2159_v33 = vld [vmem:[%s2884_s1 + $0x2dc] ss:$24 sps:$4 sm:$0xff]   ;;  %v2162_v35 = vld [vmem:[%s2884_s1 + $0x2d8] ss:$24 sps:$4 sm:$0xff]  }
  0x18   : > { %1066 = vmatprep.subr.bf16.mxu1 %v2129_v13  ;;  %v2163_v36 = vld [vmem:[%s2884_s1 + $0x2a4] ss:$24 sps:$4 sm:$0xff]   ;;  %s2892_s30 = smov (!%p214_p4, %s1836_s30), 31  ;;  %v2167_v38 = vld [vmem:[%s2884_s1 + $0x2a0] ss:$24 sps:$4 sm:$0xff]  }
  0x19   : > { %v2165_v37 = vld [vmem:[%s2884_s1 + $0x2ac] ss:$24 sps:$4 sm:$0xff]   ;;  %v2168_v39 = vld [vmem:[%s2884_s1 + $0x2a8] ss:$24 sps:$4 sm:$0xff]   ;;  %v2171_v41 = vld [vmem:[%s2884_s1 + $0x27c] ss:$24 sps:$4 sm:$0xff]  }
  0x1a   : > { %954 = vmatpush1.bf16.msra.mxu0 %v2131_v14  ;;  %v2169_v40 = vld [vmem:[%s2884_s1 + $0x274] ss:$24 sps:$4 sm:$0xff]   ;;  %s2003_s5 = sshll.u32 %s2892_s30, 3  ;;  %v2173_v42 = vld [vmem:[%s2884_s1 + $0x270] ss:$24 sps:$4 sm:$0xff]   ;;  %s2084_s7 = smul.u32 24, %s2892_s30 }
  0x1b   : > { %1067 = vmatpush1.bf16.msra.mxu1 %v2132_v15  ;;  %955 = vmatprep.subr.bf16.mxu0 %v2133_v16  ;;  %v2174_v43 = vld [vmem:[%s2884_s1 + $0x278] ss:$24 sps:$4 sm:$0xff]   ;;  %v2175_v44 = vld [vmem:[%s2884_s1 + $0x244] ss:$24 sps:$4 sm:$0xff]   ;;  %s2483_s17 = scalar_lea.vmem %s2883_s0, %s2003_s5  ;;  %v2180_v47 = vld [vmem:[%s2884_s1 + $0x248] ss:$24 sps:$4 sm:$0xff]  }
  0x1c   : > { %1068 = vmatprep.subr.bf16.mxu1 %v2135_v17  ;;  %v2177_v45 = vld [vmem:[%s2884_s1 + $0x24c] ss:$24 sps:$4 sm:$0xff]   ;;  %v2179_v46 = vld [vmem:[%s2884_s1 + $0x240] ss:$24 sps:$4 sm:$0xff]   ;;  %v2183_v50 = vld [vmem:[%s2884_s1 + $0x21c] ss:$24 sps:$4 sm:$0xff]   ;;  %s2732_s10 = scalar_lea.vmem %s2886_s3, %s2084_s7 }
  0x1d   : > { %v2495_v48 = vld [vmem:[%s2483_s17 + $0x4] ss:$8 sps:$4 sm:$0xff]   ;;  %v2185_v51 = vld [vmem:[%s2884_s1 + $0x210] ss:$24 sps:$4 sm:$0xff]   ;;  %v2191_v55 = vld [vmem:[%s2884_s1 + $0x1e0] ss:$24 sps:$4 sm:$0xff]  }
  0x1e   : > { %956 = vmatpush1.bf16.msra.mxu0 %v2137_v18  ;;  %v2181_v49 = vld [vmem:[%s2884_s1 + $0x214] ss:$24 sps:$4 sm:$0xff]   ;;  %979 = vmatprep.mubr.bf16.mxu0 %v2495_v48  ;;  %v2186_v52 = vld [vmem:[%s2884_s1 + $0x218] ss:$24 sps:$4 sm:$0xff]   ;;  %v2187_v53 = vld [vmem:[%s2884_s1 + $0x1e4] ss:$24 sps:$4 sm:$0xff]  }
  0x1f   : > { %1069 = vmatpush1.bf16.msra.mxu1 %v2138_v19  ;;  %957 = vmatprep.subr.bf16.mxu0 %v2139_v20  ;;  %v2189_v54 = vld [vmem:[%s2884_s1 + $0x1ec] ss:$24 sps:$4 sm:$0xff]   ;;  %v2192_v56 = vld [vmem:[%s2884_s1 + $0x1e8] ss:$24 sps:$4 sm:$0xff]   ;;  %v2195_v58 = vld [vmem:[%s2884_s1 + $0x1bc] ss:$24 sps:$4 sm:$0xff]  }
  0x20   : > { %1070 = vmatprep.subr.bf16.mxu1 %v2141_v21  ;;  %1092 = vmatprep.mubr.bf16.mxu1 %v2495_v48  ;;  %v2193_v57 = vld [vmem:[%s2884_s1 + $0x1b4] ss:$24 sps:$4 sm:$0xff]   ;;  %v2197_v59 = vld [vmem:[%s2884_s1 + $0x1b0] ss:$24 sps:$4 sm:$0xff]   ;;  %v2199_v61 = vld [vmem:[%s2884_s1 + $0x184] ss:$24 sps:$4 sm:$0xff]  }
  0x21   : > { %v2198_v60 = vld [vmem:[%s2884_s1 + $0x1b8] ss:$24 sps:$4 sm:$0xff]   ;;  %v2201_v62 = vld [vmem:[%s2884_s1 + $0x18c] ss:$24 sps:$4 sm:$0xff]   ;;  %v2204_v0 = vld [vmem:[%s2884_s1 + $0x188] ss:$24 sps:$4 sm:$0xff]  }
  0x22   : > { %958 = vmatpush1.bf16.msra.mxu0 %v2143_v22  ;;  %v2203_v63 = vld [vmem:[%s2884_s1 + $0x180] ss:$24 sps:$4 sm:$0xff]   ;;  %v2210_v1 = vld [vmem:[%s2884_s1 + $0x164] ss:$24 sps:$4 sm:$0xff]   ;;  %v2213_v4 = vld [vmem:[%s2884_s1 + $0x134] ss:$24 sps:$4 sm:$0xff]  }
  0x23   : > { %1071 = vmatpush1.bf16.msra.mxu1 %v2144_v23  ;;  %959 = vmatprep.subr.bf16.mxu0 %v2145_v24  ;;  %v2551_v2 = vld [vmem:[%s2483_s17] ss:$8 sps:$4 sm:$0xff]   ;;  %v2560_v5 = vld [vmem:[%s2483_s17 + $0x14] ss:$8 sps:$4 sm:$0xff]   ;;  %v2573_v8 = vld [vmem:[%s2483_s17 + $0x10] ss:$8 sps:$4 sm:$0xff]  }
  0x24   : > { %1072 = vmatprep.subr.bf16.mxu1 %v2147_v25  ;;  %v2208_v3 = vld [vmem:[%s2884_s1 + $0x160] ss:$24 sps:$4 sm:$0xff]   ;;  %v2211_v6 = vld [vmem:[%s2884_s1 + $0x130] ss:$24 sps:$4 sm:$0xff]   ;;  %v2219_v7 = vld [vmem:[%s2884_s1 + $0x104] ss:$24 sps:$4 sm:$0xff]  }
  0x25   : > { %v2217_v9 = vld [vmem:[%s2884_s1 + $0x100] ss:$24 sps:$4 sm:$0xff]   ;;  %v2222_v10 = vld [vmem:[%s2884_s1 + $0xd4] ss:$24 sps:$4 sm:$0xff]   ;;  %v2220_v12 = vld [vmem:[%s2884_s1 + $0xd0] ss:$24 sps:$4 sm:$0xff]  }
  0x26   : > { %960 = vmatpush1.bf16.msra.mxu0 %v2149_v26  ;;  %v2582_v11 = vld [vmem:[%s2483_s17 + $0x24] ss:$8 sps:$4 sm:$0xff]   ;;  %v2595_v14 = vld [vmem:[%s2483_s17 + $0x20] ss:$8 sps:$4 sm:$0xff]   ;;  %v2604_v17 = vld [vmem:[%s2483_s17 + $0x34] ss:$8 sps:$4 sm:$0xff]  }
  0x27   : > { %1073 = vmatpush1.bf16.msra.mxu1 %v2150_v27  ;;  %961 = vmatprep.subr.bf16.mxu0 %v2151_v28  ;;  %v2228_v13 = vld [vmem:[%s2884_s1 + $0xa4] ss:$24 sps:$4 sm:$0xff]   ;;  %v2226_v15 = vld [vmem:[%s2884_s1 + $0xa0] ss:$24 sps:$4 sm:$0xff]   ;;  %v2231_v16 = vld [vmem:[%s2884_s1 + $0x74] ss:$24 sps:$4 sm:$0xff]  }
  0x28   : > { %1074 = vmatprep.subr.bf16.mxu1 %v2153_v29  ;;  %v2229_v18 = vld [vmem:[%s2884_s1 + $0x70] ss:$24 sps:$4 sm:$0xff]   ;;  %v2237_v19 = vld [vmem:[%s2884_s1 + $0x44] ss:$24 sps:$4 sm:$0xff]   ;;  %v2235_v21 = vld [vmem:[%s2884_s1 + $0x40] ss:$24 sps:$4 sm:$0xff]  }
  0x29   : > { %v2617_v20 = vld [vmem:[%s2483_s17 + $0x30] ss:$8 sps:$4 sm:$0xff]   ;;  %v2240_v22 = vld [vmem:[%s2884_s1 + $0x14] ss:$24 sps:$4 sm:$0xff]   ;;  %v2246_v25 = vld [vmem:[%s2884_s1 + $0x2e4] ss:$24 sps:$4 sm:$0xff]  }
  0x2a   : > { %962 = vmatpush1.bf16.msra.mxu0 %v2155_v30  ;;  %v2626_v23 = vld [vmem:[%s2483_s17 + $0x44] ss:$8 sps:$4 sm:$0xff]   ;;  %v2238_v24 = vld [vmem:[%s2884_s1 + $0x10] ss:$24 sps:$4 sm:$0xff]   ;;  %v2244_v27 = vld [vmem:[%s2884_s1 + $0x2e0] ss:$24 sps:$4 sm:$0xff]  }
  0x2b   : > { %1075 = vmatpush1.bf16.msra.mxu1 %v2156_v31  ;;  %963 = vmatprep.subr.bf16.mxu0 %v2157_v32  ;;  %v2639_v26 = vld [vmem:[%s2483_s17 + $0x40] ss:$8 sps:$4 sm:$0xff]   ;;  %v2249_v28 = vld [vmem:[%s2884_s1 + $0x2b4] ss:$24 sps:$4 sm:$0xff]   ;;  %v2255_v31 = vld [vmem:[%s2884_s1 + $0x284] ss:$24 sps:$4 sm:$0xff]  }
  0x2c   : > { %1076 = vmatprep.subr.bf16.mxu1 %v2159_v33  ;;  %v2648_v29 = vld [vmem:[%s2483_s17 + $0x54] ss:$8 sps:$4 sm:$0xff]   ;;  %v2247_v30 = vld [vmem:[%s2884_s1 + $0x2b0] ss:$24 sps:$4 sm:$0xff]   ;;  %v2253_v33 = vld [vmem:[%s2884_s1 + $0x280] ss:$24 sps:$4 sm:$0xff]  }
  0x2d   : > { %v2252_v32 = vld [vmem:[%s2483_s17 + $0x50] ss:$8 sps:$4 sm:$0xff]  }
  0x2e   : > { %964 = vmatpush2.bf16.msra.mxu0 %v2161_v34  ;;  %v2258_v34 = vld [vmem:[%s2884_s1 + $0x254] ss:$24 sps:$4 sm:$0xff]  }
  0x2f   : > { %1077 = vmatpush2.bf16.msra.mxu1 %v2162_v35  ;;  %965 = vmatprep.subr.bf16.mxu0 %v2163_v36  ;;  %v2259_v35 = vld [vmem:[%s2483_s17 + $0x64] ss:$8 sps:$4 sm:$0xff]   ;;  %v2256_v36 = vld [vmem:[%s2884_s1 + $0x250] ss:$24 sps:$4 sm:$0xff]  }
  0x30   : > { %1078 = vmatprep.subr.bf16.mxu1 %v2165_v37  ;;  %v2264_v37 = vld [vmem:[%s2884_s1 + $0x224] ss:$24 sps:$4 sm:$0xff]  }
  0x32   : > { %966 = vmatpush2.bf16.msra.mxu0 %v2167_v38  ;;  %v2261_v38 = vld [vmem:[%s2483_s17 + $0x60] ss:$8 sps:$4 sm:$0xff]  }
  0x33   : > { %1079 = vmatpush2.bf16.msra.mxu1 %v2168_v39  ;;  %967 = vmatprep.subr.bf16.mxu0 %v2169_v40  ;;  %v2262_v39 = vld [vmem:[%s2884_s1 + $0x220] ss:$24 sps:$4 sm:$0xff]   ;;  %v2267_v40 = vld [vmem:[%s2884_s1 + $0x1f4] ss:$24 sps:$4 sm:$0xff]  }
  0x34   : > { %1080 = vmatprep.subr.bf16.mxu1 %v2171_v41  ;;  %v2268_v41 = vld [vmem:[%s2483_s17 + $0x74] ss:$8 sps:$4 sm:$0xff]  }
  0x36   : > { %968 = vmatpush2.bf16.msra.mxu0 %v2173_v42  ;;  %v2265_v42 = vld [vmem:[%s2884_s1 + $0x1f0] ss:$24 sps:$4 sm:$0xff]  }
  0x37   : > { %1081 = vmatpush2.bf16.msra.mxu1 %v2174_v43  ;;  %969 = vmatprep.subr.bf16.mxu0 %v2175_v44  ;;  %v2273_v43 = vld [vmem:[%s2884_s1 + $0x1c4] ss:$24 sps:$4 sm:$0xff]   ;;  %v2270_v44 = vld [vmem:[%s2483_s17 + $0x70] ss:$8 sps:$4 sm:$0xff]  }
  0x38   : > { %1082 = vmatprep.subr.bf16.mxu1 %v2177_v45  ;;  %v2271_v45 = vld [vmem:[%s2884_s1 + $0x1c0] ss:$24 sps:$4 sm:$0xff]  }
  0x3a   : > { %970 = vmatpush2.bf16.msra.mxu0 %v2179_v46  ;;  %v2276_v46 = vld [vmem:[%s2884_s1 + $0x194] ss:$24 sps:$4 sm:$0xff]  }
  0x3b   : > { %1083 = vmatpush2.bf16.msra.mxu1 %v2180_v47  ;;  %971 = vmatprep.subr.bf16.mxu0 %v2181_v49  ;;  %v2274_v47 = vld [vmem:[%s2884_s1 + $0x190] ss:$24 sps:$4 sm:$0xff]  }
  0x3c   : > { %1084 = vmatprep.subr.bf16.mxu1 %v2183_v50 }
  0x3e   : > { %972 = vmatpush2.bf16.msra.mxu0 %v2185_v51  ;;  %v355_v51 = vld [vmem:[%s2885_s2] sm:$0x3f] }
  0x3f   : > { %1085 = vmatpush2.bf16.msra.mxu1 %v2186_v52  ;;  %973 = vmatprep.subr.bf16.mxu0 %v2187_v53 }
  0x40   : > { %1086 = vmatprep.subr.bf16.mxu1 %v2189_v54 }
  0x42   : > { %974 = vmatpush2.bf16.msra.mxu0 %v2191_v55 }
  0x43   : > { %1087 = vmatpush2.bf16.msra.mxu1 %v2192_v56  ;;  %975 = vmatprep.subr.bf16.mxu0 %v2193_v57 }
  0x44   : > { %1088 = vmatprep.subr.bf16.mxu1 %v2195_v58 }
  0x46   : > { %976 = vmatpush2.bf16.msra.mxu0 %v2197_v59 }
  0x47   : > { %1089 = vmatpush2.bf16.msra.mxu1 %v2198_v60  ;;  %977 = vmatprep.subr.bf16.mxu0 %v2199_v61 }
  0x48   : > { %1090 = vmatprep.subr.bf16.mxu1 %v2201_v62 }
  0x4a   : > { %978 = vmatpush2.bf16.msra.mxu0 %v2203_v63 }
  0x4b   : > { %1091 = vmatpush2.bf16.msra.mxu1 %v2204_v0  ;;  %1173 = vmatprep.subr.bf16.mxu0 %v2210_v1 }
  0x4c   : > { %2052 = vmatprep.subr.bf16.mxu1 %v2210_v1 }
  0x4d   : > { %980 = vmatmul.mubr.bf16.vlgmr.msra.gmra.mxu0 %v2551_v2 }
  0x4e   : > { %1093 = vmatmul.mubr.bf16.vlgmr.msra.gmra.mxu1 %v2551_v2  ;;  %1174 = vmatpush1.bf16.msra.mxu0 %v2208_v3 }
  0x4f   : > { %2068 = vmatpush1.bf16.msra.mxu1 %v2208_v3  ;;  %1175 = vmatprep.subr.bf16.mxu0 %v2213_v4 }
  0x50   : > { %2053 = vmatprep.subr.bf16.mxu1 %v2213_v4  ;;  %989 = vmatprep.mubr.bf16.mxu0 %v2560_v5 }
  0x51   : > { %1102 = vmatprep.mubr.bf16.mxu1 %v2560_v5 }
  0x52   : > { %1176 = vmatpush1.bf16.msra.mxu0 %v2211_v6 }
  0x53   : > { %2069 = vmatpush1.bf16.msra.mxu1 %v2211_v6  ;;  %1177 = vmatprep.subr.bf16.mxu0 %v2219_v7 }
  0x54   : > { %2054 = vmatprep.subr.bf16.mxu1 %v2219_v7 }
  0x55   : > { %990 = vmatmul.mubr.bf16.gmra.mxu0 %v2573_v8 }
  0x56   : > { %1103 = vmatmul.mubr.bf16.gmra.mxu1 %v2573_v8  ;;  %1178 = vmatpush1.bf16.msra.mxu0 %v2217_v9 }
  0x57   : > { %2070 = vmatpush1.bf16.msra.mxu1 %v2217_v9  ;;  %1179 = vmatprep.subr.bf16.mxu0 %v2222_v10 }
  0x58   : > { %2055 = vmatprep.subr.bf16.mxu1 %v2222_v10  ;;  %999 = vmatprep.mubr.bf16.mxu0 %v2582_v11 }
  0x59   : > { %1112 = vmatprep.mubr.bf16.mxu1 %v2582_v11 }
  0x5a   : > { %1180 = vmatpush1.bf16.msra.mxu0 %v2220_v12 }
  0x5b   : > { %2071 = vmatpush1.bf16.msra.mxu1 %v2220_v12  ;;  %1181 = vmatprep.subr.bf16.mxu0 %v2228_v13 }
  0x5c   : > { %2056 = vmatprep.subr.bf16.mxu1 %v2228_v13 }
  0x5d   : > { %1000 = vmatmul.mubr.bf16.gmra.mxu0 %v2595_v14 }
  0x5e   : > { %1113 = vmatmul.mubr.bf16.gmra.mxu1 %v2595_v14  ;;  %1182 = vmatpush1.bf16.msra.mxu0 %v2226_v15 }
  0x5f   : > { %2072 = vmatpush1.bf16.msra.mxu1 %v2226_v15  ;;  %1183 = vmatprep.subr.bf16.mxu0 %v2231_v16 }
  0x60   : > { %2057 = vmatprep.subr.bf16.mxu1 %v2231_v16  ;;  %1009 = vmatprep.mubr.bf16.mxu0 %v2604_v17 }
  0x61   : > { %1122 = vmatprep.mubr.bf16.mxu1 %v2604_v17 }
  0x62   : > { %1184 = vmatpush1.bf16.msra.mxu0 %v2229_v18 }
  0x63   : > { %2073 = vmatpush1.bf16.msra.mxu1 %v2229_v18  ;;  %1185 = vmatprep.subr.bf16.mxu0 %v2237_v19 }
  0x64   : > { %2058 = vmatprep.subr.bf16.mxu1 %v2237_v19 }
  0x65   : > { %1010 = vmatmul.mubr.bf16.gmra.mxu0 %v2617_v20 }
  0x66   : > { %1123 = vmatmul.mubr.bf16.gmra.mxu1 %v2617_v20  ;;  %1186 = vmatpush1.bf16.msra.mxu0 %v2235_v21 }
  0x67   : > { %2074 = vmatpush1.bf16.msra.mxu1 %v2235_v21  ;;  %1187 = vmatprep.subr.bf16.mxu0 %v2240_v22 }
  0x68   : > { %2059 = vmatprep.subr.bf16.mxu1 %v2240_v22  ;;  %1019 = vmatprep.mubr.bf16.mxu0 %v2626_v23 }
  0x69   : > { %1132 = vmatprep.mubr.bf16.mxu1 %v2626_v23 }
  0x6a   : > { %1188 = vmatpush1.bf16.msra.mxu0 %v2238_v24 }
  0x6b   : > { %2075 = vmatpush1.bf16.msra.mxu1 %v2238_v24  ;;  %1189 = vmatprep.subr.bf16.mxu0 %v2246_v25 }
  0x6c   : > { %2060 = vmatprep.subr.bf16.mxu1 %v2246_v25 }
  0x6d   : > { %1020 = vmatmul.mubr.bf16.gmra.mxu0 %v2639_v26 }
  0x6e   : > { %1133 = vmatmul.mubr.bf16.gmra.mxu1 %v2639_v26  ;;  %1190 = vmatpush2.bf16.msra.mxu0 %v2244_v27 }
  0x6f   : > { %2076 = vmatpush2.bf16.msra.mxu1 %v2244_v27  ;;  %1191 = vmatprep.subr.bf16.mxu0 %v2249_v28 }
  0x70   : > { %2061 = vmatprep.subr.bf16.mxu1 %v2249_v28  ;;  %1029 = vmatprep.mubr.bf16.mxu0 %v2648_v29 }
  0x71   : > { %1142 = vmatprep.mubr.bf16.mxu1 %v2648_v29 }
  0x72   : > { %1192 = vmatpush2.bf16.msra.mxu0 %v2247_v30 }
  0x73   : > { %2077 = vmatpush2.bf16.msra.mxu1 %v2247_v30  ;;  %1193 = vmatprep.subr.bf16.mxu0 %v2255_v31 }
  0x74   : > { %2062 = vmatprep.subr.bf16.mxu1 %v2255_v31 }
  0x75   : > { %1030 = vmatmul.mubr.bf16.gmra.mxu0 %v2252_v32 }
  0x76   : > { %1143 = vmatmul.mubr.bf16.gmra.mxu1 %v2252_v32  ;;  %1194 = vmatpush2.bf16.msra.mxu0 %v2253_v33 }
  0x77   : > { %2078 = vmatpush2.bf16.msra.mxu1 %v2253_v33  ;;  %1195 = vmatprep.subr.bf16.mxu0 %v2258_v34 }
  0x78   : > { %2063 = vmatprep.subr.bf16.mxu1 %v2258_v34  ;;  %1039 = vmatprep.mubr.bf16.mxu0 %v2259_v35 }
  0x79   : > { %1152 = vmatprep.mubr.bf16.mxu1 %v2259_v35 }
  0x7a   : > { %1196 = vmatpush2.bf16.msra.mxu0 %v2256_v36 }
  0x7b   : > { %2079 = vmatpush2.bf16.msra.mxu1 %v2256_v36  ;;  %1197 = vmatprep.subr.bf16.mxu0 %v2264_v37 }
  0x7c   : > { %2064 = vmatprep.subr.bf16.mxu1 %v2264_v37 }
  0x7d   : > { %1040 = vmatmul.mubr.bf16.gmra.mxu0 %v2261_v38 }
  0x7e   : > { %1153 = vmatmul.mubr.bf16.gmra.mxu1 %v2261_v38  ;;  %1198 = vmatpush2.bf16.msra.mxu0 %v2262_v39 }
  0x7f   : > { %2080 = vmatpush2.bf16.msra.mxu1 %v2262_v39  ;;  %1199 = vmatprep.subr.bf16.mxu0 %v2267_v40 }
  0x80   : > { %2065 = vmatprep.subr.bf16.mxu1 %v2267_v40  ;;  %1049 = vmatprep.mubr.bf16.mxu0 %v2268_v41 }
  0x81   : > { %1162 = vmatprep.mubr.bf16.mxu1 %v2268_v41 }
  0x82   : > { %1200 = vmatpush2.bf16.msra.mxu0 %v2265_v42 }
  0x83   : > { %2081 = vmatpush2.bf16.msra.mxu1 %v2265_v42  ;;  %1201 = vmatprep.subr.bf16.mxu0 %v2273_v43 }
  0x84   : > { %2066 = vmatprep.subr.bf16.mxu1 %v2273_v43 }
  0x85   : > { %1050 = vmatmul.mubr.bf16.gmra.mxu0 %v2270_v44 }
  0x86   : > { %1163 = vmatmul.mubr.bf16.gmra.mxu1 %v2270_v44  ;;  %1202 = vmatpush2.bf16.msra.mxu0 %v2271_v45 }
  0x87   : > { %2082 = vmatpush2.bf16.msra.mxu1 %v2271_v45  ;;  %1203 = vmatprep.subr.bf16.mxu0 %v2276_v46 }
  0x88   : > { %2067 = vmatprep.subr.bf16.mxu1 %v2276_v46  ;;  %1205 = vmatprep.mubr.bf16.mxu0 %v2495_v48  ;;  %v357_v48 = vlaneseq }
  0x89   : > { %1245 = vmatprep.mubr.bf16.mxu1 %v2626_v23 }
  0x8a   : > { %1204 = vmatpush2.bf16.msra.mxu0 %v2274_v47  ;;  %v358_v49 = vshrl.u32 %v357_v48, 7 }
  0x8b   : > { %2083 = vmatpush2.bf16.msra.mxu1 %v2274_v47 }
  0x8c   : > { %v375_v50 = vsub.s32 4, %v358_v49  ;;  %v379_v53 = vsub.s32 5, %v358_v49  ;;  %v359_v55 = vsub.s32 0, %v358_v49  ;;  %v367_v56 = vsub.s32 2, %v358_v49 }
  0x8d   : > { %1206 = vmatmul.mubr.bf16.vlgmr.msra.gmra.mxu0 %v2551_v2  ;;  %v363_v57 = vsub.s32 1, %v358_v49  ;;  %v371_v58 = vsub.s32 3, %v358_v49 }
  0x8e   : > { %1246 = vmatmul.mubr.bf16.vlgmr.msra.gmra.mxu1 %v2639_v26  ;;  %1215 = vmatprep.mubr.bf16.mxu0 %v2560_v5  ;;  %v2712_v52 = vrot.slane %v355_v51, %v375_v50  ;;  %v2714_v54 = vrot.slane %v355_v51, %v379_v53  ;;  %v2716_v59 = vrot.slane %v355_v51, %v359_v55 }
  0x8f   : > { %1255 = vmatprep.mubr.bf16.mxu1 %v2648_v29  ;;  %v2718_v60 = vrot.slane %v355_v51, %v367_v56  ;;  %v2720_v61 = vrot.slane %v355_v51, %v363_v57  ;;  %v2722_v62 = vrot.slane %v355_v51, %v371_v58 }
  0x95   : > { %1216 = vmatmul.mubr.bf16.gmra.mxu0 %v2573_v8 }
  0x96   : > { %1256 = vmatmul.mubr.bf16.gmra.mxu1 %v2252_v32  ;;  %1225 = vmatprep.mubr.bf16.mxu0 %v2582_v11 }
  0x97   : > { %1265 = vmatprep.mubr.bf16.mxu1 %v2259_v35 }
  0x9d   : > { %1226 = vmatmul.mubr.bf16.gmra.mxu0 %v2595_v14 }
  0x9e   : > { %1266 = vmatmul.mubr.bf16.gmra.mxu1 %v2261_v38  ;;  %1235 = vmatprep.mubr.bf16.mxu0 %v2604_v17 }
  0x9f   : > { %1275 = vmatprep.mubr.bf16.mxu1 %v2268_v41 }
  0xa5   : > { %1236 = vmatmul.mubr.bf16.gmra.mxu0 %v2617_v20 }
  0xa6   : > { %1276 = vmatmul.mubr.bf16.gmra.mxu1 %v2270_v44 }
 0x10d   : > { %v981_v63 = vpop.f32.mrf.mxu0 }
 0x10e   : > { %v1094_v0 = vpop.f32.mrf.mxu1  ;;  %v982_v3 = vadd.f32 %v981_v63, %v2716_v59 }
 0x10f   : > { %v983_v1 = vpop.f32.mrf.mxu0  ;;  %v1095_v4 = vadd.f32 %v1094_v0, %v2718_v60 }
 0x110   : > { %v1096_v2 = vpop.f32.mrf.mxu1  ;;  %v984_v5 = vadd.f32 %v983_v1, %v2720_v61 }
 0x111   : > { %v1097_v6 = vadd.f32 %v1096_v2, %v2722_v62  ;;  %v985_v7 = vpop.f32.mrf.mxu0 }
 0x112   : > { %v1098_v8 = vpop.f32.mrf.mxu1  ;;  %v2004_v9 = vpack.c.bf16 %v984_v5, %v982_v3  ;;  %v986_v13 = vadd.f32 %v985_v7, %v2716_v59 }
 0x113   : > { %v2005_v10 = vpack.c.bf16 %v1097_v6, %v1095_v4  ;;  %v987_v11 = vpop.f32.mrf.mxu0  ;;  %v1099_v14 = vadd.f32 %v1098_v8, %v2718_v60 }
 0x114   : > { %v1100_v12 = vpop.f32.mrf.mxu1  ;;  %1670 = vst [vmem:[%s2732_s10] sm:$0xff] %v2004_v9  ;;  %v988_v15 = vadd.f32 %v987_v11, %v2720_v61 }
 0x115   : > { %1671 = vst [vmem:[%s2732_s10 + $0x8] sm:$0xff] %v2005_v10  ;;  %v1101_v16 = vadd.f32 %v1100_v12, %v2722_v62  ;;  %v991_v17 = vpop.f32.mrf.mxu0 }
 0x116   : > { %v1104_v18 = vpop.f32.mrf.mxu1  ;;  %v2007_v19 = vpack.c.bf16 %v988_v15, %v986_v13  ;;  %v992_v23 = vadd.f32 %v991_v17, %v2716_v59 }
 0x117   : > { %v2008_v20 = vpack.c.bf16 %v1101_v16, %v1099_v14  ;;  %v993_v21 = vpop.f32.mrf.mxu0  ;;  %v1105_v24 = vadd.f32 %v1104_v18, %v2718_v60 }
 0x118   : > { %v1106_v22 = vpop.f32.mrf.mxu1  ;;  %1673 = vst [vmem:[%s2732_s10 + $0x18] sm:$0xff] %v2007_v19  ;;  %v994_v25 = vadd.f32 %v993_v21, %v2720_v61 }
 0x119   : > { %1674 = vst [vmem:[%s2732_s10 + $0x20] sm:$0xff] %v2008_v20  ;;  %v1107_v26 = vadd.f32 %v1106_v22, %v2722_v62  ;;  %v995_v27 = vpop.f32.mrf.mxu0 }
 0x11a   : > { %v1108_v28 = vpop.f32.mrf.mxu1  ;;  %v2010_v29 = vpack.c.bf16 %v994_v25, %v992_v23  ;;  %v996_v33 = vadd.f32 %v995_v27, %v2716_v59 }
 0x11b   : > { %v2011_v30 = vpack.c.bf16 %v1107_v26, %v1105_v24  ;;  %v997_v31 = vpop.f32.mrf.mxu0  ;;  %v1109_v34 = vadd.f32 %v1108_v28, %v2718_v60 }
 0x11c   : > { %v1110_v32 = vpop.f32.mrf.mxu1  ;;  %1676 = vst [vmem:[%s2732_s10 + $0x30] sm:$0xff] %v2010_v29  ;;  %v998_v35 = vadd.f32 %v997_v31, %v2720_v61 }
 0x11d   : > { %1677 = vst [vmem:[%s2732_s10 + $0x38] sm:$0xff] %v2011_v30  ;;  %v1111_v36 = vadd.f32 %v1110_v32, %v2722_v62  ;;  %v1001_v37 = vpop.f32.mrf.mxu0 }
 0x11e   : > { %v1114_v38 = vpop.f32.mrf.mxu1  ;;  %v2013_v39 = vpack.c.bf16 %v998_v35, %v996_v33  ;;  %v1002_v43 = vadd.f32 %v1001_v37, %v2716_v59 }
 0x11f   : > { %v2014_v40 = vpack.c.bf16 %v1111_v36, %v1109_v34  ;;  %v1003_v41 = vpop.f32.mrf.mxu0  ;;  %v1115_v44 = vadd.f32 %v1114_v38, %v2718_v60 }
 0x120   : > { %v1116_v42 = vpop.f32.mrf.mxu1  ;;  %1679 = vst [vmem:[%s2732_s10 + $0x48] sm:$0xff] %v2013_v39  ;;  %v1004_v45 = vadd.f32 %v1003_v41, %v2720_v61 }
 0x121   : > { %1680 = vst [vmem:[%s2732_s10 + $0x50] sm:$0xff] %v2014_v40  ;;  %v1117_v46 = vadd.f32 %v1116_v42, %v2722_v62  ;;  %v1005_v47 = vpop.f32.mrf.mxu0 }
 0x122   : > { %v1118_v48 = vpop.f32.mrf.mxu1  ;;  %v2016_v49 = vpack.c.bf16 %v1004_v45, %v1002_v43  ;;  %v1006_v55 = vadd.f32 %v1005_v47, %v2716_v59 }
 0x123   : > { %v2017_v50 = vpack.c.bf16 %v1117_v46, %v1115_v44  ;;  %v1007_v51 = vpop.f32.mrf.mxu0  ;;  %v1119_v56 = vadd.f32 %v1118_v48, %v2718_v60 }
 0x124   : > { %v1120_v53 = vpop.f32.mrf.mxu1  ;;  %1682 = vst [vmem:[%s2732_s10 + $0x60] sm:$0xff] %v2016_v49  ;;  %v1008_v57 = vadd.f32 %v1007_v51, %v2720_v61 }
 0x125   : > { %1683 = vst [vmem:[%s2732_s10 + $0x68] sm:$0xff] %v2017_v50  ;;  %v1121_v58 = vadd.f32 %v1120_v53, %v2722_v62  ;;  %v1011_v63 = vpop.f32.mrf.mxu0 }
 0x126   : > { %v1124_v0 = vpop.f32.mrf.mxu1  ;;  %v2019_v1 = vpack.c.bf16 %v1008_v57, %v1006_v55  ;;  %v1012_v5 = vadd.f32 %v1011_v63, %v2716_v59 }
 0x127   : > { %v2020_v2 = vpack.c.bf16 %v1121_v58, %v1119_v56  ;;  %v1013_v3 = vpop.f32.mrf.mxu0  ;;  %v1125_v6 = vadd.f32 %v1124_v0, %v2718_v60 }
 0x128   : > { %v1126_v4 = vpop.f32.mrf.mxu1  ;;  %1685 = vst [vmem:[%s2732_s10 + $0x78] sm:$0xff] %v2019_v1  ;;  %v1014_v7 = vadd.f32 %v1013_v3, %v2720_v61 }
 0x129   : > { %1686 = vst [vmem:[%s2732_s10 + $0x80] sm:$0xff] %v2020_v2  ;;  %v1127_v8 = vadd.f32 %v1126_v4, %v2722_v62  ;;  %v1015_v9 = vpop.f32.mrf.mxu0 }
 0x12a   : > { %v1128_v10 = vpop.f32.mrf.mxu1  ;;  %v2022_v11 = vpack.c.bf16 %v1014_v7, %v1012_v5  ;;  %v1016_v15 = vadd.f32 %v1015_v9, %v2716_v59 }
 0x12b   : > { %v2023_v12 = vpack.c.bf16 %v1127_v8, %v1125_v6  ;;  %v1017_v13 = vpop.f32.mrf.mxu0  ;;  %v1129_v16 = vadd.f32 %v1128_v10, %v2718_v60 }
 0x12c   : > { %v1130_v14 = vpop.f32.mrf.mxu1  ;;  %1688 = vst [vmem:[%s2732_s10 + $0x90] sm:$0xff] %v2022_v11  ;;  %v1018_v17 = vadd.f32 %v1017_v13, %v2720_v61 }
 0x12d   : > { %1689 = vst [vmem:[%s2732_s10 + $0x98] sm:$0xff] %v2023_v12  ;;  %v1131_v18 = vadd.f32 %v1130_v14, %v2722_v62  ;;  %v1021_v19 = vpop.f32.mrf.mxu0 }
 0x12e   : > { %v1134_v20 = vpop.f32.mrf.mxu1  ;;  %v2025_v21 = vpack.c.bf16 %v1018_v17, %v1016_v15  ;;  %v1022_v25 = vadd.f32 %v1021_v19, %v2716_v59 }
 0x12f   : > { %v2026_v22 = vpack.c.bf16 %v1131_v18, %v1129_v16  ;;  %v1023_v23 = vpop.f32.mrf.mxu0  ;;  %v1135_v26 = vadd.f32 %v1134_v20, %v2718_v60 }
 0x130   : > { %v1136_v24 = vpop.f32.mrf.mxu1  ;;  %1691 = vst [vmem:[%s2732_s10 + $0xa8] sm:$0xff] %v2025_v21  ;;  %v1024_v27 = vadd.f32 %v1023_v23, %v2720_v61 }
 0x131   : > { %1692 = vst [vmem:[%s2732_s10 + $0xb0] sm:$0xff] %v2026_v22  ;;  %v1137_v28 = vadd.f32 %v1136_v24, %v2722_v62  ;;  %v1025_v29 = vpop.f32.mrf.mxu0 }
 0x132   : > { %v1138_v30 = vpop.f32.mrf.mxu1  ;;  %v2028_v31 = vpack.c.bf16 %v1024_v27, %v1022_v25  ;;  %v1026_v35 = vadd.f32 %v1025_v29, %v2716_v59 }
 0x133   : > { %v2029_v32 = vpack.c.bf16 %v1137_v28, %v1135_v26  ;;  %v1027_v33 = vpop.f32.mrf.mxu0  ;;  %v1139_v36 = vadd.f32 %v1138_v30, %v2718_v60 }
 0x134   : > { %v1140_v34 = vpop.f32.mrf.mxu1  ;;  %1694 = vst [vmem:[%s2732_s10 + $0xc0] sm:$0xff] %v2028_v31  ;;  %v1028_v37 = vadd.f32 %v1027_v33, %v2720_v61 }
 0x135   : > { %1695 = vst [vmem:[%s2732_s10 + $0xc8] sm:$0xff] %v2029_v32  ;;  %v1141_v38 = vadd.f32 %v1140_v34, %v2722_v62  ;;  %v1031_v39 = vpop.f32.mrf.mxu0 }
 0x136   : > { %v1144_v40 = vpop.f32.mrf.mxu1  ;;  %v2031_v41 = vpack.c.bf16 %v1028_v37, %v1026_v35  ;;  %v1032_v45 = vadd.f32 %v1031_v39, %v2716_v59 }
 0x137   : > { %v2032_v42 = vpack.c.bf16 %v1141_v38, %v1139_v36  ;;  %v1033_v43 = vpop.f32.mrf.mxu0  ;;  %v1145_v46 = vadd.f32 %v1144_v40, %v2718_v60 }
 0x138   : > { %v1146_v44 = vpop.f32.mrf.mxu1  ;;  %1697 = vst [vmem:[%s2732_s10 + $0xd8] sm:$0xff] %v2031_v41  ;;  %v1034_v47 = vadd.f32 %v1033_v43, %v2720_v61 }
 0x139   : > { %1698 = vst [vmem:[%s2732_s10 + $0xe0] sm:$0xff] %v2032_v42  ;;  %v1147_v48 = vadd.f32 %v1146_v44, %v2722_v62  ;;  %v1035_v49 = vpop.f32.mrf.mxu0 }
 0x13a   : > { %v1148_v50 = vpop.f32.mrf.mxu1  ;;  %v2034_v51 = vpack.c.bf16 %v1034_v47, %v1032_v45  ;;  %v1036_v57 = vadd.f32 %v1035_v49, %v2716_v59 }
 0x13b   : > { %v2035_v53 = vpack.c.bf16 %v1147_v48, %v1145_v46  ;;  %v1037_v55 = vpop.f32.mrf.mxu0  ;;  %v1149_v58 = vadd.f32 %v1148_v50, %v2718_v60 }
 0x13c   : > { %v1150_v56 = vpop.f32.mrf.mxu1  ;;  %1700 = vst [vmem:[%s2732_s10 + $0xf0] sm:$0xff] %v2034_v51  ;;  %v1038_v63 = vadd.f32 %v1037_v55, %v2720_v61 }
 0x13d   : > { %1701 = vst [vmem:[%s2732_s10 + $0xf8] sm:$0xff] %v2035_v53  ;;  %v1151_v0 = vadd.f32 %v1150_v56, %v2722_v62  ;;  %v1041_v1 = vpop.f32.mrf.mxu0 }
 0x13e   : > { %v1154_v2 = vpop.f32.mrf.mxu1  ;;  %v2037_v3 = vpack.c.bf16 %v1038_v63, %v1036_v57  ;;  %v1042_v7 = vadd.f32 %v1041_v1, %v2716_v59 }
 0x13f   : > { %v2038_v4 = vpack.c.bf16 %v1151_v0, %v1149_v58  ;;  %v1043_v5 = vpop.f32.mrf.mxu0  ;;  %v1155_v8 = vadd.f32 %v1154_v2, %v2718_v60 }
 0x140   : > { %v1156_v6 = vpop.f32.mrf.mxu1  ;;  %1703 = vst [vmem:[%s2732_s10 + $0x108] sm:$0xff] %v2037_v3  ;;  %v1044_v9 = vadd.f32 %v1043_v5, %v2720_v61 }
 0x141   : > { %1704 = vst [vmem:[%s2732_s10 + $0x110] sm:$0xff] %v2038_v4  ;;  %v1157_v10 = vadd.f32 %v1156_v6, %v2722_v62  ;;  %v1045_v11 = vpop.f32.mrf.mxu0 }
 0x142   : > { %v1158_v12 = vpop.f32.mrf.mxu1  ;;  %v2040_v13 = vpack.c.bf16 %v1044_v9, %v1042_v7  ;;  %v1046_v17 = vadd.f32 %v1045_v11, %v2716_v59 }
 0x143   : > { %v2041_v14 = vpack.c.bf16 %v1157_v10, %v1155_v8  ;;  %v1047_v15 = vpop.f32.mrf.mxu0  ;;  %v1159_v18 = vadd.f32 %v1158_v12, %v2718_v60 }
 0x144   : > { %v1160_v16 = vpop.f32.mrf.mxu1  ;;  %1706 = vst [vmem:[%s2732_s10 + $0x120] sm:$0xff] %v2040_v13  ;;  %v1048_v19 = vadd.f32 %v1047_v15, %v2720_v61 }
 0x145   : > { %1707 = vst [vmem:[%s2732_s10 + $0x128] sm:$0xff] %v2041_v14  ;;  %v1161_v20 = vadd.f32 %v1160_v16, %v2722_v62  ;;  %v1051_v21 = vpop.f32.mrf.mxu0 }
 0x146   : > { %v1164_v22 = vpop.f32.mrf.mxu1  ;;  %v2043_v23 = vpack.c.bf16 %v1048_v19, %v1046_v17  ;;  %v1052_v27 = vadd.f32 %v1051_v21, %v2716_v59 }
 0x147   : > { %v2044_v24 = vpack.c.bf16 %v1161_v20, %v1159_v18  ;;  %v1053_v25 = vpop.f32.mrf.mxu0  ;;  %v1165_v28 = vadd.f32 %v1164_v22, %v2718_v60 }
 0x148   : > { %v1166_v26 = vpop.f32.mrf.mxu1  ;;  %1709 = vst [vmem:[%s2732_s10 + $0x138] sm:$0xff] %v2043_v23  ;;  %v1054_v29 = vadd.f32 %v1053_v25, %v2720_v61 }
 0x149   : > { %1710 = vst [vmem:[%s2732_s10 + $0x140] sm:$0xff] %v2044_v24  ;;  %v1167_v30 = vadd.f32 %v1166_v26, %v2722_v62  ;;  %v1055_v31 = vpop.f32.mrf.mxu0 }
 0x14a   : > { %v1168_v32 = vpop.f32.mrf.mxu1  ;;  %v2046_v33 = vpack.c.bf16 %v1054_v29, %v1052_v27  ;;  %v1056_v37 = vadd.f32 %v1055_v31, %v2716_v59 }
 0x14b   : > { %v2047_v34 = vpack.c.bf16 %v1167_v30, %v1165_v28  ;;  %v1057_v35 = vpop.f32.mrf.mxu0  ;;  %v1169_v38 = vadd.f32 %v1168_v32, %v2718_v60 }
 0x14c   : > { %v1170_v36 = vpop.f32.mrf.mxu1  ;;  %1712 = vst [vmem:[%s2732_s10 + $0x150] sm:$0xff] %v2046_v33  ;;  %v1058_v39 = vadd.f32 %v1057_v35, %v2720_v61 }
 0x14d   : > { %1713 = vst [vmem:[%s2732_s10 + $0x158] sm:$0xff] %v2047_v34  ;;  %v1171_v40 = vadd.f32 %v1170_v36, %v2722_v62  ;;  %v1207_v41 = vpop.f32.mrf.mxu0 }
 0x14e   : > { %v1247_v42 = vpop.f32.mrf.mxu1  ;;  %v2049_v43 = vpack.c.bf16 %v1058_v39, %v1056_v37  ;;  %v1208_v47 = vadd.f32 %v1207_v41, %v2712_v52 }
 0x14f   : > { %v2050_v44 = vpack.c.bf16 %v1171_v40, %v1169_v38  ;;  %v1209_v45 = vpop.f32.mrf.mxu0  ;;  %v1248_v59 = vadd.f32 %v1247_v42, %v2712_v52 }
 0x150   : > { %v1249_v46 = vpop.f32.mrf.mxu1  ;;  %1715 = vst [vmem:[%s2732_s10 + $0x168] sm:$0xff] %v2049_v43  ;;  %v1210_v60 = vadd.f32 %v1209_v45, %v2714_v54 }
 0x151   : > { %1716 = vst [vmem:[%s2732_s10 + $0x170] sm:$0xff] %v2050_v44  ;;  %v1250_v61 = vadd.f32 %v1249_v46, %v2714_v54  ;;  %v1211_v48 = vpop.f32.mrf.mxu0 }
 0x152   : > { %v1251_v62 = vpop.f32.mrf.mxu1  ;;  %v2006_v49 = vpack.c.bf16 %v1210_v60, %v1208_v47  ;;  %v1212_v55 = vadd.f32 %v1211_v48, %v2712_v52 }
 0x153   : > { %v2030_v50 = vpack.c.bf16 %v1250_v61, %v1248_v59  ;;  %v1213_v51 = vpop.f32.mrf.mxu0  ;;  %v1252_v56 = vadd.f32 %v1251_v62, %v2712_v52 }
 0x154   : > { %v1253_v53 = vpop.f32.mrf.mxu1  ;;  %1672 = vst [vmem:[%s2732_s10 + $0x10] sm:$0xff] %v2006_v49  ;;  %v1214_v57 = vadd.f32 %v1213_v51, %v2714_v54 }
 0x155   : > { %1696 = vst [vmem:[%s2732_s10 + $0xd0] sm:$0xff] %v2030_v50  ;;  %v1254_v58 = vadd.f32 %v1253_v53, %v2714_v54  ;;  %v1217_v63 = vpop.f32.mrf.mxu0 }
 0x156   : > { %v1257_v0 = vpop.f32.mrf.mxu1  ;;  %v2009_v1 = vpack.c.bf16 %v1214_v57, %v1212_v55  ;;  %v1218_v5 = vadd.f32 %v1217_v63, %v2712_v52 }
 0x157   : > { %v2033_v2 = vpack.c.bf16 %v1254_v58, %v1252_v56  ;;  %v1219_v3 = vpop.f32.mrf.mxu0  ;;  %v1258_v6 = vadd.f32 %v1257_v0, %v2712_v52 }
 0x158   : > { %v1259_v4 = vpop.f32.mrf.mxu1  ;;  %1675 = vst [vmem:[%s2732_s10 + $0x28] sm:$0xff] %v2009_v1  ;;  %v1220_v7 = vadd.f32 %v1219_v3, %v2714_v54 }
 0x159   : > { %1699 = vst [vmem:[%s2732_s10 + $0xe8] sm:$0xff] %v2033_v2  ;;  %v1260_v8 = vadd.f32 %v1259_v4, %v2714_v54  ;;  %v1221_v9 = vpop.f32.mrf.mxu0 }
 0x15a   : > { %v1261_v10 = vpop.f32.mrf.mxu1  ;;  %v2012_v11 = vpack.c.bf16 %v1220_v7, %v1218_v5  ;;  %v1222_v15 = vadd.f32 %v1221_v9, %v2712_v52 }
 0x15b   : > { %v2036_v12 = vpack.c.bf16 %v1260_v8, %v1258_v6  ;;  %v1223_v13 = vpop.f32.mrf.mxu0  ;;  %v1262_v16 = vadd.f32 %v1261_v10, %v2712_v52 }
 0x15c   : > { %v1263_v14 = vpop.f32.mrf.mxu1  ;;  %1678 = vst [vmem:[%s2732_s10 + $0x40] sm:$0xff] %v2012_v11  ;;  %v1224_v17 = vadd.f32 %v1223_v13, %v2714_v54 }
 0x15d   : > { %1702 = vst [vmem:[%s2732_s10 + $0x100] sm:$0xff] %v2036_v12  ;;  %v1264_v18 = vadd.f32 %v1263_v14, %v2714_v54  ;;  %v1227_v19 = vpop.f32.mrf.mxu0 }
 0x15e   : > { %v1267_v20 = vpop.f32.mrf.mxu1  ;;  %v2015_v21 = vpack.c.bf16 %v1224_v17, %v1222_v15  ;;  %v1228_v25 = vadd.f32 %v1227_v19, %v2712_v52 }
 0x15f   : > { %v2039_v22 = vpack.c.bf16 %v1264_v18, %v1262_v16  ;;  %v1229_v23 = vpop.f32.mrf.mxu0  ;;  %v1268_v26 = vadd.f32 %v1267_v20, %v2712_v52 }
 0x160   : > { %v1269_v24 = vpop.f32.mrf.mxu1  ;;  %1681 = vst [vmem:[%s2732_s10 + $0x58] sm:$0xff] %v2015_v21  ;;  %v1230_v27 = vadd.f32 %v1229_v23, %v2714_v54 }
 0x161   : > { %1705 = vst [vmem:[%s2732_s10 + $0x118] sm:$0xff] %v2039_v22  ;;  %v1270_v28 = vadd.f32 %v1269_v24, %v2714_v54  ;;  %v1231_v29 = vpop.f32.mrf.mxu0 }
 0x162   : > { %v1271_v30 = vpop.f32.mrf.mxu1  ;;  %v2018_v31 = vpack.c.bf16 %v1230_v27, %v1228_v25  ;;  %v1232_v35 = vadd.f32 %v1231_v29, %v2712_v52 }
 0x163   : > { %v2042_v32 = vpack.c.bf16 %v1270_v28, %v1268_v26  ;;  %v1233_v33 = vpop.f32.mrf.mxu0  ;;  %v1272_v36 = vadd.f32 %v1271_v30, %v2712_v52 }
 0x164   : > { %v1273_v34 = vpop.f32.mrf.mxu1  ;;  %1684 = vst [vmem:[%s2732_s10 + $0x70] sm:$0xff] %v2018_v31  ;;  %v1234_v37 = vadd.f32 %v1233_v33, %v2714_v54 }
 0x165   : > { %1708 = vst [vmem:[%s2732_s10 + $0x130] sm:$0xff] %v2042_v32  ;;  %v1274_v38 = vadd.f32 %v1273_v34, %v2714_v54  ;;  %v1237_v39 = vpop.f32.mrf.mxu0 }
 0x166   : > { %v1277_v40 = vpop.f32.mrf.mxu1  ;;  %v2021_v41 = vpack.c.bf16 %v1234_v37, %v1232_v35  ;;  %v1238_v45 = vadd.f32 %v1237_v39, %v2712_v52 }
 0x167   : > { %v2045_v42 = vpack.c.bf16 %v1274_v38, %v1272_v36  ;;  %v1239_v43 = vpop.f32.mrf.mxu0  ;;  %v1278_v46 = vadd.f32 %v1277_v40, %v2712_v52 }
 0x168   : > { %v1279_v44 = vpop.f32.mrf.mxu1  ;;  %1687 = vst [vmem:[%s2732_s10 + $0x88] sm:$0xff] %v2021_v41  ;;  %v1240_v47 = vadd.f32 %v1239_v43, %v2714_v54 }
 0x169   : > { %1711 = vst [vmem:[%s2732_s10 + $0x148] sm:$0xff] %v2045_v42  ;;  %v1280_v59 = vadd.f32 %v1279_v44, %v2714_v54  ;;  %v1241_v60 = vpop.f32.mrf.mxu0 }
 0x16a   : > { %v1281_v61 = vpop.f32.mrf.mxu1  ;;  %v2024_v48 = vpack.c.bf16 %v1240_v47, %v1238_v45  ;;  %v1242_v51 = vadd.f32 %v1241_v60, %v2712_v52 }
 0x16b   : > { %v2048_v62 = vpack.c.bf16 %v1280_v59, %v1278_v46  ;;  %v1243_v49 = vpop.f32.mrf.mxu0  ;;  %v1282_v53 = vadd.f32 %v1281_v61, %v2712_v52 }
 0x16c   : > { %v1283_v50 = vpop.f32.mrf.mxu1  ;;  %1690 = vst [vmem:[%s2732_s10 + $0xa0] sm:$0xff] %v2024_v48  ;;  %v1244_v55 = vadd.f32 %v1243_v49, %v2714_v54 }
 0x16d   : > { %1714 = vst [vmem:[%s2732_s10 + $0x160] sm:$0xff] %v2048_v62  ;;  %v1284_v56 = vadd.f32 %v1283_v50, %v2714_v54 }
 0x16e   : > { %v2027_v57 = vpack.c.bf16 %v1244_v55, %v1242_v51 }
 0x16f   : > { %v2051_v58 = vpack.c.bf16 %v1284_v56, %v1282_v53 }
 0x170   : > { %1693 = vst [vmem:[%s2732_s10 + $0xb8] sm:$0xff] %v2027_v57 }
 0x171   : > { %1717 = vst [vmem:[%s2732_s10 + $0x178] sm:$0xff] %v2051_v58 }
 0x172 PF: > { %s13_s14 = sadd.s32 1, %s2299_s14   ;;  %s2887_s12 = smov %s2295_s13 }
 0x173   : > { %p10_p5 = scmp.ge.s32.totalorder %s13_s14, 4   ;;  %s2888_s13 = smov %s2890_s15 }
 0x175   :  { %12 = sbr.rel (!%p10_p5) target bundleno = 2 (0x2), region = 68 }

</bundles_post_ra>
